<compile_context>
chip_gen: v5e
topology: v5e:2x2
jax: 0.10.0
libtpu: 0.0.40
codegen_flags: <defaults>
</compile_context>

<pallas_src>
import math
from functools import partial

import jax
import jax.numpy as jnp
from jax.experimental import pallas as pl
from jax.experimental.pallas import tpu as pltpu


def _ceil_to(v, m=128):
    return ((v + m - 1) // m) * m


def _pad2(a, rows, cols):
    return jnp.pad(a, ((0, rows - a.shape[0]), (0, cols - a.shape[1])))


# ------------------------------ fused kernel --------------------------------

def _deeper_gcn_kernel(
    t_ref,                                   # SMEM [L]               softmax temperatures
    x_ref, ea_ref,                           # VMEM [N,xd] [E,ed]
    src_ref, tgt_ref, tgtT_ref,              # VMEM [E,N] [E,N] [N,E]
    node_w_ref, node_b_ref,                  # VMEM [xd,Hp] [1,Hp]
    edge_w_ref, edge_b_ref,                  # VMEM [ed,Hp] [1,Hp]
    w1_ref, b1_ref, mlg_ref, mlb_ref,        # VMEM [L,Hp,H2p] [L,1,H2p] [L,1,H2p] [L,1,H2p]
    w2_ref, b2_ref, ng_ref, nb_ref,          # VMEM [L,H2p,Hp] [L,1,Hp] [L,1,Hp] [L,1,Hp]
    lin_w_ref, lin_b_ref,                    # VMEM [Hp,Yp] [1,Yp]
    out_ref,                                 # VMEM [N,Yp]
    *, num_layers, hidden, hidden2, ln_eps,
):
    f32 = jnp.float32
    hp = w1_ref.shape[1]
    h2p = w1_ref.shape[2]

    # lane masks for the zero-padded feature dims (hoisted; reused by all layers)
    mask_h = (jax.lax.broadcasted_iota(jnp.int32, (1, hp), 1) < hidden).astype(f32)
    mask_h2 = (jax.lax.broadcasted_iota(jnp.int32, (1, h2p), 1) < hidden2).astype(f32)

    src_oh = src_ref[...]                    # [E, N] one-hot of source nodes
    tgt_oh = tgt_ref[...]                    # [E, N] one-hot of target nodes
    tgt_sel = tgtT_ref[...]                  # [N, E] transposed target one-hot

    # additive segment-max mask (layer-invariant, hoisted):
    # 0 where edge e targets node n, -1e30 otherwise
    neg3 = ((tgt_sel - 1.0) * 1e30)[:, :, None]                    # [N, E, 1]

    def masked_layernorm(v, g, b, real_dim, mask, relu):
        # LayerNorm over the first `real_dim` lanes only; pad lanes stay exactly 0.
        inv_n = 1.0 / float(real_dim)
        mean = jnp.sum(v * mask, axis=-1, keepdims=True) * inv_n
        diff = (v - mean) * mask
        var = jnp.sum(diff * diff, axis=-1, keepdims=True) * inv_n
        y = diff * jax.lax.rsqrt(var + ln_eps) * g + b
        if relu:
            y = jnp.maximum(y, 0.0)
        return y

    # node / edge encoders
    x = jnp.dot(x_ref[...], node_w_ref[...], preferred_element_type=f32) + node_b_ref[...]
    ea = jnp.dot(ea_ref[...], edge_w_ref[...], preferred_element_type=f32) + edge_b_ref[...]

    def gen_conv(h, residual, li):
        # GENConv(aggr='softmax', learn_t, num_layers=2, norm='layer')
        t = t_ref[li]                                                   # SMEM scalar
        x_j = jnp.dot(src_oh, h, preferred_element_type=f32)           # gather  [E,Hp]
        msg = jnp.maximum(x_j + ea, 0.0) + 1e-7                        # message [E,Hp]
        score = msg * t

        # per-target-node (segment) max: single broadcasted masked reduce over edges
        node_max = jnp.max(score[None, :, :] + neg3, axis=1)           # [N,Hp]
        edge_max = jnp.dot(tgt_oh, node_max,
                           preferred_element_type=f32)                 # gather back [E,Hp]

        ex = jnp.exp(score - edge_max)                                 # max per node -> 1
        cat = jnp.concatenate([ex, msg * ex], axis=-1)                 # [E, 2*Hp]
        # single MXU contraction over the edge axis: [N,E] @ [E,2*Hp]
        agg = jnp.dot(tgt_sel, cat, preferred_element_type=f32)        # [N, 2*Hp]
        denom, numer = agg[:, :hp], agg[:, hp:]
        # clamp only fires for truly isolated nodes (denom == 0 exactly)
        aggr = numer / jnp.maximum(denom, 1e-16)
        out = aggr + h                                                 # + x_r

        # MLP: Lin(H,2H) -> LayerNorm -> ReLU -> (dropout p=0) -> Lin(2H,H)
        z = jnp.dot(out, w1_ref[li], preferred_element_type=f32) + b1_ref[li]
        z = masked_layernorm(z, mlg_ref[li], mlb_ref[li], hidden2, mask_h2, relu=True)
        y = jnp.dot(z, w2_ref[li], preferred_element_type=f32) + b2_ref[li]
        if residual is not None:
            y = y + residual
        return y

    # layers[0].conv applied directly
    x = gen_conv(x, None, 0)

    # layers[1:]: DeepGCNLayer block='res+' : x = x + conv(dropout(relu(norm(x))))
    for li in range(1, num_layers):
        h = masked_layernorm(x, ng_ref[li], nb_ref[li], hidden, mask_h, relu=True)
        # TODO(synk): dropout(p=0.1) is active only in training; identity at inference.
        x = gen_conv(h, x, li)

    # final: act(norm of layers[0]) -> dropout (identity) -> lin
    x = masked_layernorm(x, ng_ref[0], nb_ref[0], hidden, mask_h, relu=True)
    out_ref[...] = (jnp.dot(x, lin_w_ref[...], preferred_element_type=f32)
                    + lin_b_ref[...])


# ------------------------------ kernel wrapper -------------------------------

def deeper_gcn_forward(x, edge_index, edge_attr, params):
    num_nodes, xdim = x.shape
    edgedim = edge_attr.shape[1]
    hidden = params["node_w"].shape[1]
    hidden2 = params["layers"][0]["conv"]["w1"].shape[1]
    ydim = params["lin_w"].shape[1]
    num_layers = len(params["layers"])
    hp, h2p, yp = _ceil_to(hidden), _ceil_to(hidden2), _ceil_to(ydim)

    # dense one-hot gather/scatter operands; fine for small graphs
    src_oh = jax.nn.one_hot(edge_index[0], num_nodes, dtype=jnp.float32)   # [E, N]
    tgt_oh = jax.nn.one_hot(edge_index[1], num_nodes, dtype=jnp.float32)   # [E, N]
    tgt_oh_t = tgt_oh.T                                                    # [N, E]

    # zero-pad every weight to lane-dense (multiple-of-128) feature dims
    node_w = _pad2(params["node_w"], xdim, hp)
    node_b = _pad2(params["node_b"].reshape(1, -1), 1, hp)
    edge_w = _pad2(params["edge_w"], edgedim, hp)
    edge_b = _pad2(params["edge_b"].reshape(1, -1), 1, hp)
    lin_w = _pad2(params["lin_w"], hp, yp)
    lin_b = _pad2(params["lin_b"].reshape(1, -1), 1, yp)

    layers = params["layers"]
    t_all = jnp.stack([lp["conv"]["t"] for lp in layers]).astype(jnp.float32)
    w1_all = jnp.stack([_pad2(lp["conv"]["w1"], hp, h2p) for lp in layers])
    b1_all = jnp.stack([_pad2(lp["conv"]["b1"].reshape(1, -1), 1, h2p) for lp in layers])
    mlg_all = jnp.stack([_pad2(lp["conv"]["ln_g"].reshape(1, -1), 1, h2p) for lp in layers])
    mlb_all = jnp.stack([_pad2(lp["conv"]["ln_b"].reshape(1, -1), 1, h2p) for lp in layers])
    w2_all = jnp.stack([_pad2(lp["conv"]["w2"], h2p, hp) for lp in layers])
    b2_all = jnp.stack([_pad2(lp["conv"]["b2"].reshape(1, -1), 1, hp) for lp in layers])
    ng_all = jnp.stack([_pad2(lp["norm_g"].reshape(1, -1), 1, hp) for lp in layers])
    nb_all = jnp.stack([_pad2(lp["norm_b"].reshape(1, -1), 1, hp) for lp in layers])

    kernel = partial(
        _deeper_gcn_kernel,
        num_layers=num_layers,
        hidden=hidden, hidden2=hidden2, ln_eps=1e-5,
    )

    vmem = pl.BlockSpec(memory_space=pltpu.MemorySpace.VMEM)
    smem = pl.BlockSpec(memory_space=pltpu.MemorySpace.SMEM)

    out = pl.pallas_call(
        kernel,
        out_shape=jax.ShapeDtypeStruct((num_nodes, yp), jnp.float32),
        in_specs=[smem] + [vmem] * 19,
        out_specs=vmem,
    )(t_all, x, edge_attr, src_oh, tgt_oh, tgt_oh_t,
      node_w, node_b, edge_w, edge_b,
      w1_all, b1_all, mlg_all, mlb_all, w2_all, b2_all, ng_all, nb_all,
      lin_w, lin_b)
    return out[:, :ydim]


# --------------------------- pure-JAX reference ------------------------------

def _reference_forward(x, edge_index, edge_attr, params):
    src, tgt = edge_index[0], edge_index[1]
    n = x.shape[0]

    def lin(v, w, b):
        return v @ w + b

    def ln(v, g, b, eps=1e-5):
        m = v.mean(-1, keepdims=True)
        va = ((v - m) ** 2).mean(-1, keepdims=True)
        return (v - m) * jax.lax.rsqrt(va + eps) * g + b

    def genconv(h, ea, p):
        msg = jnp.maximum(h[src] + ea, 0.0) + 1e-7
        score = msg * p["t"]
        smax = jax.ops.segment_max(score, tgt, num_segments=n)
        smax = jnp.where(jnp.isfinite(smax), smax, 0.0)     # isolated nodes
        ex = jnp.exp(score - smax[tgt])
        den = jax.ops.segment_sum(ex, tgt, num_segments=n)
        num = jax.ops.segment_sum(msg * ex, tgt, num_segments=n)
        aggr = num / jnp.maximum(den, 1e-16)
        out = aggr + h
        z = jnp.maximum(ln(lin(out, p["w1"], p["b1"]), p["ln_g"], p["ln_b"]), 0.0)
        return lin(z, p["w2"], p["b2"])

    h = lin(x, params["node_w"], params["node_b"])
    ea = lin(edge_attr, params["edge_w"], params["edge_b"])
    h = genconv(h, ea, params["layers"][0]["conv"])
    for lp in params["layers"][1:]:
        z = jnp.maximum(ln(h, lp["norm_g"], lp["norm_b"]), 0.0)
        h = h + genconv(z, ea, lp["conv"])
    h = jnp.maximum(ln(h, params["layers"][0]["norm_g"],
                       params["layers"][0]["norm_b"]), 0.0)
    return lin(h, params["lin_w"], params["lin_b"])


# ------------------------------ parameter init -------------------------------

def _lin_init(key, fan_in, fan_out):
    kw, kb = jax.random.split(key)
    bound = 1.0 / math.sqrt(fan_in)
    w = jax.random.uniform(kw, (fan_in, fan_out), jnp.float32, -bound, bound)
    b = jax.random.uniform(kb, (fan_out,), jnp.float32, -bound, bound)
    return w, b


def init_params(key, xdim, edgedim, hidden, ydim, num_layers):
    keys = jax.random.split(key, 3 + num_layers)
    node_w, node_b = _lin_init(keys[0], xdim, hidden)
    edge_w, edge_b = _lin_init(keys[1], edgedim, hidden)
    lin_w, lin_b = _lin_init(keys[2], hidden, ydim)

    layers = []
    for i in range(num_layers):
        k1, k2 = jax.random.split(keys[3 + i])
        w1, b1 = _lin_init(k1, hidden, 2 * hidden)
        w2, b2 = _lin_init(k2, 2 * hidden, hidden)
        layers.append({
            "conv": {
                "t": jnp.array(1.0, jnp.float32),          # learn_t init t=1.0
                "w1": w1, "b1": b1,
                "ln_g": jnp.ones((2 * hidden,), jnp.float32),
                "ln_b": jnp.zeros((2 * hidden,), jnp.float32),
                "w2": w2, "b2": b2,
            },
            "norm_g": jnp.ones((hidden,), jnp.float32),
            "norm_b": jnp.zeros((hidden,), jnp.float32),
        })

    return {
        "node_w": node_w, "node_b": node_b,
        "edge_w": edge_w, "edge_b": edge_b,
        "lin_w": lin_w, "lin_b": lin_b,
        "layers": layers,
    }


# ---------------------------------- main -------------------------------------

if __name__ == "__main__":
    xdim, edgedim, ydim = 8, 8, 112
    hidden, num_layers = 32, 3
    num_nodes, num_edges = 16, 48

    key = jax.random.PRNGKey(0)
    kx, ke, ks, kt, kp = jax.random.split(key, 5)

    x = jax.random.normal(kx, (num_nodes, xdim), jnp.float32)
    edge_attr = jax.random.normal(ke, (num_edges, edgedim), jnp.float32)
    src = jax.random.randint(ks, (num_edges,), 0, num_nodes, jnp.int32)
    tgt = jax.random.randint(kt, (num_edges,), 0, num_nodes, jnp.int32)
    edge_index = jnp.stack([src, tgt], axis=0)  # [2, E]

    params = init_params(kp, xdim, edgedim, hidden, ydim, num_layers)

    fwd = jax.jit(deeper_gcn_forward)
    out = jax.block_until_ready(fwd(x, edge_index, edge_attr, params))

    assert out.shape == (num_nodes, ydim), out.shape
    assert bool(jnp.all(jnp.isfinite(out)))

    ref = _reference_forward(x, edge_index, edge_attr, params)
    assert bool(jnp.allclose(out, ref, atol=5e-3, rtol=5e-3)), \
        float(jnp.max(jnp.abs(out - ref)))

    print("KERNEL_OK")
</pallas_src>

<mosaic_0001>
module attributes {stable_mosaic.version = 11 : i64} {
  func.func @_deeper_gcn_kernel(%arg0: memref<3xf32, #tpu.memory_space<smem>>, %arg1: memref<16x8xf32, #tpu.memory_space<vmem>>, %arg2: memref<48x8xf32, #tpu.memory_space<vmem>>, %arg3: memref<48x16xf32, #tpu.memory_space<vmem>>, %arg4: memref<48x16xf32, #tpu.memory_space<vmem>>, %arg5: memref<16x48xf32, #tpu.memory_space<vmem>>, %arg6: memref<8x128xf32, #tpu.memory_space<vmem>>, %arg7: memref<1x128xf32, #tpu.memory_space<vmem>>, %arg8: memref<8x128xf32, #tpu.memory_space<vmem>>, %arg9: memref<1x128xf32, #tpu.memory_space<vmem>>, %arg10: memref<3x128x128xf32, #tpu.memory_space<vmem>>, %arg11: memref<3x1x128xf32, #tpu.memory_space<vmem>>, %arg12: memref<3x1x128xf32, #tpu.memory_space<vmem>>, %arg13: memref<3x1x128xf32, #tpu.memory_space<vmem>>, %arg14: memref<3x128x128xf32, #tpu.memory_space<vmem>>, %arg15: memref<3x1x128xf32, #tpu.memory_space<vmem>>, %arg16: memref<3x1x128xf32, #tpu.memory_space<vmem>>, %arg17: memref<3x1x128xf32, #tpu.memory_space<vmem>>, %arg18: memref<128x128xf32, #tpu.memory_space<vmem>>, %arg19: memref<1x128xf32, #tpu.memory_space<vmem>>, %arg20: memref<16x128xf32, #tpu.memory_space<vmem>>) attributes {dimension_semantics = [], scalar_prefetch = 0 : i64, scratch_operands = 0 : i64, tpu.core_type = #tpu.core_type<tc>} {
    %0 = tpu.iota {dimensions = array<i32: 1>} : vector<1x128xi32>
    %c32_i32 = arith.constant 32 : i32
    %1 = vector.broadcast %c32_i32 : i32 to vector<1x128xi32>
    %2 = arith.cmpi slt, %0, %1 : vector<1x128xi32>
    %3 = arith.extui %2 : vector<1x128xi1> to vector<1x128xi32>
    %4 = arith.sitofp %3 : vector<1x128xi32> to vector<1x128xf32>
    %5 = tpu.iota {dimensions = array<i32: 1>} : vector<1x128xi32>
    %c64_i32 = arith.constant 64 : i32
    %6 = vector.broadcast %c64_i32 : i32 to vector<1x128xi32>
    %7 = arith.cmpi slt, %5, %6 : vector<1x128xi32>
    %8 = arith.extui %7 : vector<1x128xi1> to vector<1x128xi32>
    %9 = arith.sitofp %8 : vector<1x128xi32> to vector<1x128xf32>
    %c0 = arith.constant 0 : index
    %c0_0 = arith.constant 0 : index
    %10 = vector.load %arg3[%c0, %c0_0] : memref<48x16xf32, #tpu.memory_space<vmem>>, vector<48x16xf32>
    %c0_1 = arith.constant 0 : index
    %c0_2 = arith.constant 0 : index
    %11 = vector.load %arg4[%c0_1, %c0_2] : memref<48x16xf32, #tpu.memory_space<vmem>>, vector<48x16xf32>
    %c0_3 = arith.constant 0 : index
    %c0_4 = arith.constant 0 : index
    %12 = vector.load %arg5[%c0_3, %c0_4] : memref<16x48xf32, #tpu.memory_space<vmem>>, vector<16x48xf32>
    %cst = arith.constant 1.000000e+00 : f32
    %13 = vector.broadcast %cst : f32 to vector<16x48xf32>
    %14 = arith.subf %12, %13 : vector<16x48xf32>
    %cst_5 = arith.constant 1.000000e+30 : f32
    %15 = vector.broadcast %cst_5 : f32 to vector<16x48xf32>
    %16 = arith.mulf %14, %15 : vector<16x48xf32>
    %17 = vector.shape_cast %16 : vector<16x48xf32> to vector<16x48x1xf32>
    %c0_6 = arith.constant 0 : index
    %c0_7 = arith.constant 0 : index
    %18 = vector.load %arg1[%c0_6, %c0_7] : memref<16x8xf32, #tpu.memory_space<vmem>>, vector<16x8xf32>
    %c0_8 = arith.constant 0 : index
    %c0_9 = arith.constant 0 : index
    %19 = vector.load %arg6[%c0_8, %c0_9] : memref<8x128xf32, #tpu.memory_space<vmem>>, vector<8x128xf32>
    %cst_10 = arith.constant dense<0.000000e+00> : vector<16x128xf32>
    %20 = tpu.matmul %18, %19, %cst_10 {dimension_numbers = #tpu.dot_dimension_numbers<[1], [0], [0], [1], [0, 0, 1, 1], [], []>} : vector<16x8xf32>, vector<8x128xf32>, vector<16x128xf32> -> vector<16x128xf32>
    %c0_11 = arith.constant 0 : index
    %c0_12 = arith.constant 0 : index
    %21 = vector.load %arg7[%c0_11, %c0_12] : memref<1x128xf32, #tpu.memory_space<vmem>>, vector<1x128xf32>
    %22 = vector.broadcast %21 : vector<1x128xf32> to vector<16x128xf32>
    %23 = arith.addf %20, %22 : vector<16x128xf32>
    %c0_13 = arith.constant 0 : index
    %c0_14 = arith.constant 0 : index
    %24 = vector.load %arg2[%c0_13, %c0_14] : memref<48x8xf32, #tpu.memory_space<vmem>>, vector<48x8xf32>
    %c0_15 = arith.constant 0 : index
    %c0_16 = arith.constant 0 : index
    %25 = vector.load %arg8[%c0_15, %c0_16] : memref<8x128xf32, #tpu.memory_space<vmem>>, vector<8x128xf32>
    %cst_17 = arith.constant dense<0.000000e+00> : vector<48x128xf32>
    %26 = tpu.matmul %24, %25, %cst_17 {dimension_numbers = #tpu.dot_dimension_numbers<[1], [0], [0], [1], [0, 0, 1, 1], [], []>} : vector<48x8xf32>, vector<8x128xf32>, vector<48x128xf32> -> vector<48x128xf32>
    %c0_18 = arith.constant 0 : index
    %c0_19 = arith.constant 0 : index
    %27 = vector.load %arg9[%c0_18, %c0_19] : memref<1x128xf32, #tpu.memory_space<vmem>>, vector<1x128xf32>
    %28 = vector.broadcast %27 : vector<1x128xf32> to vector<48x128xf32>
    %29 = arith.addf %26, %28 : vector<48x128xf32>
    %c0_20 = arith.constant 0 : index
    %30 = memref.load %arg0[%c0_20] : memref<3xf32, #tpu.memory_space<smem>>
    %cst_21 = arith.constant dense<0.000000e+00> : vector<48x128xf32>
    %31 = tpu.matmul %10, %23, %cst_21 {dimension_numbers = #tpu.dot_dimension_numbers<[1], [0], [0], [1], [0, 0, 1, 1], [], []>} : vector<48x16xf32>, vector<16x128xf32>, vector<48x128xf32> -> vector<48x128xf32>
    %32 = arith.addf %31, %29 : vector<48x128xf32>
    %cst_22 = arith.constant 0.000000e+00 : f32
    %33 = vector.broadcast %cst_22 : f32 to vector<48x128xf32>
    %34 = arith.maximumf %32, %33 : vector<48x128xf32>
    %cst_23 = arith.constant 1.000000e-07 : f32
    %35 = vector.broadcast %cst_23 : f32 to vector<48x128xf32>
    %36 = arith.addf %34, %35 : vector<48x128xf32>
    %37 = vector.broadcast %30 : f32 to vector<48x128xf32>
    %38 = arith.mulf %36, %37 : vector<48x128xf32>
    %39 = vector.shape_cast %38 : vector<48x128xf32> to vector<1x48x128xf32>
    %40 = vector.broadcast %39 : vector<1x48x128xf32> to vector<16x48x128xf32>
    %41 = vector.broadcast %17 : vector<16x48x1xf32> to vector<16x48x128xf32>
    %42 = arith.addf %40, %41 : vector<16x48x128xf32>
    %cst_24 = arith.constant dense<0xFF800000> : vector<16x128xf32>
    %43 = vector.multi_reduction <maximumf>, %42, %cst_24 [1] : vector<16x48x128xf32> to vector<16x128xf32>
    %cst_25 = arith.constant dense<0.000000e+00> : vector<48x128xf32>
    %44 = tpu.matmul %11, %43, %cst_25 {dimension_numbers = #tpu.dot_dimension_numbers<[1], [0], [0], [1], [0, 0, 1, 1], [], []>} : vector<48x16xf32>, vector<16x128xf32>, vector<48x128xf32> -> vector<48x128xf32>
    %45 = arith.subf %38, %44 : vector<48x128xf32>
    %46 = math.exp %45 : vector<48x128xf32>
    %47 = arith.mulf %36, %46 : vector<48x128xf32>
    %48 = tpu.concatenate %46, %47 in 1 : vector<48x128xf32>, vector<48x128xf32> -> vector<48x256xf32>
    %cst_26 = arith.constant dense<0.000000e+00> : vector<16x256xf32>
    %49 = tpu.matmul %12, %48, %cst_26 {dimension_numbers = #tpu.dot_dimension_numbers<[1], [0], [0], [1], [0, 0, 1, 1], [], []>} : vector<16x48xf32>, vector<48x256xf32>, vector<16x256xf32> -> vector<16x256xf32>
    %50 = vector.extract_strided_slice %49 {offsets = [0, 0], sizes = [16, 128], strides = [1, 1]} : vector<16x256xf32> to vector<16x128xf32>
    %51 = vector.extract_strided_slice %49 {offsets = [0, 128], sizes = [16, 128], strides = [1, 1]} : vector<16x256xf32> to vector<16x128xf32>
    %cst_27 = arith.constant 1.000000e-16 : f32
    %52 = vector.broadcast %cst_27 : f32 to vector<16x128xf32>
    %53 = arith.maximumf %50, %52 : vector<16x128xf32>
    %54 = arith.divf %51, %53 : vector<16x128xf32>
    %55 = arith.addf %54, %23 : vector<16x128xf32>
    %c0_28 = arith.constant 0 : index
    %c0_29 = arith.constant 0 : index
    %c0_30 = arith.constant 0 : index
    %56 = vector.load %arg10[%c0_28, %c0_29, %c0_30] : memref<3x128x128xf32, #tpu.memory_space<vmem>>, vector<1x128x128xf32>
    %57 = vector.shape_cast %56 : vector<1x128x128xf32> to vector<128x128xf32>
    %cst_31 = arith.constant dense<0.000000e+00> : vector<16x128xf32>
    %58 = tpu.matmul %55, %57, %cst_31 {dimension_numbers = #tpu.dot_dimension_numbers<[1], [0], [0], [1], [0, 0, 1, 1], [], []>} : vector<16x128xf32>, vector<128x128xf32>, vector<16x128xf32> -> vector<16x128xf32>
    %c0_32 = arith.constant 0 : index
    %c0_33 = arith.constant 0 : index
    %c0_34 = arith.constant 0 : index
    %59 = vector.load %arg11[%c0_32, %c0_33, %c0_34] : memref<3x1x128xf32, #tpu.memory_space<vmem>>, vector<1x1x128xf32>
    %60 = vector.shape_cast %59 : vector<1x1x128xf32> to vector<1x128xf32>
    %61 = vector.broadcast %60 : vector<1x128xf32> to vector<16x128xf32>
    %62 = arith.addf %58, %61 : vector<16x128xf32>
    %c0_35 = arith.constant 0 : index
    %c0_36 = arith.constant 0 : index
    %c0_37 = arith.constant 0 : index
    %63 = vector.load %arg12[%c0_35, %c0_36, %c0_37] : memref<3x1x128xf32, #tpu.memory_space<vmem>>, vector<1x1x128xf32>
    %64 = vector.shape_cast %63 : vector<1x1x128xf32> to vector<1x128xf32>
    %c0_38 = arith.constant 0 : index
    %c0_39 = arith.constant 0 : index
    %c0_40 = arith.constant 0 : index
    %65 = vector.load %arg13[%c0_38, %c0_39, %c0_40] : memref<3x1x128xf32, #tpu.memory_space<vmem>>, vector<1x1x128xf32>
    %66 = vector.shape_cast %65 : vector<1x1x128xf32> to vector<1x128xf32>
    %67 = vector.broadcast %9 : vector<1x128xf32> to vector<16x128xf32>
    %68 = arith.mulf %62, %67 : vector<16x128xf32>
    %cst_41 = arith.constant dense<0.000000e+00> : vector<16xf32>
    %69 = vector.multi_reduction <add>, %68, %cst_41 [1] : vector<16x128xf32> to vector<16xf32>
    %70 = vector.shape_cast %69 : vector<16xf32> to vector<16x1xf32>
    %cst_42 = arith.constant 1.562500e-02 : f32
    %71 = vector.broadcast %cst_42 : f32 to vector<16x1xf32>
    %72 = arith.mulf %70, %71 : vector<16x1xf32>
    %73 = vector.broadcast %72 : vector<16x1xf32> to vector<16x128xf32>
    %74 = arith.subf %62, %73 : vector<16x128xf32>
    %75 = vector.broadcast %9 : vector<1x128xf32> to vector<16x128xf32>
    %76 = arith.mulf %74, %75 : vector<16x128xf32>
    %77 = arith.mulf %76, %76 : vector<16x128xf32>
    %cst_43 = arith.constant dense<0.000000e+00> : vector<16xf32>
    %78 = vector.multi_reduction <add>, %77, %cst_43 [1] : vector<16x128xf32> to vector<16xf32>
    %79 = vector.shape_cast %78 : vector<16xf32> to vector<16x1xf32>
    %cst_44 = arith.constant 1.562500e-02 : f32
    %80 = vector.broadcast %cst_44 : f32 to vector<16x1xf32>
    %81 = arith.mulf %79, %80 : vector<16x1xf32>
    %cst_45 = arith.constant 9.99999974E-6 : f32
    %82 = vector.broadcast %cst_45 : f32 to vector<16x1xf32>
    %83 = arith.addf %81, %82 : vector<16x1xf32>
    %84 = math.rsqrt %83 : vector<16x1xf32>
    %85 = vector.broadcast %84 : vector<16x1xf32> to vector<16x128xf32>
    %86 = arith.mulf %76, %85 : vector<16x128xf32>
    %87 = vector.broadcast %64 : vector<1x128xf32> to vector<16x128xf32>
    %88 = arith.mulf %86, %87 : vector<16x128xf32>
    %89 = vector.broadcast %66 : vector<1x128xf32> to vector<16x128xf32>
    %90 = arith.addf %88, %89 : vector<16x128xf32>
    %cst_46 = arith.constant 0.000000e+00 : f32
    %91 = vector.broadcast %cst_46 : f32 to vector<16x128xf32>
    %92 = arith.maximumf %90, %91 : vector<16x128xf32>
    %c0_47 = arith.constant 0 : index
    %c0_48 = arith.constant 0 : index
    %c0_49 = arith.constant 0 : index
    %93 = vector.load %arg14[%c0_47, %c0_48, %c0_49] : memref<3x128x128xf32, #tpu.memory_space<vmem>>, vector<1x128x128xf32>
    %94 = vector.shape_cast %93 : vector<1x128x128xf32> to vector<128x128xf32>
    %cst_50 = arith.constant dense<0.000000e+00> : vector<16x128xf32>
    %95 = tpu.matmul %92, %94, %cst_50 {dimension_numbers = #tpu.dot_dimension_numbers<[1], [0], [0], [1], [0, 0, 1, 1], [], []>} : vector<16x128xf32>, vector<128x128xf32>, vector<16x128xf32> -> vector<16x128xf32>
    %c0_51 = arith.constant 0 : index
    %c0_52 = arith.constant 0 : index
    %c0_53 = arith.constant 0 : index
    %96 = vector.load %arg15[%c0_51, %c0_52, %c0_53] : memref<3x1x128xf32, #tpu.memory_space<vmem>>, vector<1x1x128xf32>
    %97 = vector.shape_cast %96 : vector<1x1x128xf32> to vector<1x128xf32>
    %98 = vector.broadcast %97 : vector<1x128xf32> to vector<16x128xf32>
    %99 = arith.addf %95, %98 : vector<16x128xf32>
    %c1 = arith.constant 1 : index
    %c0_54 = arith.constant 0 : index
    %c0_55 = arith.constant 0 : index
    %100 = vector.load %arg16[%c1, %c0_54, %c0_55] : memref<3x1x128xf32, #tpu.memory_space<vmem>>, vector<1x1x128xf32>
    %101 = vector.shape_cast %100 : vector<1x1x128xf32> to vector<1x128xf32>
    %c1_56 = arith.constant 1 : index
    %c0_57 = arith.constant 0 : index
    %c0_58 = arith.constant 0 : index
    %102 = vector.load %arg17[%c1_56, %c0_57, %c0_58] : memref<3x1x128xf32, #tpu.memory_space<vmem>>, vector<1x1x128xf32>
    %103 = vector.shape_cast %102 : vector<1x1x128xf32> to vector<1x128xf32>
    %104 = vector.broadcast %4 : vector<1x128xf32> to vector<16x128xf32>
    %105 = arith.mulf %99, %104 : vector<16x128xf32>
    %cst_59 = arith.constant dense<0.000000e+00> : vector<16xf32>
    %106 = vector.multi_reduction <add>, %105, %cst_59 [1] : vector<16x128xf32> to vector<16xf32>
    %107 = vector.shape_cast %106 : vector<16xf32> to vector<16x1xf32>
    %cst_60 = arith.constant 3.125000e-02 : f32
    %108 = vector.broadcast %cst_60 : f32 to vector<16x1xf32>
    %109 = arith.mulf %107, %108 : vector<16x1xf32>
    %110 = vector.broadcast %109 : vector<16x1xf32> to vector<16x128xf32>
    %111 = arith.subf %99, %110 : vector<16x128xf32>
    %112 = vector.broadcast %4 : vector<1x128xf32> to vector<16x128xf32>
    %113 = arith.mulf %111, %112 : vector<16x128xf32>
    %114 = arith.mulf %113, %113 : vector<16x128xf32>
    %cst_61 = arith.constant dense<0.000000e+00> : vector<16xf32>
    %115 = vector.multi_reduction <add>, %114, %cst_61 [1] : vector<16x128xf32> to vector<16xf32>
    %116 = vector.shape_cast %115 : vector<16xf32> to vector<16x1xf32>
    %cst_62 = arith.constant 3.125000e-02 : f32
    %117 = vector.broadcast %cst_62 : f32 to vector<16x1xf32>
    %118 = arith.mulf %116, %117 : vector<16x1xf32>
    %cst_63 = arith.constant 9.99999974E-6 : f32
    %119 = vector.broadcast %cst_63 : f32 to vector<16x1xf32>
    %120 = arith.addf %118, %119 : vector<16x1xf32>
    %121 = math.rsqrt %120 : vector<16x1xf32>
    %122 = vector.broadcast %121 : vector<16x1xf32> to vector<16x128xf32>
    %123 = arith.mulf %113, %122 : vector<16x128xf32>
    %124 = vector.broadcast %101 : vector<1x128xf32> to vector<16x128xf32>
    %125 = arith.mulf %123, %124 : vector<16x128xf32>
    %126 = vector.broadcast %103 : vector<1x128xf32> to vector<16x128xf32>
    %127 = arith.addf %125, %126 : vector<16x128xf32>
    %cst_64 = arith.constant 0.000000e+00 : f32
    %128 = vector.broadcast %cst_64 : f32 to vector<16x128xf32>
    %129 = arith.maximumf %127, %128 : vector<16x128xf32>
    %c1_65 = arith.constant 1 : index
    %130 = memref.load %arg0[%c1_65] : memref<3xf32, #tpu.memory_space<smem>>
    %cst_66 = arith.constant dense<0.000000e+00> : vector<48x128xf32>
    %131 = tpu.matmul %10, %129, %cst_66 {dimension_numbers = #tpu.dot_dimension_numbers<[1], [0], [0], [1], [0, 0, 1, 1], [], []>} : vector<48x16xf32>, vector<16x128xf32>, vector<48x128xf32> -> vector<48x128xf32>
    %132 = arith.addf %131, %29 : vector<48x128xf32>
    %cst_67 = arith.constant 0.000000e+00 : f32
    %133 = vector.broadcast %cst_67 : f32 to vector<48x128xf32>
    %134 = arith.maximumf %132, %133 : vector<48x128xf32>
    %cst_68 = arith.constant 1.000000e-07 : f32
    %135 = vector.broadcast %cst_68 : f32 to vector<48x128xf32>
    %136 = arith.addf %134, %135 : vector<48x128xf32>
    %137 = vector.broadcast %130 : f32 to vector<48x128xf32>
    %138 = arith.mulf %136, %137 : vector<48x128xf32>
    %139 = vector.shape_cast %138 : vector<48x128xf32> to vector<1x48x128xf32>
    %140 = vector.broadcast %139 : vector<1x48x128xf32> to vector<16x48x128xf32>
    %141 = vector.broadcast %17 : vector<16x48x1xf32> to vector<16x48x128xf32>
    %142 = arith.addf %140, %141 : vector<16x48x128xf32>
    %cst_69 = arith.constant dense<0xFF800000> : vector<16x128xf32>
    %143 = vector.multi_reduction <maximumf>, %142, %cst_69 [1] : vector<16x48x128xf32> to vector<16x128xf32>
    %cst_70 = arith.constant dense<0.000000e+00> : vector<48x128xf32>
    %144 = tpu.matmul %11, %143, %cst_70 {dimension_numbers = #tpu.dot_dimension_numbers<[1], [0], [0], [1], [0, 0, 1, 1], [], []>} : vector<48x16xf32>, vector<16x128xf32>, vector<48x128xf32> -> vector<48x128xf32>
    %145 = arith.subf %138, %144 : vector<48x128xf32>
    %146 = math.exp %145 : vector<48x128xf32>
    %147 = arith.mulf %136, %146 : vector<48x128xf32>
    %148 = tpu.concatenate %146, %147 in 1 : vector<48x128xf32>, vector<48x128xf32> -> vector<48x256xf32>
    %cst_71 = arith.constant dense<0.000000e+00> : vector<16x256xf32>
    %149 = tpu.matmul %12, %148, %cst_71 {dimension_numbers = #tpu.dot_dimension_numbers<[1], [0], [0], [1], [0, 0, 1, 1], [], []>} : vector<16x48xf32>, vector<48x256xf32>, vector<16x256xf32> -> vector<16x256xf32>
    %150 = vector.extract_strided_slice %149 {offsets = [0, 0], sizes = [16, 128], strides = [1, 1]} : vector<16x256xf32> to vector<16x128xf32>
    %151 = vector.extract_strided_slice %149 {offsets = [0, 128], sizes = [16, 128], strides = [1, 1]} : vector<16x256xf32> to vector<16x128xf32>
    %cst_72 = arith.constant 1.000000e-16 : f32
    %152 = vector.broadcast %cst_72 : f32 to vector<16x128xf32>
    %153 = arith.maximumf %150, %152 : vector<16x128xf32>
    %154 = arith.divf %151, %153 : vector<16x128xf32>
    %155 = arith.addf %154, %129 : vector<16x128xf32>
    %c1_73 = arith.constant 1 : index
    %c0_74 = arith.constant 0 : index
    %c0_75 = arith.constant 0 : index
    %156 = vector.load %arg10[%c1_73, %c0_74, %c0_75] : memref<3x128x128xf32, #tpu.memory_space<vmem>>, vector<1x128x128xf32>
    %157 = vector.shape_cast %156 : vector<1x128x128xf32> to vector<128x128xf32>
    %cst_76 = arith.constant dense<0.000000e+00> : vector<16x128xf32>
    %158 = tpu.matmul %155, %157, %cst_76 {dimension_numbers = #tpu.dot_dimension_numbers<[1], [0], [0], [1], [0, 0, 1, 1], [], []>} : vector<16x128xf32>, vector<128x128xf32>, vector<16x128xf32> -> vector<16x128xf32>
    %c1_77 = arith.constant 1 : index
    %c0_78 = arith.constant 0 : index
    %c0_79 = arith.constant 0 : index
    %159 = vector.load %arg11[%c1_77, %c0_78, %c0_79] : memref<3x1x128xf32, #tpu.memory_space<vmem>>, vector<1x1x128xf32>
    %160 = vector.shape_cast %159 : vector<1x1x128xf32> to vector<1x128xf32>
    %161 = vector.broadcast %160 : vector<1x128xf32> to vector<16x128xf32>
    %162 = arith.addf %158, %161 : vector<16x128xf32>
    %c1_80 = arith.constant 1 : index
    %c0_81 = arith.constant 0 : index
    %c0_82 = arith.constant 0 : index
    %163 = vector.load %arg12[%c1_80, %c0_81, %c0_82] : memref<3x1x128xf32, #tpu.memory_space<vmem>>, vector<1x1x128xf32>
    %164 = vector.shape_cast %163 : vector<1x1x128xf32> to vector<1x128xf32>
    %c1_83 = arith.constant 1 : index
    %c0_84 = arith.constant 0 : index
    %c0_85 = arith.constant 0 : index
    %165 = vector.load %arg13[%c1_83, %c0_84, %c0_85] : memref<3x1x128xf32, #tpu.memory_space<vmem>>, vector<1x1x128xf32>
    %166 = vector.shape_cast %165 : vector<1x1x128xf32> to vector<1x128xf32>
    %167 = vector.broadcast %9 : vector<1x128xf32> to vector<16x128xf32>
    %168 = arith.mulf %162, %167 : vector<16x128xf32>
    %cst_86 = arith.constant dense<0.000000e+00> : vector<16xf32>
    %169 = vector.multi_reduction <add>, %168, %cst_86 [1] : vector<16x128xf32> to vector<16xf32>
    %170 = vector.shape_cast %169 : vector<16xf32> to vector<16x1xf32>
    %cst_87 = arith.constant 1.562500e-02 : f32
    %171 = vector.broadcast %cst_87 : f32 to vector<16x1xf32>
    %172 = arith.mulf %170, %171 : vector<16x1xf32>
    %173 = vector.broadcast %172 : vector<16x1xf32> to vector<16x128xf32>
    %174 = arith.subf %162, %173 : vector<16x128xf32>
    %175 = vector.broadcast %9 : vector<1x128xf32> to vector<16x128xf32>
    %176 = arith.mulf %174, %175 : vector<16x128xf32>
    %177 = arith.mulf %176, %176 : vector<16x128xf32>
    %cst_88 = arith.constant dense<0.000000e+00> : vector<16xf32>
    %178 = vector.multi_reduction <add>, %177, %cst_88 [1] : vector<16x128xf32> to vector<16xf32>
    %179 = vector.shape_cast %178 : vector<16xf32> to vector<16x1xf32>
    %cst_89 = arith.constant 1.562500e-02 : f32
    %180 = vector.broadcast %cst_89 : f32 to vector<16x1xf32>
    %181 = arith.mulf %179, %180 : vector<16x1xf32>
    %cst_90 = arith.constant 9.99999974E-6 : f32
    %182 = vector.broadcast %cst_90 : f32 to vector<16x1xf32>
    %183 = arith.addf %181, %182 : vector<16x1xf32>
    %184 = math.rsqrt %183 : vector<16x1xf32>
    %185 = vector.broadcast %184 : vector<16x1xf32> to vector<16x128xf32>
    %186 = arith.mulf %176, %185 : vector<16x128xf32>
    %187 = vector.broadcast %164 : vector<1x128xf32> to vector<16x128xf32>
    %188 = arith.mulf %186, %187 : vector<16x128xf32>
    %189 = vector.broadcast %166 : vector<1x128xf32> to vector<16x128xf32>
    %190 = arith.addf %188, %189 : vector<16x128xf32>
    %cst_91 = arith.constant 0.000000e+00 : f32
    %191 = vector.broadcast %cst_91 : f32 to vector<16x128xf32>
    %192 = arith.maximumf %190, %191 : vector<16x128xf32>
    %c1_92 = arith.constant 1 : index
    %c0_93 = arith.constant 0 : index
    %c0_94 = arith.constant 0 : index
    %193 = vector.load %arg14[%c1_92, %c0_93, %c0_94] : memref<3x128x128xf32, #tpu.memory_space<vmem>>, vector<1x128x128xf32>
    %194 = vector.shape_cast %193 : vector<1x128x128xf32> to vector<128x128xf32>
    %cst_95 = arith.constant dense<0.000000e+00> : vector<16x128xf32>
    %195 = tpu.matmul %192, %194, %cst_95 {dimension_numbers = #tpu.dot_dimension_numbers<[1], [0], [0], [1], [0, 0, 1, 1], [], []>} : vector<16x128xf32>, vector<128x128xf32>, vector<16x128xf32> -> vector<16x128xf32>
    %c1_96 = arith.constant 1 : index
    %c0_97 = arith.constant 0 : index
    %c0_98 = arith.constant 0 : index
    %196 = vector.load %arg15[%c1_96, %c0_97, %c0_98] : memref<3x1x128xf32, #tpu.memory_space<vmem>>, vector<1x1x128xf32>
    %197 = vector.shape_cast %196 : vector<1x1x128xf32> to vector<1x128xf32>
    %198 = vector.broadcast %197 : vector<1x128xf32> to vector<16x128xf32>
    %199 = arith.addf %195, %198 : vector<16x128xf32>
    %200 = arith.addf %199, %99 : vector<16x128xf32>
    %c2 = arith.constant 2 : index
    %c0_99 = arith.constant 0 : index
    %c0_100 = arith.constant 0 : index
    %201 = vector.load %arg16[%c2, %c0_99, %c0_100] : memref<3x1x128xf32, #tpu.memory_space<vmem>>, vector<1x1x128xf32>
    %202 = vector.shape_cast %201 : vector<1x1x128xf32> to vector<1x128xf32>
    %c2_101 = arith.constant 2 : index
    %c0_102 = arith.constant 0 : index
    %c0_103 = arith.constant 0 : index
    %203 = vector.load %arg17[%c2_101, %c0_102, %c0_103] : memref<3x1x128xf32, #tpu.memory_space<vmem>>, vector<1x1x128xf32>
    %204 = vector.shape_cast %203 : vector<1x1x128xf32> to vector<1x128xf32>
    %205 = vector.broadcast %4 : vector<1x128xf32> to vector<16x128xf32>
    %206 = arith.mulf %200, %205 : vector<16x128xf32>
    %cst_104 = arith.constant dense<0.000000e+00> : vector<16xf32>
    %207 = vector.multi_reduction <add>, %206, %cst_104 [1] : vector<16x128xf32> to vector<16xf32>
    %208 = vector.shape_cast %207 : vector<16xf32> to vector<16x1xf32>
    %cst_105 = arith.constant 3.125000e-02 : f32
    %209 = vector.broadcast %cst_105 : f32 to vector<16x1xf32>
    %210 = arith.mulf %208, %209 : vector<16x1xf32>
    %211 = vector.broadcast %210 : vector<16x1xf32> to vector<16x128xf32>
    %212 = arith.subf %200, %211 : vector<16x128xf32>
    %213 = vector.broadcast %4 : vector<1x128xf32> to vector<16x128xf32>
    %214 = arith.mulf %212, %213 : vector<16x128xf32>
    %215 = arith.mulf %214, %214 : vector<16x128xf32>
    %cst_106 = arith.constant dense<0.000000e+00> : vector<16xf32>
    %216 = vector.multi_reduction <add>, %215, %cst_106 [1] : vector<16x128xf32> to vector<16xf32>
    %217 = vector.shape_cast %216 : vector<16xf32> to vector<16x1xf32>
    %cst_107 = arith.constant 3.125000e-02 : f32
    %218 = vector.broadcast %cst_107 : f32 to vector<16x1xf32>
    %219 = arith.mulf %217, %218 : vector<16x1xf32>
    %cst_108 = arith.constant 9.99999974E-6 : f32
    %220 = vector.broadcast %cst_108 : f32 to vector<16x1xf32>
    %221 = arith.addf %219, %220 : vector<16x1xf32>
    %222 = math.rsqrt %221 : vector<16x1xf32>
    %223 = vector.broadcast %222 : vector<16x1xf32> to vector<16x128xf32>
    %224 = arith.mulf %214, %223 : vector<16x128xf32>
    %225 = vector.broadcast %202 : vector<1x128xf32> to vector<16x128xf32>
    %226 = arith.mulf %224, %225 : vector<16x128xf32>
    %227 = vector.broadcast %204 : vector<1x128xf32> to vector<16x128xf32>
    %228 = arith.addf %226, %227 : vector<16x128xf32>
    %cst_109 = arith.constant 0.000000e+00 : f32
    %229 = vector.broadcast %cst_109 : f32 to vector<16x128xf32>
    %230 = arith.maximumf %228, %229 : vector<16x128xf32>
    %c2_110 = arith.constant 2 : index
    %231 = memref.load %arg0[%c2_110] : memref<3xf32, #tpu.memory_space<smem>>
    %cst_111 = arith.constant dense<0.000000e+00> : vector<48x128xf32>
    %232 = tpu.matmul %10, %230, %cst_111 {dimension_numbers = #tpu.dot_dimension_numbers<[1], [0], [0], [1], [0, 0, 1, 1], [], []>} : vector<48x16xf32>, vector<16x128xf32>, vector<48x128xf32> -> vector<48x128xf32>
    %233 = arith.addf %232, %29 : vector<48x128xf32>
    %cst_112 = arith.constant 0.000000e+00 : f32
    %234 = vector.broadcast %cst_112 : f32 to vector<48x128xf32>
    %235 = arith.maximumf %233, %234 : vector<48x128xf32>
    %cst_113 = arith.constant 1.000000e-07 : f32
    %236 = vector.broadcast %cst_113 : f32 to vector<48x128xf32>
    %237 = arith.addf %235, %236 : vector<48x128xf32>
    %238 = vector.broadcast %231 : f32 to vector<48x128xf32>
    %239 = arith.mulf %237, %238 : vector<48x128xf32>
    %240 = vector.shape_cast %239 : vector<48x128xf32> to vector<1x48x128xf32>
    %241 = vector.broadcast %240 : vector<1x48x128xf32> to vector<16x48x128xf32>
    %242 = vector.broadcast %17 : vector<16x48x1xf32> to vector<16x48x128xf32>
    %243 = arith.addf %241, %242 : vector<16x48x128xf32>
    %cst_114 = arith.constant dense<0xFF800000> : vector<16x128xf32>
    %244 = vector.multi_reduction <maximumf>, %243, %cst_114 [1] : vector<16x48x128xf32> to vector<16x128xf32>
    %cst_115 = arith.constant dense<0.000000e+00> : vector<48x128xf32>
    %245 = tpu.matmul %11, %244, %cst_115 {dimension_numbers = #tpu.dot_dimension_numbers<[1], [0], [0], [1], [0, 0, 1, 1], [], []>} : vector<48x16xf32>, vector<16x128xf32>, vector<48x128xf32> -> vector<48x128xf32>
    %246 = arith.subf %239, %245 : vector<48x128xf32>
    %247 = math.exp %246 : vector<48x128xf32>
    %248 = arith.mulf %237, %247 : vector<48x128xf32>
    %249 = tpu.concatenate %247, %248 in 1 : vector<48x128xf32>, vector<48x128xf32> -> vector<48x256xf32>
    %cst_116 = arith.constant dense<0.000000e+00> : vector<16x256xf32>
    %250 = tpu.matmul %12, %249, %cst_116 {dimension_numbers = #tpu.dot_dimension_numbers<[1], [0], [0], [1], [0, 0, 1, 1], [], []>} : vector<16x48xf32>, vector<48x256xf32>, vector<16x256xf32> -> vector<16x256xf32>
    %251 = vector.extract_strided_slice %250 {offsets = [0, 0], sizes = [16, 128], strides = [1, 1]} : vector<16x256xf32> to vector<16x128xf32>
    %252 = vector.extract_strided_slice %250 {offsets = [0, 128], sizes = [16, 128], strides = [1, 1]} : vector<16x256xf32> to vector<16x128xf32>
    %cst_117 = arith.constant 1.000000e-16 : f32
    %253 = vector.broadcast %cst_117 : f32 to vector<16x128xf32>
    %254 = arith.maximumf %251, %253 : vector<16x128xf32>
    %255 = arith.divf %252, %254 : vector<16x128xf32>
    %256 = arith.addf %255, %230 : vector<16x128xf32>
    %c2_118 = arith.constant 2 : index
    %c0_119 = arith.constant 0 : index
    %c0_120 = arith.constant 0 : index
    %257 = vector.load %arg10[%c2_118, %c0_119, %c0_120] : memref<3x128x128xf32, #tpu.memory_space<vmem>>, vector<1x128x128xf32>
    %258 = vector.shape_cast %257 : vector<1x128x128xf32> to vector<128x128xf32>
    %cst_121 = arith.constant dense<0.000000e+00> : vector<16x128xf32>
    %259 = tpu.matmul %256, %258, %cst_121 {dimension_numbers = #tpu.dot_dimension_numbers<[1], [0], [0], [1], [0, 0, 1, 1], [], []>} : vector<16x128xf32>, vector<128x128xf32>, vector<16x128xf32> -> vector<16x128xf32>
    %c2_122 = arith.constant 2 : index
    %c0_123 = arith.constant 0 : index
    %c0_124 = arith.constant 0 : index
    %260 = vector.load %arg11[%c2_122, %c0_123, %c0_124] : memref<3x1x128xf32, #tpu.memory_space<vmem>>, vector<1x1x128xf32>
    %261 = vector.shape_cast %260 : vector<1x1x128xf32> to vector<1x128xf32>
    %262 = vector.broadcast %261 : vector<1x128xf32> to vector<16x128xf32>
    %263 = arith.addf %259, %262 : vector<16x128xf32>
    %c2_125 = arith.constant 2 : index
    %c0_126 = arith.constant 0 : index
    %c0_127 = arith.constant 0 : index
    %264 = vector.load %arg12[%c2_125, %c0_126, %c0_127] : memref<3x1x128xf32, #tpu.memory_space<vmem>>, vector<1x1x128xf32>
    %265 = vector.shape_cast %264 : vector<1x1x128xf32> to vector<1x128xf32>
    %c2_128 = arith.constant 2 : index
    %c0_129 = arith.constant 0 : index
    %c0_130 = arith.constant 0 : index
    %266 = vector.load %arg13[%c2_128, %c0_129, %c0_130] : memref<3x1x128xf32, #tpu.memory_space<vmem>>, vector<1x1x128xf32>
    %267 = vector.shape_cast %266 : vector<1x1x128xf32> to vector<1x128xf32>
    %268 = vector.broadcast %9 : vector<1x128xf32> to vector<16x128xf32>
    %269 = arith.mulf %263, %268 : vector<16x128xf32>
    %cst_131 = arith.constant dense<0.000000e+00> : vector<16xf32>
    %270 = vector.multi_reduction <add>, %269, %cst_131 [1] : vector<16x128xf32> to vector<16xf32>
    %271 = vector.shape_cast %270 : vector<16xf32> to vector<16x1xf32>
    %cst_132 = arith.constant 1.562500e-02 : f32
    %272 = vector.broadcast %cst_132 : f32 to vector<16x1xf32>
    %273 = arith.mulf %271, %272 : vector<16x1xf32>
    %274 = vector.broadcast %273 : vector<16x1xf32> to vector<16x128xf32>
    %275 = arith.subf %263, %274 : vector<16x128xf32>
    %276 = vector.broadcast %9 : vector<1x128xf32> to vector<16x128xf32>
    %277 = arith.mulf %275, %276 : vector<16x128xf32>
    %278 = arith.mulf %277, %277 : vector<16x128xf32>
    %cst_133 = arith.constant dense<0.000000e+00> : vector<16xf32>
    %279 = vector.multi_reduction <add>, %278, %cst_133 [1] : vector<16x128xf32> to vector<16xf32>
    %280 = vector.shape_cast %279 : vector<16xf32> to vector<16x1xf32>
    %cst_134 = arith.constant 1.562500e-02 : f32
    %281 = vector.broadcast %cst_134 : f32 to vector<16x1xf32>
    %282 = arith.mulf %280, %281 : vector<16x1xf32>
    %cst_135 = arith.constant 9.99999974E-6 : f32
    %283 = vector.broadcast %cst_135 : f32 to vector<16x1xf32>
    %284 = arith.addf %282, %283 : vector<16x1xf32>
    %285 = math.rsqrt %284 : vector<16x1xf32>
    %286 = vector.broadcast %285 : vector<16x1xf32> to vector<16x128xf32>
    %287 = arith.mulf %277, %286 : vector<16x128xf32>
    %288 = vector.broadcast %265 : vector<1x128xf32> to vector<16x128xf32>
    %289 = arith.mulf %287, %288 : vector<16x128xf32>
    %290 = vector.broadcast %267 : vector<1x128xf32> to vector<16x128xf32>
    %291 = arith.addf %289, %290 : vector<16x128xf32>
    %cst_136 = arith.constant 0.000000e+00 : f32
    %292 = vector.broadcast %cst_136 : f32 to vector<16x128xf32>
    %293 = arith.maximumf %291, %292 : vector<16x128xf32>
    %c2_137 = arith.constant 2 : index
    %c0_138 = arith.constant 0 : index
    %c0_139 = arith.constant 0 : index
    %294 = vector.load %arg14[%c2_137, %c0_138, %c0_139] : memref<3x128x128xf32, #tpu.memory_space<vmem>>, vector<1x128x128xf32>
    %295 = vector.shape_cast %294 : vector<1x128x128xf32> to vector<128x128xf32>
    %cst_140 = arith.constant dense<0.000000e+00> : vector<16x128xf32>
    %296 = tpu.matmul %293, %295, %cst_140 {dimension_numbers = #tpu.dot_dimension_numbers<[1], [0], [0], [1], [0, 0, 1, 1], [], []>} : vector<16x128xf32>, vector<128x128xf32>, vector<16x128xf32> -> vector<16x128xf32>
    %c2_141 = arith.constant 2 : index
    %c0_142 = arith.constant 0 : index
    %c0_143 = arith.constant 0 : index
    %297 = vector.load %arg15[%c2_141, %c0_142, %c0_143] : memref<3x1x128xf32, #tpu.memory_space<vmem>>, vector<1x1x128xf32>
    %298 = vector.shape_cast %297 : vector<1x1x128xf32> to vector<1x128xf32>
    %299 = vector.broadcast %298 : vector<1x128xf32> to vector<16x128xf32>
    %300 = arith.addf %296, %299 : vector<16x128xf32>
    %301 = arith.addf %300, %200 : vector<16x128xf32>
    %c0_144 = arith.constant 0 : index
    %c0_145 = arith.constant 0 : index
    %c0_146 = arith.constant 0 : index
    %302 = vector.load %arg16[%c0_144, %c0_145, %c0_146] : memref<3x1x128xf32, #tpu.memory_space<vmem>>, vector<1x1x128xf32>
    %303 = vector.shape_cast %302 : vector<1x1x128xf32> to vector<1x128xf32>
    %c0_147 = arith.constant 0 : index
    %c0_148 = arith.constant 0 : index
    %c0_149 = arith.constant 0 : index
    %304 = vector.load %arg17[%c0_147, %c0_148, %c0_149] : memref<3x1x128xf32, #tpu.memory_space<vmem>>, vector<1x1x128xf32>
    %305 = vector.shape_cast %304 : vector<1x1x128xf32> to vector<1x128xf32>
    %306 = vector.broadcast %4 : vector<1x128xf32> to vector<16x128xf32>
    %307 = arith.mulf %301, %306 : vector<16x128xf32>
    %cst_150 = arith.constant dense<0.000000e+00> : vector<16xf32>
    %308 = vector.multi_reduction <add>, %307, %cst_150 [1] : vector<16x128xf32> to vector<16xf32>
    %309 = vector.shape_cast %308 : vector<16xf32> to vector<16x1xf32>
    %cst_151 = arith.constant 3.125000e-02 : f32
    %310 = vector.broadcast %cst_151 : f32 to vector<16x1xf32>
    %311 = arith.mulf %309, %310 : vector<16x1xf32>
    %312 = vector.broadcast %311 : vector<16x1xf32> to vector<16x128xf32>
    %313 = arith.subf %301, %312 : vector<16x128xf32>
    %314 = vector.broadcast %4 : vector<1x128xf32> to vector<16x128xf32>
    %315 = arith.mulf %313, %314 : vector<16x128xf32>
    %316 = arith.mulf %315, %315 : vector<16x128xf32>
    %cst_152 = arith.constant dense<0.000000e+00> : vector<16xf32>
    %317 = vector.multi_reduction <add>, %316, %cst_152 [1] : vector<16x128xf32> to vector<16xf32>
    %318 = vector.shape_cast %317 : vector<16xf32> to vector<16x1xf32>
    %cst_153 = arith.constant 3.125000e-02 : f32
    %319 = vector.broadcast %cst_153 : f32 to vector<16x1xf32>
    %320 = arith.mulf %318, %319 : vector<16x1xf32>
    %cst_154 = arith.constant 9.99999974E-6 : f32
    %321 = vector.broadcast %cst_154 : f32 to vector<16x1xf32>
    %322 = arith.addf %320, %321 : vector<16x1xf32>
    %323 = math.rsqrt %322 : vector<16x1xf32>
    %324 = vector.broadcast %323 : vector<16x1xf32> to vector<16x128xf32>
    %325 = arith.mulf %315, %324 : vector<16x128xf32>
    %326 = vector.broadcast %303 : vector<1x128xf32> to vector<16x128xf32>
    %327 = arith.mulf %325, %326 : vector<16x128xf32>
    %328 = vector.broadcast %305 : vector<1x128xf32> to vector<16x128xf32>
    %329 = arith.addf %327, %328 : vector<16x128xf32>
    %cst_155 = arith.constant 0.000000e+00 : f32
    %330 = vector.broadcast %cst_155 : f32 to vector<16x128xf32>
    %331 = arith.maximumf %329, %330 : vector<16x128xf32>
    %c0_156 = arith.constant 0 : index
    %c0_157 = arith.constant 0 : index
    %332 = vector.load %arg18[%c0_156, %c0_157] : memref<128x128xf32, #tpu.memory_space<vmem>>, vector<128x128xf32>
    %cst_158 = arith.constant dense<0.000000e+00> : vector<16x128xf32>
    %333 = tpu.matmul %331, %332, %cst_158 {dimension_numbers = #tpu.dot_dimension_numbers<[1], [0], [0], [1], [0, 0, 1, 1], [], []>} : vector<16x128xf32>, vector<128x128xf32>, vector<16x128xf32> -> vector<16x128xf32>
    %c0_159 = arith.constant 0 : index
    %c0_160 = arith.constant 0 : index
    %334 = vector.load %arg19[%c0_159, %c0_160] : memref<1x128xf32, #tpu.memory_space<vmem>>, vector<1x128xf32>
    %335 = vector.broadcast %334 : vector<1x128xf32> to vector<16x128xf32>
    %336 = arith.addf %333, %335 : vector<16x128xf32>
    %c0_161 = arith.constant 0 : index
    %c0_162 = arith.constant 0 : index
    %337 = vector.load %arg20[%c0_161, %c0_162] : memref<16x128xf32, #tpu.memory_space<vmem>>, vector<16x128xf32>
    tpu.vector_store %arg20[%c0_161, %c0_162], %336 {strides = array<i32>} : memref<16x128xf32, #tpu.memory_space<vmem>>, vector<16x128xf32>,
    return
  }
}

</mosaic_0001>

<bundles_post_ra>
// kernel: deeper_gcn_forward.1
= control target key start
LH: loop header
LB: loop body
LE: loop exit
PB: predicated region body
PF: predicated region fallthrough
CT: control target
= control target key end

     0   :  { %s5811_s0 = inlined_call_operand.vmem [shape: f32[3], index: 0, kind: input, shape index: {}]   ;;  %s5812_s1 = inlined_call_operand.vmem [shape: f32[16,8], index: 1, kind: input, shape index: {}]   ;;  %s5813_s2 = inlined_call_operand.vmem [shape: f32[48,8], index: 2, kind: input, shape index: {}]   ;;  %s5814_s3 = inlined_call_operand.vmem [shape: f32[48,16], index: 3, kind: input, shape index: {}]   ;;  %s5815_s4 = inlined_call_operand.vmem [shape: f32[48,16], index: 4, kind: input, shape index: {}]   ;;  %s5816_s5 = inlined_call_operand.vmem [shape: f32[16,48], index: 5, kind: input, shape index: {}]   ;;  %s5817_s6 = inlined_call_operand.vmem [shape: f32[8,128], index: 6, kind: input, shape index: {}]   ;;  %s5818_s7 = inlined_call_operand.vmem [shape: f32[1,128], index: 7, kind: input, shape index: {}]   ;;  %s5819_s8 = inlined_call_operand.vmem [shape: f32[8,128], index: 8, kind: input, shape index: {}]   ;;  %s5820_s9 = inlined_call_operand.vmem [shape: f32[1,128], index: 9, kind: input, shape index: {}]   ;;  %s5821_s10 = inlined_call_operand.vmem [shape: f32[3,128,128], index: 10, kind: input, shape index: {}]   ;;  %s5822_s11 = inlined_call_operand.vmem [shape: f32[3,1,128], index: 11, kind: input, shape index: {}]   ;;  %s5823_s12 = inlined_call_operand.vmem [shape: f32[3,1,128], index: 12, kind: input, shape index: {}]   ;;  %s5824_s13 = inlined_call_operand.vmem [shape: f32[3,1,128], index: 13, kind: input, shape index: {}]   ;;  %s5825_s14 = inlined_call_operand.vmem [shape: f32[3,128,128], index: 14, kind: input, shape index: {}]   ;;  %s5826_s15 = inlined_call_operand.vmem [shape: f32[3,1,128], index: 15, kind: input, shape index: {}]   ;;  %s5827_s16 = inlined_call_operand.vmem [shape: f32[3,1,128], index: 16, kind: input, shape index: {}]   ;;  %s5828_s17 = inlined_call_operand.vmem [shape: f32[3,1,128], index: 17, kind: input, shape index: {}]   ;;  %s5829_s18 = inlined_call_operand.vmem [shape: f32[128,128], index: 18, kind: input, shape index: {}]   ;;  %s5830_s19 = inlined_call_operand.vmem [shape: f32[1,128], index: 19, kind: input, shape index: {}]   ;;  %s5831_s20 = inlined_call_operand.hbm [shape: f32[16,128], index: 20, kind: output, shape index: {}]  }
   0x1   :  { %6049 = sst [smem:[#allocation127_spill]] %s5811_s0 }
   0x2   :  { %6050 = sst [smem:[#allocation128_spill]] %s5812_s1 }
   0x3   :  { %6051 = sst [smem:[#allocation129_spill]] %s5813_s2 }
   0x4   :  { %6052 = sst [smem:[#allocation130_spill]] %s5814_s3 }
   0x5   :  { %6053 = sst [smem:[#allocation131_spill]] %s5815_s4 }
   0x6   :  { %25 = vsyncpa [#allocation4], 0 }
   0x7   :  { %26 = vsyncpa [#allocation3], 0  ;;  %s6054_s23 = sld [smem:[#allocation127_spill]]  ;;  %s3404_s2 = smov [#allocation2]  }
   0xd   :  { %s32_s24 = sshll.u32 %s6054_s23, 4  ;;  %s33_s24 = int_to_ptr.vmem [resolvable:$true] %s32_s24 }
   0xe   :  { %35 = dma.vmem_to_smem %s33_s24, 16, %s3404_s2, [#allocation4]  }
   0xf   :  { %3400 = dma.done.wait [#allocation4], 16  }
  0x10   :  { %3401 = vsyncadd [#allocation4], 4294967280 }
  0x11   :  { %78 = sfence }
  0x12   :  { %v699_v0 = vld [vmem:[%s5817_s6] sm:$0xff]  ;;  %s6055_s28 = sld [smem:[#allocation128_spill]]  ;;  %vm704_vm0 = vcmask 64512   ;;  %v5836_v2 = vlaneseq  ;;  %v100_v3 = vld [vmem:[%s5816_s5 + $0x8] sm:$0xff]  ;;  %vm799_vm1 = vcmask 130048   ;;  %vm1160_vm2 = vcmask 1041409  }
  0x13   :  { %726 = vmatpush.msra.mxu0 %v699_v0  ;;  %v3036_v5 = vadd.f32 -1.0, %v100_v3  ;;  %v99_v12 = vld [vmem:[%s5816_s5] sm:$0xff]  ;;  %s6056_s2 = sld [smem:[#allocation129_spill]]  ;;  %vm1162_vm3 = vcmask 1042434   ;;  %vm1164_vm4 = vcmask 1043459   ;;  %vm1166_vm5 = vcmask 1044484  }
  0x14   :  { %v3528_v4 = vshrl.u32 %v5836_v2, 7  ;;  %v3035_v13 = vadd.f32 -1.0, %v99_v12  ;;  %v740_v24 = vld [vmem:[%s5819_s8] sm:$0xff]  ;;  %s6059_s30 = sld [smem:[#allocation130_spill]]  ;;  %vm1168_vm6 = vcmask 1045509   ;;  %vm1170_vm7 = vcmask 1046534  }
  0x15   :  { %v3532_v6 = vmul.f32 1e+30, %v3036_v5  ;;  %778 = vmatpush.msra.mxu1 %v740_v24  ;;  %v3241_v31 = vld [vmem:[%s5818_s7] ss:$0 sm:$0xff]  ;;  %vm1172_vm8 = vcmask 1047559   ;;  %s6200_s21 = sld [smem:[#allocation131_spill]] }
  0x16   :  { %3178 = vset.pattern.permute.xlu2 %v3528_v4  ;;  %3177 = vset.pattern.permute.xlu1 %v3528_v4  ;;  %v3552_v11 = vadd.s32 8, %v3528_v4  ;;  %v3559_v14 = vmul.f32 1e+30, %v3035_v13  ;;  %v3577_v18 = vadd.s32 16, %v3528_v4  ;;  %v3638_v28 = vadd.s32 24, %v3528_v4  ;;  %s3063_s1 = sld [smem:[#allocation2 + $0x1]] }
  0x17   :  { %3176 = vset.pattern.permute.xlu0 %v3528_v4  ;;  %v3539_v8 = vperm.slane %v3532_v6, 2  ;;  %v3542_v9 = vperm.slane %v3532_v6, 1  ;;  %v3548_v10 = vperm.slane %v3532_v6, 0  ;;  %v3582_v19 = vperm.slane %v3532_v6, 5  ;;  %s3118_s24 = sld [smem:[#allocation2 + $0x2]]  ;;  %s3407_s6 = smov 128  }
  0x18   :  { %v697_v1 = vld [vmem:[%s6055_s28] sm:$0xff]  ;;  %v698_v7 = vld [vmem:[%s6055_s28 + $0x8] sm:$0xff]  ;;  %v3562_v15 = vperm.slane %v3559_v14, 1  ;;  %v3568_v16 = vperm.slane %v3559_v14, 0  ;;  %v3573_v17 = vperm.slane %v3559_v14, 3  ;;  %v3588_v20 = vperm.slane %v3559_v14, 4 }
  0x19   :  { %3037 = vmatmul.msk.f32.vlgmr.msra.gmra.mxu0 %vm704_vm0, %v697_v1  ;;  %v3595_v21 = vperm.slane %v3532_v6, 3  ;;  %v3600_v22 = vperm.slane %v3532_v6, 4  ;;  %v3607_v23 = vperm.slane %v3559_v14, 2  ;;  %v734_v25 = vld [vmem:[%s6056_s2] sm:$0xff]  ;;  %v3631_v26 = vperm.slane %v3532_v6, 7  ;;  %v735_v27 = vld [vmem:[%s6056_s2 + $0x8] sm:$0xff] }
  0x1a   :  { %3039 = vmatmul.msk.f32.vlgmr.msra.gmra.mxu1 %vm704_vm0, %v734_v25  ;;  %v736_v29 = vld [vmem:[%s6056_s2 + $0x10] sm:$0xff]  ;;  %v737_v32 = vld [vmem:[%s6056_s2 + $0x18] sm:$0xff]  ;;  %v87_v36 = vld [vmem:[%s6059_s30] sm:$0xff]  ;;  %v3682_v39 = vadd.s32 32, %v3528_v4  ;;  %v3706_v43 = vperm.slane %v3559_v14, 5  ;;  %v3715_v45 = vperm.slane %v3559_v14, 6 }
  0x1b   :  { %v738_v37 = vld [vmem:[%s6056_s2 + $0x20] sm:$0xff]  ;;  %v88_v38 = vld [vmem:[%s6059_s30 + $0x8] sm:$0xff]  ;;  %v89_v40 = vld [vmem:[%s6059_s30 + $0x10] sm:$0xff]  ;;  %v3724_v47 = vperm.slane %v3532_v6, 6  ;;  %v3729_v48 = vperm.slane %v3559_v14, 7  ;;  %v3735_v49 = vadd.s32 40, %v3528_v4 }
  0x1c   :  { %v90_v41 = vld [vmem:[%s6059_s30 + $0x18] sm:$0xff]  ;;  %v91_v42 = vld [vmem:[%s6059_s30 + $0x20] sm:$0xff]  ;;  %v92_v44 = vld [vmem:[%s6059_s30 + $0x28] sm:$0xff]  ;;  %vm1260_vm9 = vcmask 392192   ;;  %s3408_s0 = smov 8  }
  0x1d   :  { %v739_v46 = vld [vmem:[%s6056_s2 + $0x28] sm:$0xff] }
  0x1e   :  { %480 = vperm.xlu2 %3178, %v3539_v8   ;;  %443 = vperm.xlu1 %3177, %v3542_v9  }
  0x1f   :  { %406 = vperm.xlu0 %3176, %v3548_v10  }
  0x21   :  { %3038 = vmatmul.msk.f32.gmra.mxu0 %vm704_vm0, %v698_v7 }
  0x22   :  { %3040 = vmatmul.msk.f32.gmra.mxu1 %vm704_vm0, %v735_v27 }
  0x26   :  { %3181 = vset.pattern.permute.xlu2 %v3552_v11  ;;  %3179 = vset.pattern.permute.xlu1 %v3552_v11 }
  0x27   :  { %147 = vperm.xlu0 %3176, %v3562_v15  }
  0x2a   :  { %3041 = vmatmul.msk.f32.gmra.mxu1 %vm704_vm0, %v736_v29 }
  0x2e   :  { %486 = vperm.xlu2 %3181, %v3539_v8   ;;  %449 = vperm.xlu1 %3179, %v3542_v9  }
  0x2f   :  { %221 = vperm.xlu0 %3176, %v3573_v17  }
  0x32   :  { %3042 = vmatmul.msk.f32.gmra.mxu1 %vm704_vm0, %v737_v32 }
  0x36   :  { %116 = vperm.xlu2 %3181, %v3568_v16   ;;  %3180 = vset.pattern.permute.xlu1 %v3528_v4 }
  0x37   :  { %591 = vperm.xlu0 %3176, %v3582_v19  }
  0x3a   :  { %3043 = vmatmul.msk.f32.gmra.mxu1 %vm704_vm0, %v738_v37 }
  0x3e   :  { %3183 = vset.pattern.permute.xlu2 %v3577_v18  ;;  %110 = vperm.xlu1 %3180, %v3568_v16  }
  0x3f   :  { %258 = vperm.xlu0 %3176, %v3588_v20  }
  0x42   :  { %3044 = vmatmul.msk.f32.gmra.mxu1 %vm704_vm0, %v739_v46 }
  0x46   :  { %418 = vperm.xlu2 %3183, %v3548_v10   ;;  %3182 = vset.pattern.permute.xlu1 %v3552_v11 }
  0x47   :  { %3197 = vset.pattern.permute.xlu0 %v3577_v18 }
  0x4e   :  { %3185 = vset.pattern.permute.xlu2 %v3528_v4  ;;  %153 = vperm.xlu1 %3182, %v3562_v15  }
  0x4f   :  { %566 = vperm.xlu0 %3197, %v3600_v22  }
  0x56   :  { %517 = vperm.xlu2 %3185, %v3595_v21   ;;  %3184 = vset.pattern.permute.xlu1 %v3577_v18 }
  0x57   :  { %233 = vperm.xlu0 %3197, %v3573_v17  }
  0x5e   :  { %3187 = vset.pattern.permute.xlu2 %v3552_v11  ;;  %455 = vperm.xlu1 %3184, %v3542_v9  }
  0x5f   :  { %3202 = vset.pattern.permute.xlu0 %v3552_v11 }
  0x66   :  { %190 = vperm.xlu2 %3187, %v3607_v23   ;;  %3186 = vset.pattern.permute.xlu1 %v3528_v4 }
  0x67   :  { %412 = vperm.xlu0 %3202, %v3548_v10  }
  0x6e   :  { %3189 = vset.pattern.permute.xlu2 %v3528_v4  ;;  %184 = vperm.xlu1 %3186, %v3607_v23  }
  0x6f   :  { %523 = vperm.xlu0 %3202, %v3595_v21  }
  0x76   :  { %554 = vperm.xlu2 %3189, %v3600_v22   ;;  %3188 = vset.pattern.permute.xlu1 %v3577_v18 }
  0x77   :  { %560 = vperm.xlu0 %3202, %v3600_v22  }
  0x78   :  { %v3772_v50 = vpop.permute.xlu2 %480 }
  0x79   :  { %6060 = vst [vmem:[#allocation10_spill] sm:$0xff] %v3772_v50 }
  0x7e   :  { %3190 = vset.pattern.permute.xlu2 %v3577_v18  ;;  %492 = vperm.xlu1 %3188, %v3539_v8  }
  0x7f   :  { %671 = vperm.xlu0 %3202, %v3631_v26  }
  0x86   :  { %159 = vperm.xlu2 %3190, %v3562_v15   ;;  %122 = vperm.xlu1 %3188, %v3568_v16  }
  0x87   :  { %3217 = vset.pattern.permute.xlu0 %v3638_v28 }
  0x88   :  { %v3776_v51 = vpop.permute.xlu2 %486 }
  0x89   :  { %6061 = vst [vmem:[#allocation11_spill] sm:$0xff] %v3776_v51 }
  0x8e   :  { %3192 = vset.pattern.permute.xlu2 %v3638_v28  ;;  %3191 = vset.pattern.permute.xlu1 %v3552_v11 }
  0x8f   :  { %239 = vperm.xlu0 %3217, %v3573_v17  }
  0x90   :  { %v3780_v52 = vpop.permute.xlu2 %116  ;;  %v3791_v55 = vpop.permute.xlu1 %443 }
  0x91   :  { %6062 = vst [vmem:[#allocation12_spill] sm:$0xff] %v3780_v52  ;;  %v3830_v5 = vpop.permute.xlu0 %406 }
  0x92   :  { %6065 = vst [vmem:[#allocation15_spill] sm:$0xff] %v3791_v55 }
  0x93   :  { %6078 = vst [vmem:[#allocation28_spill] sm:$0xff] %v3830_v5 }
  0x96   :  { %v728_v30 = vpop.f32.mrf.mxu0  ;;  %424 = vperm.xlu2 %3192, %v3548_v10   ;;  %227 = vperm.xlu1 %3191, %v3573_v17  }
  0x97   :  { %v3657_v34 = vadd.f32 %v3241_v31, %v728_v30  ;;  %276 = vperm.xlu0 %3217, %v3588_v20  }
  0x99   :  { %6057 = vst [vmem:[#allocation8_spill] sm:$0xff] %v3657_v34 }
  0x9e   :  { %v731_v33 = vpop.f32.mrf.mxu0  ;;  %3194 = vset.pattern.permute.xlu2 %v3577_v18  ;;  %3193 = vset.pattern.permute.xlu1 %v3638_v28 }
  0x9f   :  { %v3659_v35 = vadd.f32 %v3241_v31, %v731_v33  ;;  %3226 = vset.pattern.permute.xlu0 %v3682_v39 }
  0xa0   :  { %v3784_v53 = vpop.permute.xlu2 %418  ;;  %v3797_v57 = vpop.permute.xlu1 %449 }
  0xa1   :  { %6058 = vst [vmem:[#allocation9_spill] sm:$0xff] %v3659_v35  ;;  %832 = vmatpush.msra.mxu2 %v3659_v35 }
  0xa2   :  { %6063 = vst [vmem:[#allocation13_spill] sm:$0xff] %v3784_v53 }
  0xa3   :  { %833 = vmatpush.msra.mxu2 %v3657_v34  ;;  %6067 = vst [vmem:[#allocation17_spill] sm:$0xff] %v3797_v57 }
  0xa4   :  { %3045 = vmatmul.msk.f32.vlgmr.msra.gmra.mxu2 %vm799_vm1, %v87_v36 }
  0xa6   :  { %529 = vperm.xlu2 %3194, %v3595_v21   ;;  %461 = vperm.xlu1 %3193, %v3542_v9  }
  0xa7   :  { %430 = vperm.xlu0 %3226, %v3548_v10  }
  0xac   :  { %3046 = vmatmul.msk.f32.gmra.mxu2 %vm799_vm1, %v88_v38 }
  0xae   :  { %196 = vperm.xlu2 %3194, %v3607_v23   ;;  %3195 = vset.pattern.permute.xlu1 %v3552_v11 }
  0xaf   :  { %504 = vperm.xlu0 %3226, %v3539_v8  }
  0xb0   :  { %v3788_v54 = vpop.permute.xlu2 %517  ;;  %v3803_v59 = vpop.permute.xlu1 %110 }
  0xb1   :  { %6064 = vst [vmem:[#allocation14_spill] sm:$0xff] %v3788_v54 }
  0xb2   :  { %6069 = vst [vmem:[#allocation19_spill] sm:$0xff] %v3803_v59 }
  0xb4   :  { %3047 = vmatmul.msk.f32.gmra.mxu2 %vm799_vm1, %v89_v40 }
  0xb6   :  { %3196 = vset.pattern.permute.xlu2 %v3638_v28  ;;  %597 = vperm.xlu1 %3195, %v3582_v19  }
  0xb7   :  { %319 = vperm.xlu0 %3226, %v3706_v43  }
  0xbc   :  { %3048 = vmatmul.msk.f32.gmra.mxu2 %vm799_vm1, %v90_v41 }
  0xbe   :  { %498 = vperm.xlu2 %3196, %v3539_v8   ;;  %264 = vperm.xlu1 %3195, %v3588_v20  }
  0xbf   :  { %356 = vperm.xlu0 %3226, %v3715_v45  }
  0xc0   :  { %v3794_v56 = vpop.permute.xlu2 %190  ;;  %v3809_v61 = vpop.permute.xlu1 %153 }
  0xc1   :  { %6066 = vst [vmem:[#allocation16_spill] sm:$0xff] %v3794_v56 }
  0xc2   :  { %6071 = vst [vmem:[#allocation21_spill] sm:$0xff] %v3809_v61 }
  0xc4   :  { %3049 = vmatmul.msk.f32.gmra.mxu2 %vm799_vm1, %v91_v42 }
  0xc6   :  { %3199 = vset.pattern.permute.xlu2 %v3552_v11  ;;  %3198 = vset.pattern.permute.xlu1 %v3528_v4 }
  0xc7   :  { %393 = vperm.xlu0 %3226, %v3729_v48  }
  0xcc   :  { %3050 = vmatmul.msk.f32.gmra.mxu2 %vm799_vm1, %v92_v44 }
  0xce   :  { %634 = vperm.xlu2 %3199, %v3724_v47   ;;  %628 = vperm.xlu1 %3198, %v3724_v47  }
  0xcf   :  { %3240 = vset.pattern.permute.xlu0 %v3735_v49 }
  0xd0   :  { %v3800_v58 = vpop.permute.xlu2 %554  ;;  %v3815_v63 = vpop.permute.xlu1 %455 }
  0xd1   :  { %6068 = vst [vmem:[#allocation18_spill] sm:$0xff] %v3800_v58 }
  0xd2   :  { %6073 = vst [vmem:[#allocation23_spill] sm:$0xff] %v3815_v63 }
  0xd6   :  { %3201 = vset.pattern.permute.xlu2 %v3638_v28  ;;  %3200 = vset.pattern.permute.xlu1 %v3638_v28 }
  0xd7   :  { %473 = vperm.xlu0 %3240, %v3542_v9  }
  0xde   :  { %165 = vperm.xlu2 %3201, %v3562_v15   ;;  %128 = vperm.xlu1 %3200, %v3568_v16  }
  0xdf   :  { %140 = vperm.xlu0 %3240, %v3568_v16  }
  0xe0   :  { %v3806_v60 = vpop.permute.xlu2 %159  ;;  %v3821_v1 = vpop.permute.xlu1 %184 }
  0xe1   :  { %6070 = vst [vmem:[#allocation20_spill] sm:$0xff] %v3806_v60 }
  0xe2   :  { %6075 = vst [vmem:[#allocation25_spill] sm:$0xff] %v3821_v1 }
  0xe6   :  { %3204 = vset.pattern.permute.xlu2 %v3552_v11  ;;  %3203 = vset.pattern.permute.xlu1 %v3528_v4 }
  0xe7   :  { %547 = vperm.xlu0 %3240, %v3595_v21  }
  0xee   :  { %301 = vperm.xlu2 %3204, %v3706_v43   ;;  %295 = vperm.xlu1 %3203, %v3706_v43  }
  0xef   :  { %214 = vperm.xlu0 %3240, %v3607_v23  }
  0xf0   :  { %v3812_v62 = vpop.permute.xlu2 %424  ;;  %v3825_v3 = vpop.permute.xlu1 %492 }
  0xf1   :  { %6072 = vst [vmem:[#allocation22_spill] sm:$0xff] %v3812_v62 }
  0xf2   :  { %6076 = vst [vmem:[#allocation26_spill] sm:$0xff] %v3825_v3 }
  0xf6   :  { %3206 = vset.pattern.permute.xlu2 %v3638_v28  ;;  %3205 = vset.pattern.permute.xlu1 %v3682_v39 }
  0xf7   :  { %584 = vperm.xlu0 %3240, %v3600_v22  }
  0xf8   :  { %v3836_v7 = vpop.permute.xlu1 %122 }
  0xf9   :  { %6080 = vst [vmem:[#allocation30_spill] sm:$0xff] %v3836_v7 }
  0xfe   :  { %535 = vperm.xlu2 %3206, %v3595_v21   ;;  %467 = vperm.xlu1 %3205, %v3542_v9   ;;  %v3838_v9 = vpop.permute.xlu0 %147 }
  0xff   :  { %399 = vperm.xlu0 %3240, %v3729_v48   ;;  %6081 = vst [vmem:[#allocation31_spill] sm:$0xff] %v3838_v9 }
 0x100   :  { %v3818_v0 = vpop.permute.xlu2 %529 }
 0x101   :  { %6074 = vst [vmem:[#allocation24_spill] sm:$0xff] %v3818_v0 }
 0x106   :  { %3208 = vset.pattern.permute.xlu2 %v3528_v4  ;;  %3207 = vset.pattern.permute.xlu1 %v3577_v18 }
 0x10e   :  { %665 = vperm.xlu2 %3208, %v3631_v26   ;;  %603 = vperm.xlu1 %3207, %v3582_v19  }
 0x116   :  { %3210 = vset.pattern.permute.xlu2 %v3577_v18  ;;  %3209 = vset.pattern.permute.xlu1 %v3638_v28 }
 0x11e   :  { %270 = vperm.xlu2 %3210, %v3588_v20   ;;  %202 = vperm.xlu1 %3209, %v3607_v23  }
 0x126   :  { %3212 = vset.pattern.permute.xlu2 %v3552_v11  ;;  %3211 = vset.pattern.permute.xlu1 %v3528_v4 }
 0x12e   :  { %338 = vperm.xlu2 %3212, %v3715_v45   ;;  %332 = vperm.xlu1 %3211, %v3715_v45  }
 0x136   :  { %3214 = vset.pattern.permute.xlu2 %v3577_v18  ;;  %3213 = vset.pattern.permute.xlu1 %v3638_v28 }
 0x13e   :  { %640 = vperm.xlu2 %3214, %v3724_v47   ;;  %572 = vperm.xlu1 %3213, %v3600_v22  }
 0x146   :  { %3216 = vset.pattern.permute.xlu2 %v3682_v39  ;;  %3215 = vset.pattern.permute.xlu1 %v3682_v39 }
 0x14e   :  { %171 = vperm.xlu2 %3216, %v3562_v15   ;;  %134 = vperm.xlu1 %3215, %v3568_v16  }
 0x156   :  { %3219 = vset.pattern.permute.xlu2 %v3528_v4  ;;  %3218 = vset.pattern.permute.xlu1 %v3577_v18  ;;  %v3828_v4 = vpop.permute.xlu2 %196 }
 0x157   :  { %6077 = vst [vmem:[#allocation27_spill] sm:$0xff] %v3828_v4 }
 0x15e   :  { %369 = vperm.xlu2 %3219, %v3729_v48   ;;  %307 = vperm.xlu1 %3218, %v3706_v43   ;;  %v3834_v6 = vpop.permute.xlu2 %498 }
 0x15f   :  { %6079 = vst [vmem:[#allocation29_spill] sm:$0xff] %v3834_v6 }
 0x166   :  { %3221 = vset.pattern.permute.xlu2 %v3735_v49  ;;  %3220 = vset.pattern.permute.xlu1 %v3552_v11  ;;  %v3847_v11 = vpop.permute.xlu0 %221 }
 0x167   :  { %6084 = vst [vmem:[#allocation34_spill] sm:$0xff] %v3847_v11 }
 0x16e   :  { %436 = vperm.xlu2 %3221, %v3548_v10   ;;  %375 = vperm.xlu1 %3220, %v3729_v48   ;;  %v3844_v10 = vpop.permute.xlu2 %634  ;;  %v3856_v14 = vpop.permute.xlu0 %591 }
 0x16f   :  { %6083 = vst [vmem:[#allocation33_spill] sm:$0xff] %v3844_v10 }
 0x170   :  { %6087 = vst [vmem:[#allocation37_spill] sm:$0xff] %v3856_v14 }
 0x176   :  { %3223 = vset.pattern.permute.xlu2 %v3638_v28  ;;  %3222 = vset.pattern.permute.xlu1 %v3682_v39  ;;  %v3852_v13 = vpop.permute.xlu2 %165 }
 0x177   :  { %6086 = vst [vmem:[#allocation36_spill] sm:$0xff] %v3852_v13 }
 0x17e   :  { %609 = vperm.xlu2 %3223, %v3582_v19   ;;  %541 = vperm.xlu1 %3222, %v3595_v21   ;;  %v3860_v21 = vpop.permute.xlu2 %301 }
 0x17f   :  { %6089 = vst [vmem:[#allocation39_spill] sm:$0xff] %v3860_v21 }
 0x186   :  { %3225 = vset.pattern.permute.xlu2 %v3682_v39  ;;  %3224 = vset.pattern.permute.xlu1 %v3577_v18 }
 0x18e   :  { %208 = vperm.xlu2 %3225, %v3607_v23   ;;  %677 = vperm.xlu1 %3224, %v3631_v26   ;;  %v3868_v23 = vpop.permute.xlu2 %535 }
 0x18f   :  { %6092 = vst [vmem:[#allocation42_spill] sm:$0xff] %v3868_v23 }
 0x196   :  { %3227 = vset.pattern.permute.xlu2 %v3735_v49  ;;  %344 = vperm.xlu1 %3224, %v3715_v45   ;;  %v3876_v27 = vpop.permute.xlu2 %665 }
 0x197   :  { %6095 = vst [vmem:[#allocation45_spill] sm:$0xff] %v3876_v27 }
 0x19e   :  { %510 = vperm.xlu2 %3227, %v3539_v8   ;;  %3228 = vset.pattern.permute.xlu1 %v3682_v39  ;;  %v3842_v8 = vpop.permute.xlu1 %227  ;;  %v3886_v30 = vpop.permute.xlu2 %270 }
 0x19f   :  { %6082 = vst [vmem:[#allocation32_spill] sm:$0xff] %v3842_v8 }
 0x1a0   :  { %6098 = vst [vmem:[#allocation48_spill] sm:$0xff] %v3886_v30 }
 0x1a6   :  { %3229 = vset.pattern.permute.xlu2 %v3638_v28  ;;  %578 = vperm.xlu1 %3228, %v3600_v22   ;;  %v3850_v12 = vpop.permute.xlu1 %461  ;;  %v3864_v22 = vpop.permute.xlu0 %258 }
 0x1a7   :  { %6085 = vst [vmem:[#allocation35_spill] sm:$0xff] %v3850_v12  ;;  %v3892_v32 = vpop.permute.xlu2 %338 }
 0x1a8   :  { %6090 = vst [vmem:[#allocation40_spill] sm:$0xff] %v3864_v22 }
 0x1a9   :  { %6100 = vst [vmem:[#allocation50_spill] sm:$0xff] %v3892_v32 }
 0x1ae   :  { %646 = vperm.xlu2 %3229, %v3724_v47   ;;  %3230 = vset.pattern.permute.xlu1 %v3735_v49  ;;  %v3858_v16 = vpop.permute.xlu1 %597  ;;  %v3874_v25 = vpop.permute.xlu0 %566 }
 0x1af   :  { %6088 = vst [vmem:[#allocation38_spill] sm:$0xff] %v3858_v16  ;;  %v3900_v37 = vpop.permute.xlu2 %640 }
 0x1b0   :  { %6094 = vst [vmem:[#allocation44_spill] sm:$0xff] %v3874_v25 }
 0x1b1   :  { %6103 = vst [vmem:[#allocation53_spill] sm:$0xff] %v3900_v37 }
 0x1b6   :  { %3231 = vset.pattern.permute.xlu2 %v3682_v39  ;;  %177 = vperm.xlu1 %3230, %v3562_v15   ;;  %v3866_v15 = vpop.permute.xlu1 %264  ;;  %v3883_v29 = vpop.permute.xlu0 %233 }
 0x1b7   :  { %6091 = vst [vmem:[#allocation41_spill] sm:$0xff] %v3866_v15  ;;  %v3908_v41 = vpop.permute.xlu2 %171 }
 0x1b8   :  { %6097 = vst [vmem:[#allocation47_spill] sm:$0xff] %v3883_v29 }
 0x1b9   :  { %6106 = vst [vmem:[#allocation56_spill] sm:$0xff] %v3908_v41 }
 0x1be   :  { %245 = vperm.xlu2 %3231, %v3573_v17   ;;  %3232 = vset.pattern.permute.xlu1 %v3638_v28  ;;  %v3872_v24 = vpop.permute.xlu1 %628  ;;  %v3894_v33 = vpop.permute.xlu0 %412 }
 0x1bf   :  { %6093 = vst [vmem:[#allocation43_spill] sm:$0xff] %v3872_v24 }
 0x1c0   :  { %6101 = vst [vmem:[#allocation51_spill] sm:$0xff] %v3894_v33 }
 0x1c6   :  { %3233 = vset.pattern.permute.xlu2 %v3577_v18  ;;  %313 = vperm.xlu1 %3232, %v3706_v43   ;;  %v3880_v18 = vpop.permute.xlu1 %128  ;;  %v3902_v38 = vpop.permute.xlu0 %523 }
 0x1c7   :  { %6096 = vst [vmem:[#allocation46_spill] sm:$0xff] %v3880_v18 }
 0x1c8   :  { %6104 = vst [vmem:[#allocation54_spill] sm:$0xff] %v3902_v38 }
 0x1ce   :  { %381 = vperm.xlu2 %3233, %v3729_v48   ;;  %3234 = vset.pattern.permute.xlu1 %v3682_v39  ;;  %v3888_v31 = vpop.permute.xlu1 %295  ;;  %v3912_v44 = vpop.permute.xlu0 %560 }
 0x1cf   :  { %6099 = vst [vmem:[#allocation49_spill] sm:$0xff] %v3888_v31 }
 0x1d0   :  { %6108 = vst [vmem:[#allocation58_spill] sm:$0xff] %v3912_v44 }
 0x1d6   :  { %3235 = vset.pattern.permute.xlu2 %v3638_v28  ;;  %615 = vperm.xlu1 %3234, %v3582_v19   ;;  %v3896_v36 = vpop.permute.xlu1 %467  ;;  %v3921_v2 = vpop.permute.xlu0 %671 }
 0x1d7   :  { %6102 = vst [vmem:[#allocation52_spill] sm:$0xff] %v3896_v36 }
 0x1d8   :  { %6111 = vst [vmem:[#allocation61_spill] sm:$0xff] %v3921_v2 }
 0x1de   :  { %683 = vperm.xlu2 %3235, %v3631_v26   ;;  %282 = vperm.xlu1 %3234, %v3588_v20   ;;  %v3904_v40 = vpop.permute.xlu1 %603 }
 0x1df   :  { %6105 = vst [vmem:[#allocation55_spill] sm:$0xff] %v3904_v40 }
 0x1e6   :  { %350 = vperm.xlu2 %3235, %v3715_v45   ;;  %652 = vperm.xlu1 %3234, %v3724_v47   ;;  %v3910_v42 = vpop.permute.xlu1 %202 }
 0x1e7   :  { %6107 = vst [vmem:[#allocation57_spill] sm:$0xff] %v3910_v42 }
 0x1ee   :  { %3236 = vset.pattern.permute.xlu2 %v3735_v49  ;;  %3237 = vset.pattern.permute.xlu1 %v3638_v28  ;;  %v3916_v28 = vpop.permute.xlu2 %369  ;;  %v3918_v46 = vpop.permute.xlu1 %332 }
 0x1ef   :  { %6109 = vst [vmem:[#allocation59_spill] sm:$0xff] %v3916_v28 }
 0x1f0   :  { %6110 = vst [vmem:[#allocation60_spill] sm:$0xff] %v3918_v46 }
 0x1f6   :  { %251 = vperm.xlu2 %3236, %v3573_v17   ;;  %387 = vperm.xlu1 %3237, %v3729_v48   ;;  %v3924_v17 = vpop.permute.xlu1 %572  ;;  %v3926_v48 = vpop.permute.xlu2 %436 }
 0x1f7   :  { %6112 = vst [vmem:[#allocation62_spill] sm:$0xff] %v3924_v17 }
 0x1f8   :  { %6113 = vst [vmem:[#allocation63_spill] sm:$0xff] %v3926_v48 }
 0x1fe   :  { %621 = vperm.xlu2 %3236, %v3582_v19   ;;  %3238 = vset.pattern.permute.xlu1 %v3682_v39  ;;  %v780_v19 = vpop.f32.mrf.mxu1  ;;  %v3930_v39 = vpop.permute.xlu0 %239 }
 0x1ff   :  { %6114 = vst [vmem:[#allocation64_spill] sm:$0xff] %v3930_v39  ;;  %v3932_v35 = vpop.permute.xlu1 %134  ;;  %v3934_v34 = vpop.permute.xlu2 %609 }
 0x200   :  { %6115 = vst [vmem:[#allocation65_spill] sm:$0xff] %v3932_v35 }
 0x201   :  { %6116 = vst [vmem:[#allocation66_spill] sm:$0xff] %v3934_v34 }
 0x206   :  { %288 = vperm.xlu2 %3236, %v3588_v20   ;;  %689 = vperm.xlu1 %3238, %v3631_v26   ;;  %v835_v20 = vpop.f32.mrf.mxu2  ;;  %v783_v28 = vpop.f32.mrf.mxu1 }
 0x207   :  { %v3938_v37 = vpop.permute.xlu0 %276  ;;  %v3940_v17 = vpop.permute.xlu1 %307 }
 0x208   :  { %6117 = vst [vmem:[#allocation67_spill] sm:$0xff] %v3938_v37 }
 0x209   :  { %6118 = vst [vmem:[#allocation68_spill] sm:$0xff] %v3940_v17 }
 0x20e   :  { %325 = vperm.xlu2 %3236, %v3706_v43   ;;  %3239 = vset.pattern.permute.xlu1 %v3735_v49  ;;  %v3942_v43 = vpop.permute.xlu2 %208  ;;  %v838_v49 = vpop.f32.mrf.mxu2 }
 0x20f   :  { %6119 = vst [vmem:[#allocation69_spill] sm:$0xff] %v3942_v43  ;;  %v3945_v41 = vpop.permute.xlu1 %375  ;;  %v786_v34 = vpop.f32.mrf.mxu1 }
 0x210   :  { %6120 = vst [vmem:[#allocation70_spill] sm:$0xff] %v3945_v41  ;;  %v3949_v32 = vpop.permute.xlu0 %430  ;;  %v3242_v41 = vld [vmem:[%s5820_s9] ss:$0 sm:$0xff]  ;;  %s798_s9 = sld [smem:[#allocation2]] }
 0x211   :  { %6122 = vst [vmem:[#allocation72_spill] sm:$0xff] %v3949_v32  ;;  %v3966_v23 = vadd.f32 %v3242_v41, %v783_v28 }
 0x213   :  { %6129 = vst [vmem:[#allocation79_spill] sm:$0xff] %v3966_v23 }
 0x216   :  { %362 = vperm.xlu2 %3236, %v3715_v45   ;;  %658 = vperm.xlu1 %3239, %v3724_v47   ;;  %v3947_v46 = vpop.permute.xlu2 %510  ;;  %v841_v45 = vpop.f32.mrf.mxu2 }
 0x217   :  { %6121 = vst [vmem:[#allocation71_spill] sm:$0xff] %v3947_v46  ;;  %v3951_v42 = vpop.permute.xlu1 %541  ;;  %v789_v40 = vpop.f32.mrf.mxu1 }
 0x218   :  { %6123 = vst [vmem:[#allocation73_spill] sm:$0xff] %v3951_v42  ;;  %v3955_v27 = vpop.permute.xlu0 %504  ;;  %v3968_v42 = vadd.f32 %v3242_v41, %v780_v19 }
 0x219   :  { %6125 = vst [vmem:[#allocation75_spill] sm:$0xff] %v3955_v27 }
 0x21a   :  { %6130 = vst [vmem:[#allocation80_spill] sm:$0xff] %v3968_v42 }
 0x21e   :  { %695 = vperm.xlu1 %3239, %v3631_v26   ;;  %v3953_v47 = vpop.permute.xlu2 %646  ;;  %v844_v17 = vpop.f32.mrf.mxu2 }
 0x21f   :  { %6124 = vst [vmem:[#allocation74_spill] sm:$0xff] %v3953_v47  ;;  %v3957_v43 = vpop.permute.xlu1 %677  ;;  %v792_v46 = vpop.f32.mrf.mxu1  ;;  %v3970_v47 = vadd.f32 %v3242_v41, %v786_v34 }
 0x220   :  { %6126 = vst [vmem:[#allocation76_spill] sm:$0xff] %v3957_v43  ;;  %v3961_v26 = vpop.permute.xlu0 %319  ;;  %v839_v43 = vadd.f32 %v838_v49, %v3966_v23  ;;  %v3984_v6 = vadd.f32 %v3242_v41, %v792_v46 }
 0x221   :  { %6128 = vst [vmem:[#allocation78_spill] sm:$0xff] %v3961_v26  ;;  %v836_v26 = vadd.f32 %v835_v20, %v3968_v42  ;;  %v842_v30 = vadd.f32 %v841_v45, %v3970_v47 }
 0x222   :  { %6131 = vst [vmem:[#allocation81_spill] sm:$0xff] %v3970_v47  ;;  %v854_v39 = vmax.f32 %v839_v43, 0.0 }
 0x223   :  { %6136 = vst [vmem:[#allocation86_spill] sm:$0xff] %v3984_v6  ;;  %v855_v13 = vmax.f32 %v842_v30, 0.0 }
 0x224   :  { %v3992_v20 = vadd.f32 1e-07, %v854_v39 }
 0x225   :  { %v3997_v43 = vadd.f32 1e-07, %v855_v13 }
 0x226   :  { %v3959_v31 = vpop.permute.xlu2 %245  ;;  %v847_v27 = vpop.f32.mrf.mxu2  ;;  %6140 = vst [vmem:[#allocation90_spill] sm:$0xff] %v3992_v20 }
 0x227   :  { %6127 = vst [vmem:[#allocation77_spill] sm:$0xff] %v3959_v31  ;;  %v3974_v37 = vpop.permute.xlu1 %344  ;;  %v3977_v31 = vadd.f32 %v3242_v41, %v789_v40  ;;  %v795_v19 = vpop.f32.mrf.mxu1  ;;  %v848_v47 = vadd.f32 %v847_v27, %v3984_v6 }
 0x228   :  { %6133 = vst [vmem:[#allocation83_spill] sm:$0xff] %v3974_v37  ;;  %v3981_v28 = vpop.permute.xlu0 %356  ;;  %v3986_v37 = vadd.f32 %v3242_v41, %v795_v19 }
 0x229   :  { %6134 = vst [vmem:[#allocation84_spill] sm:$0xff] %v3977_v31  ;;  %v845_v34 = vadd.f32 %v844_v17, %v3977_v31  ;;  %v865_v17 = vstv %s798_s9 }
 0x22a   :  { %6135 = vst [vmem:[#allocation85_spill] sm:$0xff] %v3981_v28  ;;  %v4001_v30 = vmul.f32 %v865_v17, %v3992_v20  ;;  %v4011_v27 = vmul.f32 %v865_v17, %v3997_v43 }
 0x22b   :  { %6137 = vst [vmem:[#allocation87_spill] sm:$0xff] %v3986_v37  ;;  %v856_v45 = vmax.f32 %v845_v34, 0.0 }
 0x22c   :  { %6142 = vst [vmem:[#allocation92_spill] sm:$0xff] %v3997_v43 }
 0x22d   :  { %v4003_v41 = vadd.f32 1e-07, %v856_v45  ;;  %v927_v45 = vadd.f32 %v4001_v30, %v3797_v57 }
 0x22e   :  { %v3972_v21 = vpop.permute.xlu2 %381  ;;  %v850_v40 = vpop.f32.mrf.mxu2 }
 0x22f   :  { %6132 = vst [vmem:[#allocation82_spill] sm:$0xff] %v3972_v21  ;;  %v853_v21 = vmax.f32 %v836_v26, 0.0  ;;  %v3990_v23 = vpop.permute.xlu1 %578  ;;  %v851_v46 = vadd.f32 %v850_v40, %v3986_v37  ;;  %v857_v26 = vmax.f32 %v848_v47, 0.0  ;;  %v4016_v34 = vmul.f32 %v865_v17, %v4003_v41 }
 0x230   :  { %6139 = vst [vmem:[#allocation89_spill] sm:$0xff] %v3990_v23  ;;  %v4005_v19 = vpop.permute.xlu0 %393 }
 0x231   :  { %v3995_v42 = vadd.f32 1e-07, %v853_v21  ;;  %6143 = vst [vmem:[#allocation93_spill] sm:$0xff] %v4003_v41  ;;  %v858_v21 = vmax.f32 %v851_v46, 0.0  ;;  %v4018_v40 = vadd.f32 1e-07, %v857_v26  ;;  %v928_v46 = vadd.f32 %v4011_v27, %v3815_v63 }
 0x232   :  { %6144 = vst [vmem:[#allocation94_spill] sm:$0xff] %v4005_v19  ;;  %v929_v26 = vadd.f32 %v4016_v34, %v3850_v12 }
 0x233   :  { %6141 = vst [vmem:[#allocation91_spill] sm:$0xff] %v3995_v42  ;;  %v4008_v39 = vmul.f32 %v865_v17, %v3995_v42  ;;  %v4024_v37 = vadd.f32 1e-07, %v858_v21  ;;  %v4031_v31 = vmul.f32 %v865_v17, %v4018_v40 }
 0x234   :  { %6146 = vst [vmem:[#allocation96_spill] sm:$0xff] %v4018_v40  ;;  %v873_v40 = vadd.f32 %v4001_v30, %v3780_v52  ;;  %v922_v52 = vadd.f32 %v4011_v27, %v3784_v53  ;;  %v933_v53 = vadd.f32 %v4001_v30, %v3776_v51 }
 0x235   :  { %6148 = vst [vmem:[#allocation98_spill] sm:$0xff] %v4024_v37  ;;  %v926_v6 = vadd.f32 %v4008_v39, %v3791_v55  ;;  %v4036_v20 = vmul.f32 %v865_v17, %v4024_v37  ;;  %v930_v21 = vadd.f32 %v4031_v31, %v3896_v36  ;;  %v921_v17 = vadd.f32 %v4001_v30, %v3894_v33 }
 0x236   :  { %v875_v36 = vadd.f32 %v4016_v34, %v3880_v18  ;;  %v924_v18 = vadd.f32 %v4031_v31, %v3949_v32  ;;  %v4110_v32 = vadd.f32 %v4001_v30, %v3921_v2 }
 0x237   :  { %v4013_v13 = vpop.permute.xlu1 %177  ;;  %v1067_v42 = vmax.f32 %v926_v6, %v927_v45  ;;  %v920_v6 = vadd.f32 %v4008_v39, %v3830_v5 }
 0x238   :  { %v3988_v49 = vpop.permute.xlu2 %683  ;;  %6145 = vst [vmem:[#allocation95_spill] sm:$0xff] %v4013_v13  ;;  %v4040_v43 = vpop.permute.xlu0 %473 }
 0x239   :  { %6138 = vst [vmem:[#allocation88_spill] sm:$0xff] %v3988_v49  ;;  %v1068_v57 = vmax.f32 %v1067_v42, %v928_v46  ;;  %v931_v45 = vadd.f32 %v4036_v20, %v4040_v43  ;;  %v872_v46 = vadd.f32 %v4008_v39, %v3803_v59  ;;  %v1056_v12 = vmax.f32 %v920_v6, %v921_v17 }
 0x23a   :  { %6149 = vst [vmem:[#allocation99_spill] sm:$0xff] %v4040_v43  ;;  %v4068_v43 = vadd.f32 %v4008_v39, %v3864_v22  ;;  %v878_v6 = vadd.f32 %v4008_v39, %v3838_v9  ;;  %v932_v17 = vadd.f32 %v4008_v39, %v3772_v50 }
 0x23b   :  { %v1069_v41 = vmax.f32 %v1068_v57, %v929_v26  ;;  %v874_v57 = vadd.f32 %v4011_v27, %v3836_v7  ;;  %v968_v26 = vmax.f32 %v872_v46, %v873_v40  ;;  %v923_v40 = vadd.f32 %v4016_v34, %v3812_v62 }
 0x23c   :  { %v938_v46 = vadd.f32 %v4008_v39, %v3788_v54  ;;  %v1057_v62 = vmax.f32 %v1056_v12, %v922_v52  ;;  %v4104_v52 = vadd.f32 %v4001_v30, %v3858_v16  ;;  %v925_v12 = vadd.f32 %v4036_v20, %v3926_v48 }
 0x23d   :  { %v1070_v42 = vmax.f32 %v1069_v41, %v930_v21  ;;  %v969_v33 = vmax.f32 %v968_v26, %v874_v57  ;;  %v876_v41 = vadd.f32 %v4031_v31, %v3932_v35  ;;  %v4082_v57 = vadd.f32 %v4008_v39, %v3856_v14 }
 0x23e   :  { %v884_v26 = vadd.f32 %v4008_v39, %v3821_v1  ;;  %v4088_v35 = vadd.f32 %v4001_v30, %v3866_v15  ;;  %v1058_v9 = vmax.f32 %v1057_v62, %v923_v40  ;;  %v939_v15 = vadd.f32 %v4001_v30, %v3902_v38 }
 0x23f   :  { %v4042_v55 = vpop.permute.xlu1 %313  ;;  %v1071_v5 = vmax.f32 %v1070_v42, %v931_v45  ;;  %v970_v45 = vmax.f32 %v969_v33, %v875_v36  ;;  %v879_v36 = vadd.f32 %v4001_v30, %v3809_v61  ;;  %v944_v62 = vadd.f32 %v4008_v39, %v3800_v58 }
 0x240   :  { %v4022_v47 = vpop.permute.xlu2 %350  ;;  %6150 = vst [vmem:[#allocation100_spill] sm:$0xff] %v4042_v55  ;;  %v4076_v42 = vpop.permute.xlu0 %140  ;;  %v890_v40 = vadd.f32 %v4008_v39, %v3847_v11  ;;  %v885_v48 = vadd.f32 %v4001_v30, %v3794_v56  ;;  %v945_v16 = vadd.f32 %v4001_v30, %v3912_v44  ;;  %v891_v38 = vadd.f32 %v4001_v30, %v3842_v8  ;;  %v6158_v11 = vld [vmem:[#allocation29_spill] sm:$0xff]  ;;  %v6161_v8 = vld [vmem:[#allocation67_spill] sm:$0xff]  ;;  %v6172_v56 = vld [vmem:[#allocation60_spill] sm:$0xff] }
 0x241   :  { %6147 = vst [vmem:[#allocation97_spill] sm:$0xff] %v4022_v47  ;;  %v1072_v7 = vrot.slane %v1071_v5, 4  ;;  %v971_v22 = vmax.f32 %v970_v45, %v876_v41  ;;  %v877_v1 = vadd.f32 %v4036_v20, %v4076_v42  ;;  %v4114_v41 = vadd.f32 %v4001_v30, %v3844_v10  ;;  %v6174_v44 = vld [vmem:[#allocation62_spill] sm:$0xff] }
 0x242   :  { %6153 = vst [vmem:[#allocation103_spill] sm:$0xff] %v4076_v42  ;;  %v1012_v45 = vmax.f32 %v4068_v43, %v4088_v35  ;;  %v1059_v42 = vmax.f32 %v1058_v9, %v924_v18  ;;  %v979_v2 = vmax.f32 %v878_v6, %v879_v36  ;;  %v1078_v51 = vmax.f32 %v932_v17, %v933_v53  ;;  %v6157_v36 = vld [vmem:[#allocation36_spill] sm:$0xff] }
 0x243   :  { %v1073_v61 = vmax.f32 %v1071_v5, %v1072_v7  ;;  %v972_v10 = vmax.f32 %v971_v22, %v877_v1  ;;  %v1089_v59 = vmax.f32 %v938_v46, %v939_v15  ;;  %v880_v35 = vadd.f32 %v4011_v27, %v3806_v60 }
 0x244   :  { %v1060_v14 = vmax.f32 %v1059_v42, %v925_v12  ;;  %v934_v5 = vadd.f32 %v4011_v27, %v3825_v3  ;;  %v940_v7 = vadd.f32 %v4011_v27, %v3818_v0  ;;  %v886_v1 = vadd.f32 %v4011_v27, %v3828_v4  ;;  %v6159_v4 = vld [vmem:[#allocation64_spill] sm:$0xff] }
 0x245   :  { %v1074_v53 = vrot.slane %v1073_v61, 2  ;;  %v990_v22 = vmax.f32 %v884_v26, %v885_v48  ;;  %v946_v15 = vadd.f32 %v4011_v27, %v3874_v25  ;;  %v892_v18 = vadd.f32 %v4011_v27, %v3883_v29 }
 0x246   :  { %v4146_v43 = vadd.f32 %v4008_v39, %v3872_v24  ;;  %v1100_v6 = vmax.f32 %v944_v62, %v945_v16  ;;  %v973_v17 = vrot.slane %v972_v10, 4  ;;  %v1001_v46 = vmax.f32 %v890_v40, %v891_v38  ;;  %v6160_v40 = vld [vmem:[#allocation48_spill] sm:$0xff] }
 0x247   :  { %v881_v12 = vadd.f32 %v4016_v34, %v6157_v36  ;;  %v935_v48 = vadd.f32 %v4016_v34, %v6158_v11  ;;  %v1061_v26 = vrot.slane %v1060_v14, 4  ;;  %v4156_v60 = vadd.f32 %v4016_v34, %v6159_v4 }
 0x248   :  { %v4064_v21 = vpop.permute.xlu1 %615  ;;  %v4148_v42 = vpop.permute.xlu0 %547  ;;  %v980_v25 = vmax.f32 %v979_v2, %v880_v35  ;;  %v1079_v0 = vmax.f32 %v1078_v51, %v934_v5  ;;  %v4160_v16 = vmax.f32 %v1089_v59, %v940_v7  ;;  %v4162_v62 = vmax.f32 %v990_v22, %v886_v1  ;;  %v6162_v51 = vld [vmem:[#allocation75_spill] sm:$0xff]  ;;  %v6166_v2 = vld [vmem:[#allocation49_spill] sm:$0xff] }
 0x249   :  { %6152 = vst [vmem:[#allocation102_spill] sm:$0xff] %v4064_v21  ;;  %v1075_v38 = vmax.f32 %v1073_v61, %v1074_v53  ;;  %v898_v36 = vadd.f32 %v4011_v27, %v6160_v40  ;;  %v4166_v3 = vmax.f32 %v1100_v6, %v946_v15  ;;  %v4168_v11 = vmax.f32 %v1001_v46, %v892_v18  ;;  %v6163_v53 = vld [vmem:[#allocation39_spill] sm:$0xff]  ;;  %v6164_v15 = vld [vmem:[#allocation42_spill] sm:$0xff]  ;;  %v6169_v1 = vld [vmem:[#allocation57_spill] sm:$0xff] }
 0x24a   :  { %6156 = vst [vmem:[#allocation106_spill] sm:$0xff] %v4148_v42  ;;  %v4172_v4 = vadd.f32 %v4016_v34, %v6161_v8  ;;  %v936_v59 = vadd.f32 %v4031_v31, %v6162_v51  ;;  %v974_v35 = vmax.f32 %v972_v10, %v973_v17  ;;  %v981_v5 = vmax.f32 %v980_v25, %v881_v12  ;;  %v6165_v6 = vld [vmem:[#allocation78_spill] sm:$0xff]  ;;  %v6167_v10 = vld [vmem:[#allocation45_spill] sm:$0xff] }
 0x24b   :  { %v1080_v61 = vmax.f32 %v1079_v0, %v935_v48  ;;  %v1062_v7 = vmax.f32 %v1060_v14, %v1061_v26  ;;  %v903_v22 = vadd.f32 %v4001_v30, %v6163_v53  ;;  %v941_v18 = vadd.f32 %v4016_v34, %v6164_v15  ;;  %v6168_v48 = vld [vmem:[#allocation55_spill] sm:$0xff]  ;;  %v6171_v40 = vld [vmem:[#allocation50_spill] sm:$0xff] }
 0x24c   :  { %v4186_v46 = vadd.f32 %v4031_v31, %v6165_v6  ;;  %v902_v51 = vadd.f32 %v4008_v39, %v6166_v2  ;;  %v4192_v0 = vadd.f32 %v4031_v31, %v3981_v28  ;;  %v4196_v14 = vadd.f32 %v4008_v39, %v6167_v10 }
 0x24d   :  { %v1076_v25 = vrot.slane %v1075_v38, 1  ;;  %v4198_v17 = vmax.f32 %v1012_v45, %v898_v36  ;;  %v1081_v12 = vmax.f32 %v1080_v61, %v936_v59  ;;  %v952_v26 = vadd.f32 %v4011_v27, %v6168_v48  ;;  %v6173_v48 = vld [vmem:[#allocation56_spill] sm:$0xff] }
 0x24e   :  { %v887_v6 = vadd.f32 %v4016_v34, %v6169_v1  ;;  %v975_v8 = vrot.slane %v974_v35, 2  ;;  %v4208_v28 = vadd.f32 %v4031_v31, %v4005_v19  ;;  %v909_v53 = vadd.f32 %v4001_v30, %v6171_v40  ;;  %v6176_v40 = vld [vmem:[#allocation71_spill] sm:$0xff] }
 0x24f   :  { %v908_v45 = vadd.f32 %v4008_v39, %v6172_v56  ;;  %v1063_v36 = vrot.slane %v1062_v7, 2  ;;  %v1091_v59 = vmax.f32 %v4160_v16, %v941_v18  ;;  %v1023_v61 = vmax.f32 %v902_v51, %v903_v22 }
 0x250   :  { %v4044_v63 = vpop.permute.xlu2 %251  ;;  %v4138_v9 = vpop.permute.xlu1 %282  ;;  %v882_v1 = vadd.f32 %v4031_v31, %v6173_v48  ;;  %v947_v2 = vadd.f32 %v4016_v34, %v6174_v44  ;;  %v4223_v24 = vmax.f32 %v1075_v38, %v1076_v25  ;;  %v937_v56 = vadd.f32 %v4036_v20, %v6176_v40  ;;  %v6178_v44 = vld [vmem:[#allocation53_spill] sm:$0xff]  ;;  %v6179_v40 = vld [vmem:[#allocation68_spill] sm:$0xff] }
 0x251   :  { %6151 = vst [vmem:[#allocation101_spill] sm:$0xff] %v4044_v63  ;;  %v4219_v10 = vpop.permute.xlu0 %214  ;;  %v1014_v16 = vmax.f32 %v4198_v17, %v4172_v4  ;;  %v6177_v22 = vmax.f32 %v4082_v57, %v4104_v52  ;;  %v992_v48 = vmax.f32 %v4162_v62, %v887_v6  ;;  %v958_v58 = vadd.f32 %v4011_v27, %v6178_v44  ;;  %v6180_v4 = vld [vmem:[#allocation66_spill] sm:$0xff]  ;;  %v6181_v52 = vld [vmem:[#allocation59_spill] sm:$0xff] }
 0x252   :  { %6155 = vst [vmem:[#allocation105_spill] sm:$0xff] %v4138_v9  ;;  %v4237_v19 = vmax.f32 %v974_v35, %v975_v8  ;;  %v1034_v38 = vmax.f32 %v908_v45, %v909_v53  ;;  %v4239_v25 = vmax.f32 %v1062_v7, %v1063_v36  ;;  %v904_v54 = vadd.f32 %v4011_v27, %v6179_v40  ;;  %v6182_v6 = vld [vmem:[#allocation70_spill] sm:$0xff]  ;;  %v6183_v35 = vld [vmem:[#allocation69_spill] sm:$0xff] }
 0x253   :  { %6175 = vst [vmem:[#allocation108_spill] sm:$0xff] %v4219_v10  ;;  %v1112_v18 = vmax.f32 %v6177_v22, %v952_v26  ;;  %v953_v17 = vadd.f32 %v4016_v34, %v6180_v4  ;;  %v982_v50 = vmax.f32 %v981_v5, %v882_v1  ;;  %v1102_v57 = vmax.f32 %v4166_v3, %v947_v2  ;;  %v6184_v53 = vld [vmem:[#allocation73_spill] sm:$0xff]  ;;  %v6185_v2 = vld [vmem:[#allocation83_spill] sm:$0xff] }
 0x254   :  { %v914_v62 = vadd.f32 %v4008_v39, %v6181_v52  ;;  %v915_v26 = vadd.f32 %v4001_v30, %v6182_v6  ;;  %v943_v8 = vadd.f32 %v4036_v20, %v4148_v42  ;;  %v888_v7 = vadd.f32 %v4031_v31, %v6183_v35 }
 0x255   :  { %v942_v45 = vadd.f32 %v4031_v31, %v6184_v53  ;;  %v1082_v36 = vmax.f32 %v1081_v12, %v937_v56  ;;  %v977_v5 = vrot.slane %v4237_v19, 1  ;;  %v889_v3 = vadd.f32 %v4036_v20, %v4219_v10  ;;  %v6187_v53 = vld [vmem:[#allocation77_spill] sm:$0xff] }
 0x256   :  { %v910_v1 = vadd.f32 %v4011_v27, %v6185_v2  ;;  %v883_v22 = vadd.f32 %v4036_v20, %v4013_v13  ;;  %v1065_v42 = vrot.slane %v4239_v25, 1  ;;  %v1024_v35 = vmax.f32 %v1023_v61, %v904_v54  ;;  %v6189_v54 = vld [vmem:[#allocation82_spill] sm:$0xff] }
 0x257   :  { %v1113_v40 = vmax.f32 %v1112_v18, %v953_v17  ;;  %v905_v56 = vadd.f32 %v4016_v34, %v4042_v55  ;;  %v1045_v12 = vmax.f32 %v914_v62, %v915_v26  ;;  %v894_v44 = vadd.f32 %v4031_v31, %v6187_v53 }
 0x258   :  { %v4092_v33 = vpop.permute.xlu2 %621  ;;  %v4204_v15 = vpop.permute.xlu1 %652  ;;  %v948_v10 = vadd.f32 %v4031_v31, %v3990_v23  ;;  %v911_v13 = vadd.f32 %v4016_v34, %v4022_v47  ;;  %v993_v6 = vmax.f32 %v992_v48, %v888_v7  ;;  %v1092_v52 = vmax.f32 %v1091_v59, %v942_v45 }
 0x259   :  { %6154 = vst [vmem:[#allocation104_spill] sm:$0xff] %v4092_v33  ;;  %v4272_v2 = vpop.permute.xlu0 %584  ;;  %v1083_v37 = vrot.slane %v1082_v36, 4  ;;  %v916_v61 = vadd.f32 %v4011_v27, %v6189_v54  ;;  %v1035_v18 = vmax.f32 %v1034_v38, %v910_v1  ;;  %v983_v17 = vmax.f32 %v982_v50, %v883_v22 }
 0x25a   :  { %6170 = vst [vmem:[#allocation107_spill] sm:$0xff] %v4204_v15  ;;  %v895_v62 = vadd.f32 %v4036_v20, %v4044_v63  ;;  %v900_v26 = vadd.f32 %v4031_v31, %v4138_v9  ;;  %v949_v53 = vadd.f32 %v4036_v20, %v4272_v2  ;;  %v1025_v23 = vmax.f32 %v1024_v35, %v905_v56 }
 0x25b   :  { %6188 = vst [vmem:[#allocation110_spill] sm:$0xff] %v4272_v2  ;;  %v954_v48 = vadd.f32 %v4031_v31, %v4064_v21  ;;  %v6191_v50 = vmax.f32 %v4168_v11, %v4156_v60  ;;  %v1103_v45 = vmax.f32 %v1102_v57, %v948_v10  ;;  %v1036_v1 = vmax.f32 %v1035_v18, %v911_v13 }
 0x25c   :  { %v1093_v63 = vmax.f32 %v1092_v52, %v943_v8  ;;  %v1046_v2 = vmax.f32 %v1045_v12, %v916_v61  ;;  %v955_v35 = vadd.f32 %v4036_v20, %v4092_v33  ;;  %v984_v9 = vrot.slane %v983_v17, 4 }
 0x25d   :  { %v1004_v38 = vmax.f32 %v6191_v50, %v894_v44  ;;  %v994_v44 = vmax.f32 %v993_v6, %v889_v3  ;;  %v1114_v13 = vmax.f32 %v1113_v40, %v954_v48  ;;  %v1026_v10 = vmax.f32 %v1025_v23, %v4186_v46 }
 0x25e   :  { %v1084_v52 = vmax.f32 %v1082_v36, %v1083_v37  ;;  %v1104_v8 = vmax.f32 %v1103_v45, %v949_v53  ;;  %v1037_v61 = vmax.f32 %v1036_v1, %v4192_v0  ;;  %v6193_v18 = vmax.f32 %v4146_v43, %v4114_v41 }
 0x25f   :  { %v1005_v21 = vmax.f32 %v1004_v38, %v895_v62  ;;  %v1115_v50 = vmax.f32 %v1114_v13, %v955_v35  ;;  %v985_v6 = vmax.f32 %v983_v17, %v984_v9  ;;  %v4313_v37 = vmax.f32 %v4237_v19, %v977_v5 }
 0x260   :  { %v4158_v29 = vpop.permute.xlu2 %288  ;;  %v1123_v62 = vmax.f32 %v6193_v18, %v958_v58  ;;  %v1066_v46 = vmax.f32 %v4239_v25, %v1065_v42  ;;  %v960_v41 = vadd.f32 %v4031_v31, %v4204_v15  ;;  %v995_v43 = vrot.slane %v994_v44, 4 }
 0x261   :  { %v901_v22 = vadd.f32 %v4036_v20, %v4158_v29  ;;  %v1006_v40 = vrot.slane %v1005_v21, 4  ;;  %v4310_v3 = vpop.permute.xlu0 %399  ;;  %v1085_v0 = vrot.slane %v1084_v52, 2  ;;  %v1116_v9 = vrot.slane %v1115_v50, 4 }
 0x262   :  { %6195 = vst [vmem:[#allocation113_spill] sm:$0xff] %v4310_v3  ;;  %v919_v17 = vadd.f32 %v4036_v20, %v4310_v3  ;;  %v986_v5 = vrot.slane %v985_v6, 2  ;;  %v996_v35 = vmax.f32 %v994_v44, %v995_v43 }
 0x263   :  { %v1007_v48 = vmax.f32 %v1005_v21, %v1006_v40 }
 0x265   :  { %v1008_v18 = vrot.slane %v1007_v48, 2 }
 0x268   :  { %v4229_v51 = vpop.permute.xlu2 %325  ;;  %v4263_v4 = vpop.permute.xlu1 %387 }
 0x269   :  { %6186 = vst [vmem:[#allocation109_spill] sm:$0xff] %v4263_v4  ;;  %v917_v59 = vadd.f32 %v4016_v34, %v4263_v4  ;;  %v907_v56 = vadd.f32 %v4036_v20, %v4229_v51  ;;  %v1015_v4 = vmax.f32 %v1014_v16, %v900_v26  ;;  %v6194_v16 = vld [vmem:[#allocation74_spill] sm:$0xff] }
 0x26a   :  { %v959_v26 = vadd.f32 %v4016_v34, %v6194_v16 }
 0x26b   :  { %v1047_v57 = vmax.f32 %v1046_v2, %v917_v59  ;;  %v1016_v12 = vmax.f32 %v1015_v4, %v901_v22  ;;  %v1027_v38 = vmax.f32 %v1026_v10, %v907_v56  ;;  %v1105_v4 = vrot.slane %v1104_v8, 4  ;;  %v6197_v59 = vld [vmem:[#allocation76_spill] sm:$0xff] }
 0x26c   :  { %v1124_v36 = vmax.f32 %v1123_v62, %v959_v26  ;;  %v1086_v56 = vmax.f32 %v1084_v52, %v1085_v0  ;;  %v6198_v26 = vmax.f32 %v4196_v14, %v4110_v32 }
 0x26d   :  { %v1048_v58 = vmax.f32 %v1047_v57, %v4208_v28  ;;  %v1017_v53 = vrot.slane %v1016_v12, 4  ;;  %v1028_v2 = vrot.slane %v1027_v38, 4  ;;  %v964_v28 = vadd.f32 %v4011_v27, %v6197_v59 }
 0x26e   :  { %v1125_v45 = vmax.f32 %v1124_v36, %v960_v41 }
 0x26f   :  { %v1049_v1 = vmax.f32 %v1048_v58, %v919_v17  ;;  %v1018_v13 = vmax.f32 %v1016_v12, %v1017_v53  ;;  %v1029_v21 = vmax.f32 %v1027_v38, %v1028_v2  ;;  %v1134_v40 = vmax.f32 %v6198_v26, %v964_v28 }
 0x270   :  { %v4288_v7 = vpop.permute.xlu2 %362  ;;  %v1087_v12 = vrot.slane %v1086_v56, 1 }
 0x271   :  { %6190 = vst [vmem:[#allocation111_spill] sm:$0xff] %v4288_v7  ;;  %v913_v60 = vadd.f32 %v4036_v20, %v4288_v7  ;;  %v1094_v7 = vrot.slane %v1093_v63, 4  ;;  %v1050_v41 = vrot.slane %v1049_v1, 4  ;;  %v1019_v43 = vrot.slane %v1018_v13, 2 }
 0x272   :  { %v1030_v0 = vrot.slane %v1029_v21, 2 }
 0x273   :  { %v1038_v23 = vmax.f32 %v1037_v61, %v913_v60  ;;  %v1095_v19 = vmax.f32 %v1093_v63, %v1094_v7  ;;  %v1106_v60 = vmax.f32 %v1104_v8, %v1105_v4  ;;  %v965_v63 = vadd.f32 %v4016_v34, %v3988_v49 }
 0x274   :  { %v1117_v7 = vmax.f32 %v1115_v50, %v1116_v9  ;;  %v987_v61 = vmax.f32 %v985_v6, %v986_v5  ;;  %v997_v8 = vrot.slane %v996_v35, 2  ;;  %v1051_v32 = vmax.f32 %v1049_v1, %v1050_v41 }
 0x275   :  { %v1039_v42 = vrot.slane %v1038_v23, 4  ;;  %v1096_v57 = vrot.slane %v1095_v19, 2  ;;  %v1107_v58 = vrot.slane %v1106_v60, 2  ;;  %v1135_v50 = vmax.f32 %v1134_v40, %v965_v63 }
 0x276   :  { %v1118_v38 = vrot.slane %v1117_v7, 2  ;;  %v988_v53 = vrot.slane %v987_v61, 1  ;;  %v998_v5 = vmax.f32 %v996_v35, %v997_v8  ;;  %v1020_v28 = vmax.f32 %v1018_v13, %v1019_v43 }
 0x277   :  { %v1040_v62 = vmax.f32 %v1038_v23, %v1039_v42  ;;  %v1097_v6 = vmax.f32 %v1095_v19, %v1096_v57  ;;  %v1009_v23 = vmax.f32 %v1007_v48, %v1008_v18  ;;  %v1108_v42 = vmax.f32 %v1106_v60, %v1107_v58 }
 0x278   :  { %v4301_v11 = vpop.permute.xlu1 %689  ;;  %v1119_v63 = vmax.f32 %v1117_v7, %v1118_v38  ;;  %v1031_v19 = vmax.f32 %v1029_v21, %v1030_v0  ;;  %v989_v1 = vmax.f32 %v987_v61, %v988_v53  ;;  %v1052_v41 = vrot.slane %v1051_v32, 2 }
 0x279   :  { %6192 = vst [vmem:[#allocation112_spill] sm:$0xff] %v4301_v11  ;;  %v966_v44 = vadd.f32 %v4031_v31, %v4301_v11  ;;  %v1041_v36 = vrot.slane %v1040_v62, 2  ;;  %v1098_v48 = vrot.slane %v1097_v6, 1  ;;  %v1010_v26 = vrot.slane %v1009_v23, 1 }
 0x27a   :  { %v1021_v35 = vrot.slane %v1020_v28, 1  ;;  %v1120_v13 = vrot.slane %v1119_v63, 1  ;;  %v1053_v58 = vmax.f32 %v1051_v32, %v1052_v41  ;;  %v1161_v61 = vsel %vm1160_vm2, %v989_v1, %v4313_v37  ;;  %v96_v1 = vld [vmem:[%s6200_s21 + $0x18] sm:$0xff] }
 0x27b   :  { %v1136_v14 = vmax.f32 %v1135_v50, %v966_v44  ;;  %v1042_v18 = vmax.f32 %v1040_v62, %v1041_v36  ;;  %v999_v44 = vrot.slane %v998_v5, 1  ;;  %v1011_v8 = vmax.f32 %v1009_v23, %v1010_v26  ;;  %v97_v26 = vld [vmem:[%s6200_s21 + $0x20] sm:$0xff] }
 0x27c   :  { %v1022_v43 = vmax.f32 %v1020_v28, %v1021_v35  ;;  %v1121_v0 = vmax.f32 %v1119_v63, %v1120_v13  ;;  %v1054_v32 = vrot.slane %v1053_v58, 1 }
 0x27d   :  { %v1043_v21 = vrot.slane %v1042_v18, 1  ;;  %v1000_v62 = vmax.f32 %v998_v5, %v999_v44 }
 0x288   :  { %v4321_v25 = vpop.permute.xlu1 %658 }
 0x289   :  { %6196 = vst [vmem:[#allocation114_spill] sm:$0xff] %v4321_v25  ;;  %v961_v22 = vadd.f32 %v4036_v20, %v4321_v25 }
 0x28b   :  { %v1126_v10 = vmax.f32 %v1125_v45, %v961_v22  ;;  %v1174_v45 = vsel %vm1160_vm2, %v4223_v24, %v1066_v46  ;;  %v1088_v22 = vmax.f32 %v1086_v56, %v1087_v12  ;;  %v1032_v46 = vrot.slane %v1031_v19, 1 }
 0x28c   :  { %v1099_v56 = vmax.f32 %v1097_v6, %v1098_v48  ;;  %v1044_v6 = vmax.f32 %v1042_v18, %v1043_v21  ;;  %v95_v18 = vld [vmem:[%s6200_s21 + $0x10] sm:$0xff] }
 0x28d   :  { %v1127_v52 = vrot.slane %v1126_v10, 4  ;;  %v1175_v24 = vsel %vm1162_vm3, %v1088_v22, %v1174_v45  ;;  %v1033_v53 = vmax.f32 %v1031_v19, %v1032_v46  ;;  %v1055_v19 = vmax.f32 %v1053_v58, %v1054_v32 }
 0x28e   :  { %v1176_v38 = vsel %vm1164_vm4, %v1099_v56, %v1175_v24 }
 0x28f   :  { %v1128_v4 = vmax.f32 %v1126_v10, %v1127_v52  ;;  %v1109_v52 = vrot.slane %v1108_v42, 1 }
 0x290   :  { %v4334_v9 = vpop.permute.xlu1 %695 }
 0x291   :  { %6199 = vst [vmem:[#allocation115_spill] sm:$0xff] %v4334_v9  ;;  %v1129_v2 = vrot.slane %v1128_v4, 2  ;;  %v967_v17 = vadd.f32 %v4036_v20, %v4334_v9  ;;  %v1110_v50 = vmax.f32 %v1108_v42, %v1109_v52 }
 0x293   :  { %v1137_v10 = vmax.f32 %v1136_v14, %v967_v17  ;;  %v1130_v57 = vmax.f32 %v1128_v4, %v1129_v2  ;;  %v1163_v14 = vsel %vm1162_vm3, %v1000_v62, %v1161_v61  ;;  %v1177_v37 = vsel %vm1166_vm5, %v1110_v50, %v1176_v38  ;;  %v1360_v38 = vld [vmem:[%s5821_s10 + $0x68] sm:$0xff] }
 0x294   :  { %v1165_v2 = vsel %vm1164_vm4, %v1011_v8, %v1163_v14  ;;  %v1178_v42 = vsel %vm1168_vm6, %v1121_v0, %v1177_v37  ;;  %v3334_v14 = vld [vmem:[%s5816_s5] sm:$0xff] }
 0x295   :  { %v1138_v40 = vrot.slane %v1137_v10, 4  ;;  %v1131_v7 = vrot.slane %v1130_v57, 1  ;;  %v1167_v17 = vsel %vm1166_vm5, %v1022_v43, %v1165_v2  ;;  %v6203_v2 = vld [vmem:[#allocation93_spill] sm:$0xff] }
 0x296   :  { %v1169_v28 = vsel %vm1168_vm6, %v1033_v53, %v1167_v17  ;;  %v6204_v17 = vld [vmem:[#allocation92_spill] sm:$0xff] }
 0x297   :  { %v1139_v60 = vmax.f32 %v1137_v10, %v1138_v40  ;;  %v1132_v36 = vmax.f32 %v1130_v57, %v1131_v7  ;;  %v1171_v22 = vsel %vm1170_vm7, %v1044_v6, %v1169_v28  ;;  %v93_v10 = vld [vmem:[%s6200_s21] sm:$0xff]  ;;  %v94_v57 = vld [vmem:[%s6200_s21 + $0x8] sm:$0xff] }
 0x298   :  { %v1173_v48 = vsel %vm1172_vm8, %v1055_v19, %v1171_v22  ;;  %v98_v40 = vld [vmem:[%s6200_s21 + $0x28] sm:$0xff]  ;;  %v1358_v19 = vld [vmem:[%s5821_s10 + $0x58] sm:$0xff] }
 0x299   :  { %v1140_v12 = vrot.slane %v1139_v60, 2  ;;  %v1179_v45 = vsel %vm1170_vm7, %v1132_v36, %v1178_v42  ;;  %v6201_v36 = vld [vmem:[#allocation98_spill] sm:$0xff]  ;;  %v6206_v22 = vld [vmem:[#allocation91_spill] sm:$0xff] }
 0x29a   :  { %v6205_v42 = vld [vmem:[#allocation90_spill] sm:$0xff] }
 0x29b   :  { %v1141_v4 = vmax.f32 %v1139_v60, %v1140_v12 }
 0x29d   :  { %v1142_v23 = vrot.slane %v1141_v4, 1 }
 0x29f   :  { %v1143_v5 = vmax.f32 %v1141_v4, %v1142_v23  ;;  %v1359_v4 = vld [vmem:[%s5821_s10 + $0x60] sm:$0xff]  ;;  %v6202_v23 = vld [vmem:[#allocation96_spill] sm:$0xff] }
 0x2a1   :  { %v1180_v63 = vsel %vm1172_vm8, %v1143_v5, %v1179_v45  ;;  %v3335_v45 = vld [vmem:[%s5816_s5 + $0x8] sm:$0xff] }
 0x2a2   :  { %1215 = vmatpush.msra.mxu3 %v1180_v63 }
 0x2a4   :  { %1216 = vmatpush.msra.mxu3 %v1173_v48  ;;  %v1356_v48 = vld [vmem:[%s5821_s10 + $0x48] sm:$0xff] }
 0x2a5   :  { %3051 = vmatmul.msk.f32.vlgmr.msra.gmra.mxu3 %vm799_vm1, %v93_v10  ;;  %v1357_v10 = vld [vmem:[%s5821_s10 + $0x50] sm:$0xff] }
 0x2ad   :  { %3052 = vmatmul.msk.f32.gmra.mxu3 %vm799_vm1, %v94_v57  ;;  %v1355_v57 = vld [vmem:[%s5821_s10 + $0x40] sm:$0xff] }
 0x2b5   :  { %3053 = vmatmul.msk.f32.gmra.mxu3 %vm799_vm1, %v95_v18  ;;  %v1354_v18 = vld [vmem:[%s5821_s10 + $0x38] sm:$0xff] }
 0x2bd   :  { %3054 = vmatmul.msk.f32.gmra.mxu3 %vm799_vm1, %v96_v1  ;;  %v1353_v1 = vld [vmem:[%s5821_s10 + $0x30] sm:$0xff] }
 0x2c5   :  { %3055 = vmatmul.msk.f32.gmra.mxu3 %vm799_vm1, %v97_v26  ;;  %v1352_v26 = vld [vmem:[%s5821_s10 + $0x28] sm:$0xff] }
 0x2cd   :  { %3056 = vmatmul.msk.f32.gmra.mxu3 %vm799_vm1, %v98_v40  ;;  %v1351_v40 = vld [vmem:[%s5821_s10 + $0x20] sm:$0xff] }
 0x328   :  { %v1218_v41 = vpop.f32.mrf.mxu3 }
 0x329   :  { %v1236_v61 = vsub.f32 %v4008_v39, %v1218_v41  ;;  %v1361_v39 = vld [vmem:[%s5821_s10 + $0x70] sm:$0xff]  ;;  %v1350_v41 = vld [vmem:[%s5821_s10 + $0x18] sm:$0xff] }
 0x32b   :  { %v1242_v50 = vmul.f32 1.442695, %v1236_v61 }
 0x330   :  { %v1221_v44 = vpop.f32.mrf.mxu3 }
 0x331   :  { %v1237_v12 = vsub.f32 %v4001_v30, %v1221_v44  ;;  %v1362_v30 = vld [vmem:[%s5821_s10 + $0x78] sm:$0xff]  ;;  %v1349_v44 = vld [vmem:[%s5821_s10 + $0x10] sm:$0xff] }
 0x332   :  { %1367 = vmatpush.msrb.mxu1 %v1362_v30 }
 0x333   :  { %v1244_v43 = vmul.f32 1.442695, %v1237_v12 }
 0x334   :  { %1368 = vmatpush.msrb.mxu1 %v1361_v39 }
 0x336   :  { %1369 = vmatpush.msrb.mxu1 %v1360_v38  ;;  %v6207_v38 = vld [vmem:[#allocation8_spill] sm:$0xff] }
 0x338   :  { %v1224_v52 = vpop.f32.mrf.mxu3  ;;  %1370 = vmatpush.msrb.mxu1 %v1359_v4 }
 0x339   :  { %v1238_v7 = vsub.f32 %v4011_v27, %v1224_v52  ;;  %v1348_v52 = vld [vmem:[%s5821_s10 + $0x8] sm:$0xff] }
 0x33a   :  { %1371 = vmatpush.msrb.mxu1 %v1358_v19 }
 0x33b   :  { %v1246_v62 = vmul.f32 1.442695, %v1238_v7 }
 0x33c   :  { %1372 = vmatpush.msrb.mxu1 %v1357_v10 }
 0x33e   :  { %1373 = vmatpush.msrb.mxu1 %v1356_v48 }
 0x340   :  { %v1227_v35 = vpop.f32.mrf.mxu3  ;;  %1374 = vmatpush.msrb.mxu1 %v1355_v57 }
 0x341   :  { %v1239_v46 = vsub.f32 %v4016_v34, %v1227_v35  ;;  %v1347_v35 = vld [vmem:[%s5821_s10] sm:$0xff] }
 0x342   :  { %1375 = vmatpush.msrb.mxu1 %v1354_v18 }
 0x343   :  { %v1248_v58 = vmul.f32 1.442695, %v1239_v46 }
 0x344   :  { %1376 = vmatpush.msrb.mxu1 %v1353_v1  ;;  %v1463_v1 = vld [vmem:[%s5825_s14 + $0x78] sm:$0xff] }
 0x345   :  { %1468 = vmatpush.msrb.mxu2 %v1463_v1 }
 0x346   :  { %1377 = vmatpush.msrb.mxu1 %v1352_v26 }
 0x348   :  { %v1230_v60 = vpop.f32.mrf.mxu3  ;;  %1378 = vmatpush.msrb.mxu1 %v1351_v40 }
 0x349   :  { %v1240_v13 = vsub.f32 %v4031_v31, %v1230_v60 }
 0x34a   :  { %1379 = vmatpush.msrb.mxu1 %v1350_v41 }
 0x34b   :  { %v1250_v21 = vmul.f32 1.442695, %v1240_v13 }
 0x34c   :  { %1380 = vmatpush.msrb.mxu1 %v1349_v44 }
 0x34e   :  { %1381 = vmatpush.msrb.mxu1 %v1348_v52 }
 0x350   :  { %v1233_v24 = vpop.f32.mrf.mxu3  ;;  %1382 = vmatpush.msrb.mxu1 %v1347_v35 }
 0x351   :  { %v1241_v56 = vsub.f32 %v4036_v20, %v1233_v24 }
 0x353   :  { %v1252_v8 = vmul.f32 1.442695, %v1241_v56 }
 0x355   :  { %3262 = vpow2.f32 %v1252_v8 }
 0x356   :  { %3264 = vpow2.f32 %v1250_v21 }
 0x357   :  { %3266 = vpow2.f32 %v1248_v58 }
 0x358   :  { %3268 = vpow2.f32 %v1246_v62 }
 0x359   :  { %3270 = vpow2.f32 %v1244_v43 }
 0x35a   :  { %3272 = vpow2.f32 %v1242_v50 }
 0x35b   :  { %v3263_v31 = vpop.eup %3262 }
 0x35c   :  { %1277 = vmatpush.msrb.mxu0 %v3263_v31  ;;  %v3265_v34 = vpop.eup %3264  ;;  %v1259_v6 = vmul.f32 %v3263_v31, %v6201_v36 }
 0x35d   :  { %v3267_v20 = vpop.eup %3266  ;;  %v1258_v32 = vmul.f32 %v3265_v34, %v6202_v23 }
 0x35e   :  { %1278 = vmatpush.msrb.mxu0 %v3265_v34  ;;  %v3269_v27 = vpop.eup %3268  ;;  %v1257_v37 = vmul.f32 %v3267_v20, %v6203_v2 }
 0x35f   :  { %v3271_v0 = vpop.eup %3270  ;;  %v1256_v5 = vmul.f32 %v3269_v27, %v6204_v17 }
 0x360   :  { %1279 = vmatpush.msrb.mxu0 %v3267_v20  ;;  %v3273_v53 = vpop.eup %3272  ;;  %v1255_v28 = vmul.f32 %v3271_v0, %v6205_v42 }
 0x361   :  { %v1254_v63 = vmul.f32 %v3273_v53, %v6206_v22  ;;  %v3405_v22 = vmov 0.0  }
 0x362   :  { %1280 = vmatpush.msrb.mxu0 %v3269_v27 }
 0x364   :  { %1281 = vmatpush.msrb.mxu0 %v3271_v0 }
 0x366   :  { %1282 = vmatpush.msrb.mxu0 %v3273_v53 }
 0x367   :  { %3057 = vmatmul.msk.f32.vlgmr.msrb.gmra.mxu0 %vm1260_vm9, %v3334_v14 }
 0x368   :  { %1300 = vmatpush.msra.mxu0 %v1259_v6 }
 0x36a   :  { %1301 = vmatpush.msra.mxu0 %v1258_v32 }
 0x36c   :  { %1302 = vmatpush.msra.mxu0 %v1257_v37  ;;  %v6208_v37 = vld [vmem:[#allocation9_spill] sm:$0xff] }
 0x36e   :  { %1303 = vmatpush.msra.mxu0 %v1256_v5  ;;  %v6209_v5 = vlaneseq }
 0x36f   :  { %3058 = vmatmul.msk.f32.gmra.mxu0 %vm1260_vm9, %v3335_v45 }
 0x370   :  { %1304 = vmatpush.msra.mxu0 %v1255_v28  ;;  %v4451_v42 = vand.u32 127, %v6209_v5  ;;  %v3243_v28 = vld [vmem:[%s5822_s11] ss:$0 sm:$0xff] }
 0x372   :  { %1305 = vmatpush.msra.mxu0 %v1254_v63 }
 0x377   :  { %3059 = vmatmul.msk.f32.vlgmr.msra.gmra.mxu0 %vm1260_vm9, %v3334_v14 }
 0x37f   :  { %3060 = vmatmul.msk.f32.gmra.mxu0 %vm1260_vm9, %v3335_v45 }
 0x3e4   :  { %v1284_v60 = vpop.f32.mrf.mxu0 }
 0x3e5   :  { %v1313_v13 = vmax.f32 %v1284_v60, 1e-16 }
 0x3e7   :  { %3274 = vrcp.f32 %v1313_v13  ;;  %v1326_v8 = vand.u32 2147483648, %v1313_v13  ;;  %v1324_v58 = vand.u32 2147483647, %v1313_v13  ;;  %vm1320_vm11 = vweird.f32 %v1313_v13 }
 0x3e9   :  { %v1327_v31 = vor.u32 1.1754944e-38, %v1326_v8  ;;  %vm1325_vm13 = vcmp.eq.f32.partialorder %v1324_v58, 8.507059e+37  ;;  %v1459_v8 = vld [vmem:[%s5825_s14 + $0x58] sm:$0xff]  ;;  %v1457_v58 = vld [vmem:[%s5825_s14 + $0x48] sm:$0xff] }
 0x3ec   :  { %v1287_v24 = vpop.f32.mrf.mxu0 }
 0x3ed   :  { %v3275_v46 = vpop.eup %3274  ;;  %v1314_v56 = vmax.f32 %v1287_v24, 1e-16 }
 0x3ee   :  { %v1316_v7 = vmul.f32 %v3275_v46, %v1313_v13  ;;  %vm1321_vm10 = vweird.f32 %v3275_v46 }
 0x3ef   :  { %3276 = vrcp.f32 %v1314_v56  ;;  %vm1322_vm12 = vmor %vm1320_vm11, %vm1321_vm10  ;;  %v1341_v27 = vand.u32 2147483648, %v1314_v56  ;;  %v1339_v53 = vand.u32 2147483647, %v1314_v56  ;;  %vm1335_vm15 = vweird.f32 %v1314_v56 }
 0x3f0   :  { %v1317_v21 = vsub.f32 1.0, %v1316_v7  ;;  %vm84_vm11 = vcmp.lt.s32.totalorder %v4451_v42, 64  ;;  %v1461_v7 = vld [vmem:[%s5825_s14 + $0x68] sm:$0xff] }
 0x3f1   :  { %v1342_v14 = vor.u32 1.1754944e-38, %v1341_v27  ;;  %vm1340_vm10 = vcmp.eq.f32.partialorder %v1339_v53, 8.507059e+37  ;;  %v4458_v63 = vsel %vm84_vm11, 1.0, %v3405_v22  ;;  %vm81_vm11 = vcmp.lt.s32.totalorder %v4451_v42, 32 }
 0x3f2   :  { %v1318_v12 = vmul.f32 %v3275_v46, %v1317_v21  ;;  %6210 = vst [vmem:[#allocation98_spill] sm:$0xff] %v4458_v63  ;;  %v1460_v21 = vld [vmem:[%s5825_s14 + $0x60] sm:$0xff] }
 0x3f4   :  { %v1307_v61 = vpop.f32.mrf.mxu0  ;;  %v1319_v62 = vadd.f32 %v3275_v46, %v1318_v12  ;;  %v1458_v12 = vld [vmem:[%s5825_s14 + $0x50] sm:$0xff] }
 0x3f5   :  { %v3277_v43 = vpop.eup %3276 }
 0x3f6   :  { %v1323_v50 = vsel %vm1322_vm12, %v3275_v46, %v1319_v62  ;;  %v1331_v34 = vmul.f32 %v3277_v43, %v1314_v56  ;;  %vm1336_vm14 = vweird.f32 %v3277_v43  ;;  %v1462_v56 = vld [vmem:[%s5825_s14 + $0x70] sm:$0xff]  ;;  %v1455_v62 = vld [vmem:[%s5825_s14 + $0x38] sm:$0xff] }
 0x3f7   :  { %v1328_v20 = vsel %vm1325_vm13, %v1327_v31, %v1323_v50  ;;  %vm1337_vm0 = vmor %vm1335_vm15, %vm1336_vm14  ;;  %1469 = vmatpush.msrb.mxu2 %v1462_v56  ;;  %v1453_v31 = vld [vmem:[%s5825_s14 + $0x28] sm:$0xff]  ;;  %v1452_v50 = vld [vmem:[%s5825_s14 + $0x20] sm:$0xff] }
 0x3f8   :  { %v1329_v30 = vmul.f32 %v1328_v20, %v1307_v61  ;;  %v1332_v39 = vsub.f32 1.0, %v1331_v34  ;;  %v1456_v61 = vld [vmem:[%s5825_s14 + $0x40] sm:$0xff]  ;;  %v1451_v34 = vld [vmem:[%s5825_s14 + $0x18] sm:$0xff]  ;;  %v1450_v20 = vld [vmem:[%s5825_s14 + $0x10] sm:$0xff] }
 0x3f9   :  { %1470 = vmatpush.msrb.mxu2 %v1461_v7  ;;  %v4528_v7 = vsel %vm81_vm11, 1.0, %v3405_v22 }
 0x3fa   :  { %v1345_v0 = vadd.f32 %v1329_v30, %v6207_v38  ;;  %v1333_v4 = vmul.f32 %v3277_v43, %v1332_v39  ;;  %v1449_v30 = vld [vmem:[%s5825_s14 + $0x8] sm:$0xff]  ;;  %v1448_v39 = vld [vmem:[%s5825_s14] sm:$0xff]  ;;  %6211 = vst [vmem:[#allocation96_spill] sm:$0xff] %v4528_v7 }
 0x3fb   :  { %1471 = vmatpush.msrb.mxu2 %v1460_v21 }
 0x3fc   :  { %1383 = vmatmul.f32.vlgmr.msrb.gmra.mxu1 %v1345_v0  ;;  %v1334_v36 = vadd.f32 %v3277_v43, %v1333_v4  ;;  %v1310_v6 = vpop.f32.mrf.mxu0 }
 0x3fd   :  { %1472 = vmatpush.msrb.mxu2 %v1459_v8 }
 0x3fe   :  { %v1338_v23 = vsel %vm1337_vm0, %v3277_v43, %v1334_v36  ;;  %v1454_v43 = vld [vmem:[%s5825_s14 + $0x30] sm:$0xff] }
 0x3ff   :  { %v1343_v32 = vsel %vm1340_vm10, %v1342_v14, %v1338_v23  ;;  %1473 = vmatpush.msrb.mxu2 %v1458_v12 }
 0x400   :  { %v1344_v2 = vmul.f32 %v1343_v32, %v1310_v6 }
 0x401   :  { %1474 = vmatpush.msrb.mxu2 %v1457_v58 }
 0x402   :  { %v1346_v17 = vadd.f32 %v1344_v2, %v6208_v37 }
 0x403   :  { %1475 = vmatpush.msrb.mxu2 %v1456_v61 }
 0x404   :  { %1386 = vmatmul.f32.gmra.mxu1 %v1346_v17 }
 0x405   :  { %1476 = vmatpush.msrb.mxu2 %v1455_v62 }
 0x407   :  { %1477 = vmatpush.msrb.mxu2 %v1454_v43 }
 0x409   :  { %1478 = vmatpush.msrb.mxu2 %v1453_v31 }
 0x40b   :  { %1479 = vmatpush.msrb.mxu2 %v1452_v50 }
 0x40d   :  { %1480 = vmatpush.msrb.mxu2 %v1451_v34 }
 0x40f   :  { %1481 = vmatpush.msrb.mxu2 %v1450_v20 }
 0x411   :  { %1482 = vmatpush.msrb.mxu2 %v1449_v30 }
 0x413   :  { %1483 = vmatpush.msrb.mxu2 %v1448_v39 }
 0x479   :  { %v1384_v45 = vpop.f32.mrf.mxu1 }
 0x47a   :  { %v1385_v19 = vadd.f32 %v3243_v28, %v1384_v45 }
 0x47c   :  { %v1392_v10 = vmul.f32 %v4458_v63, %v1385_v19 }
 0x47e   :  { %1394 = vadd.xlane.f32.xlu1 %v1392_v10 }
 0x481   :  { %v1387_v48 = vpop.f32.mrf.mxu1 }
 0x482   :  { %v1388_v57 = vadd.f32 %v3243_v28, %v1387_v48  ;;  %v3244_v28 = vld [vmem:[%s5823_s12] ss:$0 sm:$0xff] }
 0x483   :  { %v3245_v48 = vld [vmem:[%s5824_s13] ss:$0 sm:$0xff] }
 0x484   :  { %v1393_v18 = vmul.f32 %v4458_v63, %v1388_v57 }
 0x486   :  { %1396 = vadd.xlane.f32.xlu2 %v1393_v18 }
 0x4f1   :  { %v1395_v26 = vpop.xlane.xlu1 %1394 }
 0x4f2   :  { %v1398_v40 = vmul.f32 0.015625, %v1395_v26 }
 0x4f4   :  { %v1400_v41 = vsub.f32 %v1385_v19, %v1398_v40 }
 0x4f6   :  { %v1402_v44 = vmul.f32 %v4458_v63, %v1400_v41 }
 0x4f8   :  { %v1404_v52 = vmul.f32 %v1402_v44, %v1402_v44 }
 0x4f9   :  { %v1397_v35 = vpop.xlane.xlu2 %1396 }
 0x4fa   :  { %v1399_v60 = vmul.f32 0.015625, %v1397_v35  ;;  %1406 = vadd.xlane.f32.xlu0 %v1404_v52 }
 0x4fc   :  { %v1401_v13 = vsub.f32 %v1388_v57, %v1399_v60 }
 0x4fe   :  { %v4467_v24 = vmul.f32 %v4458_v63, %v1401_v13 }
 0x500   :  { %v1405_v46 = vmul.f32 %v4467_v24, %v4467_v24 }
 0x502   :  { %1408 = vadd.xlane.f32.xlu2 %v1405_v46  ;;  %v3246_v46 = vld [vmem:[%s5826_s15] ss:$0 sm:$0xff] }
 0x56d   :  { %v1407_v27 = vpop.xlane.xlu0 %1406 }
 0x56e   :  { %v1410_v38 = vmul.f32 0.015625, %v1407_v27 }
 0x570   :  { %v1412_v0 = vadd.f32 1e-05, %v1410_v38 }
 0x572   :  { %3278 = vrsqrt.f32 %v1412_v0  ;;  %vm1420_vm13 = vweird.f32 %v1412_v0 }
 0x575   :  { %v1409_v4 = vpop.xlane.xlu2 %1408 }
 0x576   :  { %v1411_v53 = vmul.f32 0.015625, %v1409_v4 }
 0x578   :  { %v3279_v36 = vpop.eup %3278  ;;  %v1413_v6 = vadd.f32 1e-05, %v1411_v53 }
 0x579   :  { %v1415_v14 = vmul.f32 %v3279_v36, %v1412_v0  ;;  %vm1421_vm12 = vweird.f32 %v3279_v36 }
 0x57a   :  { %3280 = vrsqrt.f32 %v1413_v6  ;;  %vm1422_vm14 = vmor %vm1420_vm13, %vm1421_vm12  ;;  %vm1430_vm0 = vweird.f32 %v1413_v6 }
 0x57b   :  { %v1416_v23 = vmul.f32 %v3279_v36, %v1415_v14 }
 0x57d   :  { %v1417_v32 = vmul.f32 0.5, %v1416_v23 }
 0x57f   :  { %v1418_v2 = vsub.f32 1.5, %v1417_v32 }
 0x580   :  { %v3281_v37 = vpop.eup %3280 }
 0x581   :  { %v1419_v17 = vmul.f32 %v3279_v36, %v1418_v2  ;;  %v1425_v5 = vmul.f32 %v3281_v37, %v1413_v6  ;;  %vm1431_vm15 = vweird.f32 %v3281_v37 }
 0x582   :  { %vm1432_vm10 = vmor %vm1430_vm0, %vm1431_vm15 }
 0x583   :  { %v1423_v45 = vsel %vm1422_vm14, %v3279_v36, %v1419_v17  ;;  %v1426_v19 = vmul.f32 %v3281_v37, %v1425_v5 }
 0x584   :  { %v1434_v10 = vmul.f32 %v1423_v45, %v1402_v44 }
 0x585   :  { %v1427_v57 = vmul.f32 0.5, %v1426_v19 }
 0x586   :  { %v1439_v18 = vmul.f32 %v3244_v28, %v1434_v10  ;;  %v3247_v10 = vld [vmem:[%s5827_s16 + $0x1] ss:$0 sm:$0xff] }
 0x587   :  { %v1428_v1 = vsub.f32 1.5, %v1427_v57 }
 0x588   :  { %v1444_v26 = vadd.f32 %v3245_v48, %v1439_v18 }
 0x589   :  { %v1429_v40 = vmul.f32 %v3281_v37, %v1428_v1 }
 0x58a   :  { %v1446_v41 = vmax.f32 %v1444_v26, 0.0  ;;  %v3248_v26 = vld [vmem:[%s5828_s17 + $0x1] ss:$0 sm:$0xff] }
 0x58b   :  { %v1433_v52 = vsel %vm1432_vm10, %v3281_v37, %v1429_v40 }
 0x58c   :  { %1484 = vmatmul.f32.vlgmr.msrb.gmra.mxu2 %v1446_v41  ;;  %v1435_v35 = vmul.f32 %v1433_v52, %v4467_v24 }
 0x58e   :  { %v1440_v60 = vmul.f32 %v3244_v28, %v1435_v35 }
 0x590   :  { %v1445_v13 = vadd.f32 %v3245_v48, %v1440_v60 }
 0x592   :  { %v1447_v44 = vmax.f32 %v1445_v13, 0.0 }
 0x594   :  { %1487 = vmatmul.f32.gmra.mxu2 %v1447_v44  ;;  %v3336_v44 = vld [vmem:[%s6059_s30] sm:$0xff] }
 0x60f   :  { %v1485_v56 = vpop.f32.mrf.mxu2 }
 0x610   :  { %v4530_v21 = vadd.f32 %v3246_v46, %v1485_v56  ;;  %v3338_v56 = vld [vmem:[%s6059_s30 + $0x10] sm:$0xff] }
 0x612   :  { %6212 = vst [vmem:[#allocation93_spill] sm:$0xff] %v4530_v21  ;;  %v1495_v8 = vmul.f32 %v4528_v7, %v4530_v21 }
 0x614   :  { %1497 = vadd.xlane.f32.xlu2 %v1495_v8  ;;  %v3339_v8 = vld [vmem:[%s6059_s30 + $0x18] sm:$0xff] }
 0x617   :  { %v1488_v24 = vpop.f32.mrf.mxu2 }
 0x618   :  { %v4534_v12 = vadd.f32 %v3246_v46, %v1488_v24  ;;  %v3337_v46 = vld [vmem:[%s6059_s30 + $0x8] sm:$0xff]  ;;  %v3340_v24 = vld [vmem:[%s6059_s30 + $0x20] sm:$0xff] }
 0x61a   :  { %6213 = vst [vmem:[#allocation92_spill] sm:$0xff] %v4534_v12  ;;  %v1496_v58 = vmul.f32 %v4528_v7, %v4534_v12 }
 0x61c   :  { %1499 = vadd.xlane.f32.xlu1 %v1496_v58  ;;  %v3341_v58 = vld [vmem:[%s6059_s30 + $0x28] sm:$0xff] }
 0x687   :  { %v1498_v61 = vpop.xlane.xlu2 %1497 }
 0x688   :  { %v1501_v62 = vmul.f32 0.03125, %v1498_v61 }
 0x68a   :  { %v1503_v42 = vsub.f32 %v4530_v21, %v1501_v62  ;;  %v6216_v62 = vld [vmem:[#allocation80_spill] sm:$0xff] }
 0x68c   :  { %v1505_v22 = vmul.f32 %v4528_v7, %v1503_v42 }
 0x68e   :  { %v1507_v43 = vmul.f32 %v1505_v22, %v1505_v22 }
 0x68f   :  { %v1500_v31 = vpop.xlane.xlu1 %1499 }
 0x690   :  { %v1502_v50 = vmul.f32 0.03125, %v1500_v31  ;;  %1509 = vadd.xlane.f32.xlu2 %v1507_v43  ;;  %v4585_v31 = vstv %s3063_s1 }
 0x692   :  { %v1504_v34 = vsub.f32 %v4534_v12, %v1502_v50  ;;  %v6261_v12 = vld [vmem:[#allocation24_spill] sm:$0xff] }
 0x694   :  { %v1506_v20 = vmul.f32 %v4528_v7, %v1504_v34  ;;  %v6262_v7 = vld [vmem:[#allocation44_spill] sm:$0xff] }
 0x696   :  { %v1508_v30 = vmul.f32 %v1506_v20, %v1506_v20 }
 0x698   :  { %1511 = vadd.xlane.f32.xlu1 %v1508_v30 }
 0x703   :  { %v1510_v39 = vpop.xlane.xlu2 %1509 }
 0x704   :  { %v1513_v27 = vmul.f32 0.03125, %v1510_v39 }
 0x706   :  { %v1515_v38 = vadd.f32 1e-05, %v1513_v27  ;;  %v6220_v27 = vld [vmem:[#allocation28_spill] sm:$0xff] }
 0x708   :  { %3282 = vrsqrt.f32 %v1515_v38  ;;  %vm1523_vm13 = vweird.f32 %v1515_v38 }
 0x70b   :  { %v1512_v0 = vpop.xlane.xlu1 %1511 }
 0x70c   :  { %v1514_v4 = vmul.f32 0.03125, %v1512_v0 }
 0x70e   :  { %v3283_v53 = vpop.eup %3282  ;;  %v1516_v36 = vadd.f32 1e-05, %v1514_v4  ;;  %v6222_v4 = vld [vmem:[#allocation15_spill] sm:$0xff] }
 0x70f   :  { %v1518_v6 = vmul.f32 %v3283_v53, %v1515_v38  ;;  %vm1524_vm12 = vweird.f32 %v3283_v53 }
 0x710   :  { %3284 = vrsqrt.f32 %v1516_v36  ;;  %vm1525_vm14 = vmor %vm1523_vm13, %vm1524_vm12  ;;  %vm1533_vm0 = vweird.f32 %v1516_v36 }
 0x711   :  { %v1519_v14 = vmul.f32 %v3283_v53, %v1518_v6 }
 0x713   :  { %v1520_v23 = vmul.f32 0.5, %v1519_v14  ;;  %v6224_v14 = vld [vmem:[#allocation14_spill] sm:$0xff] }
 0x715   :  { %v1521_v32 = vsub.f32 1.5, %v1520_v23 }
 0x716   :  { %v3285_v2 = vpop.eup %3284 }
 0x717   :  { %v1522_v37 = vmul.f32 %v3283_v53, %v1521_v32  ;;  %v1528_v17 = vmul.f32 %v3285_v2, %v1516_v36  ;;  %vm1534_vm15 = vweird.f32 %v3285_v2  ;;  %v6223_v36 = vld [vmem:[#allocation10_spill] sm:$0xff] }
 0x718   :  { %vm1535_vm10 = vmor %vm1533_vm0, %vm1534_vm15  ;;  %v6225_v32 = vld [vmem:[#allocation18_spill] sm:$0xff] }
 0x719   :  { %v1529_v5 = vmul.f32 %v3285_v2, %v1528_v17  ;;  %v1526_v28 = vsel %vm1525_vm14, %v3283_v53, %v1522_v37  ;;  %v6226_v37 = vld [vmem:[#allocation37_spill] sm:$0xff] }
 0x71a   :  { %v1537_v48 = vmul.f32 %v1526_v28, %v1505_v22 }
 0x71b   :  { %v1530_v45 = vmul.f32 0.5, %v1529_v5  ;;  %v6227_v5 = vld [vmem:[#allocation43_spill] sm:$0xff] }
 0x71c   :  { %v1542_v40 = vmul.f32 %v3247_v10, %v1537_v48  ;;  %v6230_v48 = vld [vmem:[#allocation19_spill] sm:$0xff] }
 0x71d   :  { %v1531_v19 = vsub.f32 1.5, %v1530_v45  ;;  %v6228_v45 = vld [vmem:[#allocation45_spill] sm:$0xff] }
 0x71e   :  { %v4550_v35 = vadd.f32 %v3248_v26, %v1542_v40 }
 0x71f   :  { %v1532_v57 = vmul.f32 %v3285_v2, %v1531_v19 }
 0x720   :  { %6215 = vst [vmem:[#allocation91_spill] sm:$0xff] %v4550_v35  ;;  %v5998_v13 = vmax.f32 %v4550_v35, 0.0  ;;  %v6282_v35 = vld [vmem:[#allocation46_spill] sm:$0xff] }
 0x721   :  { %v1536_v18 = vsel %vm1535_vm10, %v3285_v2, %v1532_v57 }
 0x722   :  { %v1538_v1 = vmul.f32 %v1536_v18, %v1506_v20  ;;  %v6219_v20 = vld [vmem:[#allocation79_spill] sm:$0xff] }
 0x723   :  { %v6231_v18 = vld [vmem:[#allocation31_spill] sm:$0xff] }
 0x724   :  { %v1543_v41 = vmul.f32 %v3247_v10, %v1538_v1 }
 0x726   :  { %v4548_v52 = vadd.f32 %v3248_v26, %v1543_v41  ;;  %v6232_v26 = vld [vmem:[#allocation25_spill] sm:$0xff] }
 0x728   :  { %6214 = vst [vmem:[#allocation90_spill] sm:$0xff] %v4548_v52  ;;  %v5997_v60 = vmax.f32 %v4548_v52, 0.0  ;;  %v6278_v52 = vld [vmem:[#allocation42_spill] sm:$0xff] }
 0x72a   :  { %1566 = vmatpush.msrb.mxu0 %v5997_v60  ;;  %v6239_v60 = vld [vmem:[#allocation17_spill] sm:$0xff] }
 0x72c   :  { %1567 = vmatpush.msrb.mxu0 %v5998_v13 }
 0x72d   :  { %3064 = vmatmul.msk.f32.vlgmr.msrb.gmra.mxu0 %vm799_vm1, %v3336_v44  ;;  %v6233_v44 = vld [vmem:[#allocation34_spill] sm:$0xff] }
 0x735   :  { %3065 = vmatmul.msk.f32.gmra.mxu0 %vm799_vm1, %v3337_v46 }
 0x73d   :  { %3066 = vmatmul.msk.f32.gmra.mxu0 %vm799_vm1, %v3338_v56  ;;  %v6234_v56 = vld [vmem:[#allocation40_spill] sm:$0xff] }
 0x745   :  { %3067 = vmatmul.msk.f32.gmra.mxu0 %vm799_vm1, %v3339_v8 }
 0x74d   :  { %3068 = vmatmul.msk.f32.gmra.mxu0 %vm799_vm1, %v3340_v24  ;;  %v6235_v24 = vld [vmem:[#allocation49_spill] sm:$0xff] }
 0x755   :  { %3069 = vmatmul.msk.f32.gmra.mxu0 %vm799_vm1, %v3341_v58 }
 0x7aa   :  { %v1569_v61 = vpop.f32.mrf.mxu0 }
 0x7ab   :  { %v1570_v42 = vadd.f32 %v1569_v61, %v6216_v62  ;;  %v6236_v61 = vld [vmem:[#allocation60_spill] sm:$0xff] }
 0x7ad   :  { %v1587_v22 = vmax.f32 %v1570_v42, 0.0 }
 0x7af   :  { %v4583_v43 = vadd.f32 1e-07, %v1587_v22  ;;  %v6237_v22 = vld [vmem:[#allocation81_spill] sm:$0xff] }
 0x7b1   :  { %6217 = vst [vmem:[#allocation8_spill] sm:$0xff] %v4583_v43  ;;  %v4589_v50 = vmul.f32 %v4585_v31, %v4583_v43  ;;  %v6293_v43 = vld [vmem:[#allocation73_spill] sm:$0xff] }
 0x7b2   :  { %v1572_v34 = vpop.f32.mrf.mxu0 }
 0x7b3   :  { %6218 = vst [vmem:[#allocation9_spill] sm:$0xff] %v4589_v50  ;;  %v1573_v30 = vadd.f32 %v1572_v34, %v6219_v20  ;;  %v1654_v38 = vadd.f32 %v4589_v50, %v6220_v27  ;;  %v1660_v53 = vadd.f32 %v4589_v50, %v6222_v4  ;;  %v1666_v6 = vadd.f32 %v4589_v50, %v6223_v36  ;;  %v6260_v20 = vld [vmem:[#allocation26_spill] sm:$0xff] }
 0x7b4   :  { %v1672_v23 = vadd.f32 %v4589_v50, %v6224_v14  ;;  %v1678_v2 = vadd.f32 %v4589_v50, %v6225_v32  ;;  %v4606_v17 = vadd.f32 %v4589_v50, %v6226_v37  ;;  %v4610_v28 = vadd.f32 %v4589_v50, %v6227_v5  ;;  %v6244_v5 = vld [vmem:[#allocation33_spill] sm:$0xff]  ;;  %v6246_v32 = vld [vmem:[#allocation59_spill] sm:$0xff] }
 0x7b5   :  { %v1588_v39 = vmax.f32 %v1573_v30, 0.0  ;;  %v4614_v19 = vadd.f32 %v4589_v50, %v6228_v45  ;;  %v4622_v57 = vadd.f32 %v4589_v50, %v6230_v48  ;;  %v4626_v1 = vadd.f32 %v4589_v50, %v6231_v18  ;;  %v6238_v30 = vld [vmem:[#allocation51_spill] sm:$0xff]  ;;  %v6243_v45 = vld [vmem:[#allocation38_spill] sm:$0xff] }
 0x7b6   :  { %v4630_v40 = vadd.f32 %v4589_v50, %v6232_v26  ;;  %v4634_v46 = vadd.f32 %v4589_v50, %v6233_v44  ;;  %v4638_v8 = vadd.f32 %v4589_v50, %v6234_v56  ;;  %v4642_v58 = vadd.f32 %v4589_v50, %v6235_v24  ;;  %v6240_v44 = vld [vmem:[#allocation11_spill] sm:$0xff]  ;;  %v6241_v26 = vld [vmem:[#allocation54_spill] sm:$0xff] }
 0x7b7   :  { %v4594_v0 = vadd.f32 1e-07, %v1588_v39  ;;  %v4646_v42 = vadd.f32 %v4589_v50, %v6236_v61  ;;  %v6242_v24 = vld [vmem:[#allocation58_spill] sm:$0xff] }
 0x7b9   :  { %6221 = vst [vmem:[#allocation116_spill] sm:$0xff] %v4594_v0  ;;  %v4618_v10 = vmul.f32 %v4585_v31, %v4594_v0  ;;  %v6294_v0 = vld [vmem:[#allocation89_spill] sm:$0xff] }
 0x7ba   :  { %v1575_v41 = vpop.f32.mrf.mxu0 }
 0x7bb   :  { %6229 = vst [vmem:[#allocation117_spill] sm:$0xff] %v4618_v10  ;;  %v1576_v34 = vadd.f32 %v1575_v41, %v6237_v22  ;;  %v1655_v39 = vadd.f32 %v4618_v10, %v6238_v30  ;;  %v1661_v13 = vadd.f32 %v4618_v10, %v6239_v60  ;;  %v1667_v56 = vadd.f32 %v4618_v10, %v6240_v44  ;;  %v6245_v30 = vld [vmem:[#allocation61_spill] sm:$0xff] }
 0x7bc   :  { %v1673_v18 = vadd.f32 %v4618_v10, %v6241_v26  ;;  %v1679_v48 = vadd.f32 %v4618_v10, %v6242_v24  ;;  %v1685_v61 = vadd.f32 %v4618_v10, %v6243_v45  ;;  %v1691_v41 = vadd.f32 %v4618_v10, %v6244_v5  ;;  %v6248_v5 = vld [vmem:[#allocation12_spill] sm:$0xff] }
 0x7bd   :  { %v1589_v22 = vmax.f32 %v1576_v34, 0.0  ;;  %v1697_v37 = vadd.f32 %v4618_v10, %v6245_v30  ;;  %v1790_v60 = vmax.f32 %v1654_v38, %v1655_v39  ;;  %v4667_v44 = vadd.f32 %v4589_v50, %v6246_v32  ;;  %v6249_v38 = vld [vmem:[#allocation21_spill] sm:$0xff]  ;;  %v6250_v32 = vld [vmem:[#allocation16_spill] sm:$0xff] }
 0x7be   :  { %v1801_v14 = vmax.f32 %v1660_v53, %v1661_v13  ;;  %v1812_v26 = vmax.f32 %v1666_v6, %v1667_v56  ;;  %v1823_v36 = vmax.f32 %v1672_v23, %v1673_v18  ;;  %v1834_v4 = vmax.f32 %v1678_v2, %v1679_v48  ;;  %v6251_v53 = vld [vmem:[#allocation32_spill] sm:$0xff]  ;;  %v6253_v2 = vld [vmem:[#allocation41_spill] sm:$0xff]  ;;  %v6256_v56 = vld [vmem:[#allocation70_spill] sm:$0xff] }
 0x7bf   :  { %v4669_v24 = vadd.f32 1e-07, %v1589_v22  ;;  %v1845_v45 = vmax.f32 %v4606_v17, %v1685_v61  ;;  %v1856_v27 = vmax.f32 %v4610_v28, %v1691_v41  ;;  %v1607_v34 = vadd.f32 %v4618_v10, %v6248_v5  ;;  %v6254_v28 = vld [vmem:[#allocation39_spill] sm:$0xff] }
 0x7c0   :  { %v1867_v30 = vmax.f32 %v4614_v19, %v1697_v37  ;;  %v1613_v39 = vadd.f32 %v4618_v10, %v6249_v38  ;;  %v1619_v13 = vadd.f32 %v4618_v10, %v6250_v32  ;;  %v1625_v6 = vadd.f32 %v4618_v10, %v6251_v53  ;;  %v6255_v19 = vld [vmem:[#allocation50_spill] sm:$0xff]  ;;  %v6257_v53 = vld [vmem:[#allocation84_spill] sm:$0xff]  ;;  %v6258_v38 = vld [vmem:[#allocation13_spill] sm:$0xff] }
 0x7c1   :  { %6247 = vst [vmem:[#allocation118_spill] sm:$0xff] %v4669_v24  ;;  %v4684_v23 = vmul.f32 %v4585_v31, %v4669_v24  ;;  %v4688_v17 = vadd.f32 %v4618_v10, %v6253_v2  ;;  %v4692_v37 = vadd.f32 %v4618_v10, %v6254_v28  ;;  %v4696_v48 = vadd.f32 %v4618_v10, %v6255_v19  ;;  %v6259_v5 = vld [vmem:[#allocation23_spill] sm:$0xff] }
 0x7c2   :  { %v1578_v18 = vpop.f32.mrf.mxu0  ;;  %v4700_v61 = vadd.f32 %v4618_v10, %v6256_v56  ;;  %v1702_v22 = vmax.f32 %v4622_v57, %v1607_v34  ;;  %v1713_v41 = vmax.f32 %v4626_v1, %v1613_v39  ;;  %v1724_v2 = vmax.f32 %v4630_v40, %v1619_v13  ;;  %v6263_v1 = vld [vmem:[#allocation55_spill] sm:$0xff]  ;;  %v6264_v34 = vld [vmem:[#allocation53_spill] sm:$0xff] }
 0x7c3   :  { %6252 = vst [vmem:[#allocation119_spill] sm:$0xff] %v4684_v23  ;;  %v1579_v32 = vadd.f32 %v1578_v18, %v6257_v53  ;;  %v1656_v28 = vadd.f32 %v4684_v23, %v6258_v38  ;;  %v1662_v19 = vadd.f32 %v4684_v23, %v6259_v5  ;;  %v1668_v62 = vadd.f32 %v4684_v23, %v6260_v20 }
 0x7c4   :  { %v1674_v56 = vadd.f32 %v4684_v23, %v6261_v12  ;;  %v1680_v57 = vadd.f32 %v4684_v23, %v6262_v7  ;;  %v1686_v40 = vadd.f32 %v4684_v23, %v6263_v1  ;;  %v1692_v39 = vadd.f32 %v4684_v23, %v6264_v34  ;;  %v6266_v34 = vld [vmem:[#allocation30_spill] sm:$0xff] }
 0x7c5   :  { %v1590_v13 = vmax.f32 %v1579_v32, 0.0  ;;  %v1698_v18 = vadd.f32 %v4684_v23, %v6197_v59  ;;  %v4722_v5 = vmax.f32 %v1790_v60, %v1656_v28  ;;  %v1735_v20 = vmax.f32 %v4634_v46, %v1625_v6  ;;  %v6267_v46 = vld [vmem:[#allocation20_spill] sm:$0xff]  ;;  %v6277_v59 = vld [vmem:[#allocation29_spill] sm:$0xff] }
 0x7c6   :  { %v4725_v38 = vmax.f32 %v1801_v14, %v1662_v19  ;;  %v4727_v12 = vmax.f32 %v1812_v26, %v1668_v62  ;;  %v4729_v53 = vmax.f32 %v1823_v36, %v1674_v56  ;;  %v4731_v7 = vmax.f32 %v1834_v4, %v1680_v57  ;;  %v6268_v62 = vld [vmem:[#allocation27_spill] sm:$0xff]  ;;  %v6272_v19 = vld [vmem:[#allocation68_spill] sm:$0xff] }
 0x7c7   :  { %v4733_v1 = vadd.f32 1e-07, %v1590_v13  ;;  %v4735_v21 = vmax.f32 %v1845_v45, %v1686_v40  ;;  %v4737_v32 = vmax.f32 %v1856_v27, %v1692_v39  ;;  %v1608_v60 = vadd.f32 %v4684_v23, %v6266_v34  ;;  %v6269_v26 = vld [vmem:[#allocation47_spill] sm:$0xff]  ;;  %v6271_v27 = vld [vmem:[#allocation48_spill] sm:$0xff] }
 0x7c8   :  { %v4741_v28 = vmax.f32 %v1867_v30, %v1698_v18  ;;  %v1614_v14 = vadd.f32 %v4684_v23, %v6267_v46  ;;  %v1620_v36 = vadd.f32 %v4684_v23, %v6268_v62  ;;  %v1626_v4 = vadd.f32 %v4684_v23, %v6269_v26  ;;  %v6273_v56 = vld [vmem:[#allocation83_spill] sm:$0xff]  ;;  %v6275_v46 = vld [vmem:[#allocation22_spill] sm:$0xff] }
 0x7c9   :  { %6265 = vst [vmem:[#allocation120_spill] sm:$0xff] %v4733_v1  ;;  %v4751_v45 = vmul.f32 %v4585_v31, %v4733_v1  ;;  %v4755_v6 = vadd.f32 %v4684_v23, %v6271_v27  ;;  %v4759_v30 = vadd.f32 %v4684_v23, %v6272_v19  ;;  %v4763_v57 = vadd.f32 %v4684_v23, %v6273_v56  ;;  %v6274_v27 = vld [vmem:[#allocation86_spill] sm:$0xff]  ;;  %v6276_v34 = vld [vmem:[#allocation35_spill] sm:$0xff] }
 0x7ca   :  { %v1581_v40 = vpop.f32.mrf.mxu0  ;;  %v4767_v39 = vadd.f32 %v4684_v23, %v6189_v54  ;;  %v4769_v13 = vmax.f32 %v1702_v22, %v1608_v60  ;;  %v4771_v18 = vmax.f32 %v1713_v41, %v1614_v14  ;;  %v4773_v26 = vmax.f32 %v1724_v2, %v1620_v36  ;;  %v6279_v22 = vld [vmem:[#allocation62_spill] sm:$0xff] }
 0x7cb   :  { %6270 = vst [vmem:[#allocation121_spill] sm:$0xff] %v4751_v45  ;;  %v1582_v62 = vadd.f32 %v1581_v40, %v6274_v27  ;;  %v1657_v19 = vadd.f32 %v4751_v45, %v6275_v46  ;;  %v1663_v56 = vadd.f32 %v4751_v45, %v6276_v34  ;;  %v1669_v63 = vadd.f32 %v4751_v45, %v6277_v59  ;;  %v6280_v60 = vld [vmem:[#allocation66_spill] sm:$0xff] }
 0x7cc   :  { %v1675_v54 = vadd.f32 %v4751_v45, %v6278_v52  ;;  %v1681_v41 = vadd.f32 %v4751_v45, %v6279_v22  ;;  %v1687_v2 = vadd.f32 %v4751_v45, %v6280_v60  ;;  %v1693_v14 = vadd.f32 %v4751_v45, %v6194_v16 }
 0x7cd   :  { %v1591_v36 = vmax.f32 %v1582_v62, 0.0  ;;  %v1699_v40 = vadd.f32 %v4751_v45, %v3988_v49  ;;  %v1792_v34 = vmax.f32 %v4722_v5, %v1657_v19  ;;  %v4793_v46 = vmax.f32 %v1735_v20, %v1626_v4  ;;  %v6283_v5 = vld [vmem:[#allocation36_spill] sm:$0xff]  ;;  %v6284_v4 = vld [vmem:[#allocation57_spill] sm:$0xff] }
 0x7ce   :  { %v1803_v59 = vmax.f32 %v4725_v38, %v1663_v56  ;;  %v1814_v52 = vmax.f32 %v4727_v12, %v1669_v63  ;;  %v1825_v22 = vmax.f32 %v4729_v53, %v1675_v54  ;;  %v1836_v27 = vmax.f32 %v4731_v7, %v1681_v41  ;;  %v6285_v54 = vld [vmem:[#allocation64_spill] sm:$0xff]  ;;  %v6287_v12 = vld [vmem:[#allocation67_spill] sm:$0xff]  ;;  %v6288_v56 = vld [vmem:[#allocation109_spill] sm:$0xff] }
 0x7cf   :  { %v4799_v60 = vadd.f32 1e-07, %v1591_v36  ;;  %v1847_v16 = vmax.f32 %v4735_v21, %v1687_v2  ;;  %v1858_v62 = vmax.f32 %v4737_v32, %v1693_v14  ;;  %v1609_v49 = vadd.f32 %v4751_v45, %v6282_v35 }
 0x7d0   :  { %v1869_v20 = vmax.f32 %v4741_v28, %v1699_v40  ;;  %v1615_v38 = vadd.f32 %v4751_v45, %v6283_v5  ;;  %v1621_v63 = vadd.f32 %v4751_v45, %v6284_v4  ;;  %v4812_v7 = vadd.f32 %v4751_v45, %v6285_v54  ;;  %v6289_v40 = vld [vmem:[#allocation87_spill] sm:$0xff]  ;;  %v6290_v54 = vld [vmem:[#allocation72_spill] sm:$0xff] }
 0x7d1   :  { %6281 = vst [vmem:[#allocation122_spill] sm:$0xff] %v4799_v60  ;;  %v4816_v21 = vmul.f32 %v4585_v31, %v4799_v60  ;;  %v4820_v53 = vadd.f32 %v4751_v45, %v6287_v12  ;;  %v4824_v32 = vadd.f32 %v4751_v45, %v4042_v55  ;;  %v4828_v28 = vadd.f32 %v4751_v45, %v4022_v47  ;;  %v6291_v4 = vld [vmem:[#allocation52_spill] sm:$0xff]  ;;  %v6292_v5 = vld [vmem:[#allocation75_spill] sm:$0xff] }
 0x7d2   :  { %v1584_v19 = vpop.f32.mrf.mxu0  ;;  %v4832_v41 = vadd.f32 %v4751_v45, %v6288_v56  ;;  %v1704_v2 = vmax.f32 %v4769_v13, %v1609_v49  ;;  %v1715_v14 = vmax.f32 %v4771_v18, %v1615_v38  ;;  %v1726_v36 = vmax.f32 %v4773_v26, %v1621_v63  ;;  %v6295_v13 = vld [vmem:[#allocation102_spill] sm:$0xff] }
 0x7d3   :  { %6286 = vst [vmem:[#allocation123_spill] sm:$0xff] %v4816_v21  ;;  %v1585_v12 = vadd.f32 %v1584_v19, %v6289_v40  ;;  %v1658_v55 = vadd.f32 %v4816_v21, %v6290_v54  ;;  %v1664_v47 = vadd.f32 %v4816_v21, %v6291_v4  ;;  %v1670_v35 = vadd.f32 %v4816_v21, %v6292_v5 }
 0x7d4   :  { %v1676_v56 = vadd.f32 %v4816_v21, %v6293_v43  ;;  %v1682_v49 = vadd.f32 %v4816_v21, %v6294_v0  ;;  %v1688_v26 = vadd.f32 %v4816_v21, %v6295_v13  ;;  %v1694_v18 = vadd.f32 %v4816_v21, %v4204_v15  ;;  %v6297_v13 = vld [vmem:[#allocation65_spill] sm:$0xff] }
 0x7d5   :  { %v1592_v38 = vmax.f32 %v1585_v12, 0.0  ;;  %v1700_v63 = vadd.f32 %v4816_v21, %v4301_v11  ;;  %v1793_v19 = vmax.f32 %v1792_v34, %v1658_v55  ;;  %v1804_v4 = vmax.f32 %v1803_v59, %v1664_v47  ;;  %v6298_v12 = vld [vmem:[#allocation56_spill] sm:$0xff]  ;;  %v6299_v11 = vld [vmem:[#allocation69_spill] sm:$0xff] }
 0x7d6   :  { %v1815_v54 = vmax.f32 %v1814_v52, %v1670_v35  ;;  %v1826_v43 = vmax.f32 %v1825_v22, %v1676_v56  ;;  %v1837_v40 = vmax.f32 %v1836_v27, %v1682_v49  ;;  %v1848_v0 = vmax.f32 %v1847_v16, %v1688_v26  ;;  %v6300_v34 = vld [vmem:[#allocation77_spill] sm:$0xff]  ;;  %v6302_v35 = vld [vmem:[#allocation78_spill] sm:$0xff] }
 0x7d7   :  { %v4856_v24 = vadd.f32 1e-07, %v1592_v38  ;;  %v1859_v1 = vmax.f32 %v1858_v62, %v1694_v18  ;;  %v1610_v60 = vadd.f32 %v4816_v21, %v6297_v13  ;;  %v1870_v15 = vmax.f32 %v1869_v20, %v1700_v63  ;;  %v6301_v16 = vld [vmem:[#allocation105_spill] sm:$0xff]  ;;  %v6305_v20 = vld [vmem:[#allocation94_spill] sm:$0xff]  ;;  %v6307_v18 = vld [vmem:[#allocation63_spill] sm:$0xff] }
 0x7d8   :  { %v1616_v50 = vadd.f32 %v4816_v21, %v6298_v12  ;;  %v1622_v55 = vadd.f32 %v4816_v21, %v6299_v11  ;;  %v4866_v47 = vadd.f32 %v4816_v21, %v6300_v34  ;;  %v4874_v52 = vadd.f32 %v4816_v21, %v6301_v16  ;;  %v6303_v22 = vld [vmem:[#allocation85_spill] sm:$0xff]  ;;  %v6308_v63 = vld [vmem:[#allocation99_spill] sm:$0xff]  ;;  %v6310_v16 = vld [vmem:[#allocation106_spill] sm:$0xff] }
 0x7d9   :  { %6296 = vst [vmem:[#allocation124_spill] sm:$0xff] %v4856_v24  ;;  %v4870_v59 = vmul.f32 %v4585_v31, %v4856_v24  ;;  %v4878_v27 = vadd.f32 %v4816_v21, %v6302_v35  ;;  %v4882_v62 = vadd.f32 %v4816_v21, %v6303_v22  ;;  %v4886_v56 = vadd.f32 %v4816_v21, %v6305_v20  ;;  %v6309_v35 = vld [vmem:[#allocation71_spill] sm:$0xff]  ;;  %v6311_v20 = vld [vmem:[#allocation110_spill] sm:$0xff] }
 0x7da   :  { %v4888_v49 = vmax.f32 %v1704_v2, %v1610_v60  ;;  %v4890_v31 = vmax.f32 %v1715_v14, %v1616_v50  ;;  %v4892_v26 = vmax.f32 %v1726_v36, %v1622_v55 }
 0x7db   :  { %6304 = vst [vmem:[#allocation125_spill] sm:$0xff] %v4882_v62  ;;  %v1659_v38 = vadd.f32 %v4870_v59, %v6307_v18  ;;  %v1665_v5 = vadd.f32 %v4870_v59, %v6308_v63  ;;  %v1671_v22 = vadd.f32 %v4870_v59, %v6309_v35  ;;  %v1677_v34 = vadd.f32 %v4870_v59, %v6310_v16 }
 0x7dc   :  { %6306 = vst [vmem:[#allocation126_spill] sm:$0xff] %v4886_v56  ;;  %v1683_v60 = vadd.f32 %v4870_v59, %v6311_v20  ;;  %v1689_v50 = vadd.f32 %v4870_v59, %v4092_v33  ;;  %v1695_v2 = vadd.f32 %v4870_v59, %v4321_v25  ;;  %v1701_v14 = vadd.f32 %v4870_v59, %v4334_v9 }
 0x7dd   :  { %v1794_v36 = vmax.f32 %v1793_v19, %v1659_v38  ;;  %v1805_v55 = vmax.f32 %v1804_v4, %v1665_v5  ;;  %v1816_v63 = vmax.f32 %v1815_v54, %v1671_v22  ;;  %v1827_v18 = vmax.f32 %v1826_v43, %v1677_v34 }
 0x7de   :  { %v1838_v35 = vmax.f32 %v1837_v40, %v1683_v60  ;;  %v1849_v11 = vmax.f32 %v1848_v0, %v1689_v50  ;;  %v1860_v12 = vmax.f32 %v1859_v1, %v1695_v2  ;;  %v1871_v16 = vmax.f32 %v1870_v15, %v1701_v14 }
 0x7df   :  { %v1795_v13 = vrot.slane %v1794_v36, 4  ;;  %v1806_v24 = vrot.slane %v1805_v55, 4  ;;  %v1817_v20 = vrot.slane %v1816_v63, 4  ;;  %v1828_v10 = vrot.slane %v1827_v18, 4 }
 0x7e0   :  { %v1839_v23 = vrot.slane %v1838_v35, 4  ;;  %v1850_v33 = vrot.slane %v1849_v11, 4  ;;  %v1861_v45 = vrot.slane %v1860_v12, 4  ;;  %v1872_v21 = vrot.slane %v1871_v16, 4 }
 0x7e1   :  { %v1796_v25 = vmax.f32 %v1794_v36, %v1795_v13  ;;  %v1807_v56 = vmax.f32 %v1805_v55, %v1806_v24  ;;  %v1818_v62 = vmax.f32 %v1816_v63, %v1817_v20  ;;  %v1829_v9 = vmax.f32 %v1827_v18, %v1828_v10 }
 0x7e2   :  { %v1840_v19 = vmax.f32 %v1838_v35, %v1839_v23  ;;  %v1851_v5 = vmax.f32 %v1849_v11, %v1850_v33  ;;  %v1862_v4 = vmax.f32 %v1860_v12, %v1861_v45  ;;  %v1873_v43 = vmax.f32 %v1871_v16, %v1872_v21 }
 0x7e3   :  { %v1797_v54 = vrot.slane %v1796_v25, 2  ;;  %v1808_v0 = vrot.slane %v1807_v56, 2  ;;  %v1819_v1 = vrot.slane %v1818_v62, 2  ;;  %v1830_v15 = vrot.slane %v1829_v9, 2 }
 0x7e4   :  { %v1841_v40 = vrot.slane %v1840_v19, 2  ;;  %v1852_v34 = vrot.slane %v1851_v5, 2  ;;  %v1863_v22 = vrot.slane %v1862_v4, 2  ;;  %v1874_v38 = vrot.slane %v1873_v43, 2 }
 0x7e5   :  { %v1798_v60 = vmax.f32 %v1796_v25, %v1797_v54  ;;  %v1809_v50 = vmax.f32 %v1807_v56, %v1808_v0  ;;  %v1820_v2 = vmax.f32 %v1818_v62, %v1819_v1  ;;  %v1831_v14 = vmax.f32 %v1829_v9, %v1830_v15  ;;  %v6314_v54 = vld [vmem:[#allocation95_spill] sm:$0xff]  ;;  %v6315_v1 = vld [vmem:[#allocation108_spill] sm:$0xff] }
 0x7e6   :  { %v1842_v13 = vmax.f32 %v1840_v19, %v1841_v40  ;;  %v1853_v24 = vmax.f32 %v1851_v5, %v1852_v34  ;;  %v1864_v20 = vmax.f32 %v1862_v4, %v1863_v22  ;;  %v1875_v10 = vmax.f32 %v1873_v43, %v1874_v38  ;;  %v6313_v4 = vld [vmem:[#allocation103_spill] sm:$0xff] }
 0x7e7   :  { %v1799_v23 = vrot.slane %v1798_v60, 1  ;;  %v1810_v33 = vrot.slane %v1809_v50, 1  ;;  %v1821_v11 = vrot.slane %v1820_v2, 1  ;;  %v1832_v45 = vrot.slane %v1831_v14, 1 }
 0x7e8   :  { %v1843_v21 = vrot.slane %v1842_v13, 1  ;;  %v1854_v12 = vrot.slane %v1853_v24, 1  ;;  %v1865_v16 = vrot.slane %v1864_v20, 1  ;;  %v1876_v35 = vrot.slane %v1875_v10, 1 }
 0x7e9   :  { %v1800_v18 = vmax.f32 %v1798_v60, %v1799_v23  ;;  %v1811_v63 = vmax.f32 %v1809_v50, %v1810_v33  ;;  %v1822_v36 = vmax.f32 %v1820_v2, %v1821_v11  ;;  %v6312_v25 = vmax.f32 %v4793_v46, %v4812_v7  ;;  %v6316_v46 = vld [vmem:[#allocation101_spill] sm:$0xff]  ;;  %v6317_v60 = vld [vmem:[#allocation111_spill] sm:$0xff] }
 0x7ea   :  { %v1833_v62 = vmax.f32 %v1831_v14, %v1832_v45  ;;  %v1844_v56 = vmax.f32 %v1842_v13, %v1843_v21  ;;  %v1855_v55 = vmax.f32 %v1853_v24, %v1854_v12  ;;  %v1866_v19 = vmax.f32 %v1864_v20, %v1865_v16 }
 0x7eb   :  { %v1738_v9 = vmax.f32 %v6312_v25, %v4866_v47  ;;  %v1901_v5 = vsel %vm1160_vm2, %v1811_v63, %v1800_v18  ;;  %v1611_v43 = vadd.f32 %v4870_v59, %v6313_v4  ;;  %v1617_v0 = vadd.f32 %v4870_v59, %v6314_v54 }
 0x7ec   :  { %v1623_v15 = vadd.f32 %v4870_v59, %v6315_v1  ;;  %v1877_v40 = vmax.f32 %v1875_v10, %v1876_v35  ;;  %v1902_v34 = vsel %vm1162_vm3, %v1822_v36, %v1901_v5  ;;  %v1629_v7 = vadd.f32 %v4870_v59, %v6316_v46 }
 0x7ed   :  { %v1635_v47 = vadd.f32 %v4870_v59, %v4158_v29  ;;  %v1903_v22 = vsel %vm1164_vm4, %v1833_v62, %v1902_v34  ;;  %v1641_v38 = vadd.f32 %v4870_v59, %v4229_v51  ;;  %v1647_v50 = vadd.f32 %v4870_v59, %v6317_v60 }
 0x7ee   :  { %v1706_v2 = vmax.f32 %v4888_v49, %v1611_v43  ;;  %v1904_v14 = vsel %vm1166_vm5, %v1844_v56, %v1903_v22  ;;  %v1717_v13 = vmax.f32 %v4890_v31, %v1617_v0  ;;  %v1728_v24 = vmax.f32 %v4892_v26, %v1623_v15  ;;  %v6319_v22 = vld [vmem:[#allocation126_spill] sm:$0xff] }
 0x7ef   :  { %v1739_v20 = vmax.f32 %v1738_v9, %v1629_v7  ;;  %v1905_v10 = vsel %vm1168_vm6, %v1855_v55, %v1904_v14  ;;  %v1746_v33 = vmax.f32 %v4638_v8, %v4688_v17  ;;  %v1757_v11 = vmax.f32 %v4642_v58, %v4692_v37 }
 0x7f0   :  { %v1707_v23 = vrot.slane %v1706_v2, 4  ;;  %v1906_v45 = vsel %vm1170_vm7, %v1866_v19, %v1905_v10  ;;  %v1718_v21 = vrot.slane %v1717_v13, 4  ;;  %v1729_v49 = vrot.slane %v1728_v24, 4 }
 0x7f1   :  { %v1740_v12 = vrot.slane %v1739_v20, 4  ;;  %v1907_v16 = vsel %vm1172_vm8, %v1877_v40, %v1906_v45  ;;  %v1747_v26 = vmax.f32 %v1746_v33, %v4755_v6  ;;  %v1758_v35 = vmax.f32 %v1757_v11, %v4759_v30 }
 0x7f2   :  { %v1708_v31 = vmax.f32 %v1706_v2, %v1707_v23  ;;  %1924 = vmatpush.msrb.mxu3 %v1907_v16  ;;  %v1719_v18 = vmax.f32 %v1717_v13, %v1718_v21  ;;  %v1730_v63 = vmax.f32 %v1728_v24, %v1729_v49  ;;  %v1768_v8 = vmax.f32 %v4646_v42, %v4696_v48 }
 0x7f3   :  { %v1741_v36 = vmax.f32 %v1739_v20, %v1740_v12  ;;  %v1748_v17 = vmax.f32 %v1747_v26, %v4820_v53  ;;  %v1759_v37 = vmax.f32 %v1758_v35, %v4824_v32  ;;  %v1779_v25 = vmax.f32 %v4667_v44, %v4700_v61 }
 0x7f4   :  { %v1709_v58 = vrot.slane %v1708_v31, 2  ;;  %v1720_v9 = vrot.slane %v1719_v18, 2  ;;  %v1731_v62 = vrot.slane %v1730_v63, 2  ;;  %v1769_v30 = vmax.f32 %v1768_v8, %v4763_v57 }
 0x7f5   :  { %v1742_v6 = vrot.slane %v1741_v36, 2  ;;  %v1749_v55 = vmax.f32 %v1748_v17, %v4874_v52  ;;  %v1760_v19 = vmax.f32 %v1759_v37, %v4878_v27  ;;  %v1780_v42 = vmax.f32 %v1779_v25, %v4767_v39  ;;  %v6318_v52 = vld [vmem:[#allocation125_spill] sm:$0xff] }
 0x7f6   :  { %v1710_v56 = vmax.f32 %v1708_v31, %v1709_v58  ;;  %v1653_v48 = vadd.f32 %v4870_v59, %v4310_v3  ;;  %v1721_v53 = vmax.f32 %v1719_v18, %v1720_v9  ;;  %v1732_v32 = vmax.f32 %v1730_v63, %v1731_v62 }
 0x7f7   :  { %v1770_v5 = vmax.f32 %v1769_v30, %v4828_v28  ;;  %v1750_v61 = vmax.f32 %v1749_v55, %v1635_v47  ;;  %v1761_v43 = vmax.f32 %v1760_v19, %v1641_v38  ;;  %v1781_v0 = vmax.f32 %v1780_v42, %v4832_v41  ;;  %v3342_v19 = vld [vmem:[%s6200_s21] sm:$0xff]  ;;  %v3343_v42 = vld [vmem:[%s6200_s21 + $0x8] sm:$0xff] }
 0x7f8   :  { %v1711_v44 = vrot.slane %v1710_v56, 1  ;;  %v1722_v57 = vrot.slane %v1721_v53, 1  ;;  %v1733_v15 = vrot.slane %v1732_v32, 1  ;;  %v1743_v40 = vmax.f32 %v1741_v36, %v1742_v6 }
 0x7f9   :  { %v1771_v34 = vmax.f32 %v1770_v5, %v6318_v52  ;;  %v1751_v7 = vrot.slane %v1750_v61, 4  ;;  %v1762_v39 = vrot.slane %v1761_v43, 4  ;;  %v1782_v2 = vmax.f32 %v1781_v0, %v6319_v22  ;;  %v3347_v5 = vld [vmem:[%s6200_s21 + $0x28] sm:$0xff]  ;;  %v6321_v52 = vld [vmem:[#allocation121_spill] sm:$0xff] }
 0x7fa   :  { %v1712_v27 = vmax.f32 %v1710_v56, %v1711_v44  ;;  %v1723_v14 = vmax.f32 %v1721_v53, %v1722_v57  ;;  %v1734_v24 = vmax.f32 %v1732_v32, %v1733_v15  ;;  %v1744_v47 = vrot.slane %v1743_v40, 1  ;;  %v3345_v53 = vld [vmem:[%s6200_s21 + $0x18] sm:$0xff]  ;;  %v3346_v32 = vld [vmem:[%s6200_s21 + $0x20] sm:$0xff]  ;;  %v6320_v15 = vld [vmem:[#allocation123_spill] sm:$0xff] }
 0x7fb   :  { %v1772_v13 = vmax.f32 %v1771_v34, %v1647_v50  ;;  %v1752_v20 = vmax.f32 %v1750_v61, %v1751_v7  ;;  %v1763_v28 = vmax.f32 %v1761_v43, %v1762_v39  ;;  %v1783_v10 = vmax.f32 %v1782_v2, %v1653_v48  ;;  %v3344_v48 = vld [vmem:[%s6200_s21 + $0x10] sm:$0xff]  ;;  %v6322_v39 = vld [vmem:[#allocation119_spill] sm:$0xff] }
 0x7fc   :  { %v1894_v41 = vsel %vm1160_vm2, %v1723_v14, %v1712_v27  ;;  %v1745_v31 = vmax.f32 %v1743_v40, %v1744_v47  ;;  %v3095_v14 = vld [vmem:[%s5821_s10 + $0xf8] sm:$0xff]  ;;  %v3093_v47 = vld [vmem:[%s5821_s10 + $0xe8] sm:$0xff] }
 0x7fd   :  { %v1773_v38 = vrot.slane %v1772_v13, 4  ;;  %v1753_v23 = vrot.slane %v1752_v20, 2  ;;  %v1764_v33 = vrot.slane %v1763_v28, 2  ;;  %v1784_v11 = vrot.slane %v1783_v10, 4  ;;  %2071 = vmatpush.msra.mxu0 %v3095_v14 }
 0x7fe   :  { %v1895_v16 = vsel %vm1162_vm3, %v1734_v24, %v1894_v41  ;;  %v6323_v24 = vld [vmem:[#allocation117_spill] sm:$0xff] }
 0x7ff   :  { %v1774_v45 = vmax.f32 %v1772_v13, %v1773_v38  ;;  %v1754_v21 = vmax.f32 %v1752_v20, %v1753_v23  ;;  %v1765_v49 = vmax.f32 %v1763_v28, %v1764_v33  ;;  %v1785_v12 = vmax.f32 %v1783_v10, %v1784_v11  ;;  %v3094_v13 = vld [vmem:[%s5821_s10 + $0xf0] sm:$0xff]  ;;  %v3092_v23 = vld [vmem:[%s5821_s10 + $0xe0] sm:$0xff] }
 0x800   :  { %v1896_v36 = vsel %vm1164_vm4, %v1745_v31, %v1895_v16  ;;  %2072 = vmatpush.msra.mxu0 %v3094_v13  ;;  %v6326_v31 = vld [vmem:[#allocation122_spill] sm:$0xff] }
 0x801   :  { %v1775_v26 = vrot.slane %v1774_v45, 2  ;;  %v1755_v50 = vrot.slane %v1754_v21, 1  ;;  %v1766_v35 = vrot.slane %v1765_v49, 1  ;;  %v1786_v18 = vrot.slane %v1785_v12, 2 }
 0x802   :  { %2073 = vmatpush.msra.mxu0 %v3093_v47 }
 0x803   :  { %v1776_v63 = vmax.f32 %v1774_v45, %v1775_v26  ;;  %v1756_v8 = vmax.f32 %v1754_v21, %v1755_v50  ;;  %v1787_v58 = vmax.f32 %v1785_v12, %v1786_v18  ;;  %v1767_v17 = vmax.f32 %v1765_v49, %v1766_v35  ;;  %v6325_v49 = vld [vmem:[#allocation124_spill] sm:$0xff] }
 0x804   :  { %2074 = vmatpush.msra.mxu0 %v3092_v23  ;;  %v6327_v35 = vld [vmem:[#allocation120_spill] sm:$0xff] }
 0x805   :  { %v1777_v37 = vrot.slane %v1776_v63, 1  ;;  %v1788_v25 = vrot.slane %v1787_v58, 1  ;;  %v1897_v9 = vsel %vm1166_vm5, %v1756_v8, %v1896_v36  ;;  %v6328_v36 = vld [vmem:[#allocation118_spill] sm:$0xff] }
 0x806   :  { %v1898_v6 = vsel %vm1168_vm6, %v1767_v17, %v1897_v9  ;;  %v6329_v17 = vld [vmem:[#allocation116_spill] sm:$0xff] }
 0x807   :  { %v1778_v62 = vmax.f32 %v1776_v63, %v1777_v37  ;;  %v1789_v30 = vmax.f32 %v1787_v58, %v1788_v25  ;;  %v6330_v25 = vld [vmem:[#allocation8_spill] sm:$0xff] }
 0x809   :  { %v1899_v56 = vsel %vm1170_vm7, %v1778_v62, %v1898_v6  ;;  %v3348_v62 = vld [vmem:[%s5816_s5] sm:$0xff]  ;;  %v3349_v6 = vld [vmem:[%s5816_s5 + $0x8] sm:$0xff] }
 0x80a   :  { %v1900_v55 = vsel %vm1172_vm8, %v1789_v30, %v1899_v56  ;;  %v3091_v30 = vld [vmem:[%s5821_s10 + $0xd8] sm:$0xff]  ;;  %v3090_v56 = vld [vmem:[%s5821_s10 + $0xd0] sm:$0xff] }
 0x80b   :  { %1925 = vmatpush.msrb.mxu3 %v1900_v55  ;;  %2075 = vmatpush.msra.mxu0 %v3091_v30  ;;  %v3089_v55 = vld [vmem:[%s5821_s10 + $0xc8] sm:$0xff] }
 0x80c   :  { %3070 = vmatmul.msk.f32.vlgmr.msrb.gmra.mxu3 %vm799_vm1, %v3342_v19  ;;  %v3088_v19 = vld [vmem:[%s5821_s10 + $0xc0] sm:$0xff] }
 0x80d   :  { %2076 = vmatpush.msra.mxu0 %v3090_v56 }
 0x80f   :  { %2077 = vmatpush.msra.mxu0 %v3089_v55 }
 0x811   :  { %2078 = vmatpush.msra.mxu0 %v3088_v19 }
 0x814   :  { %3071 = vmatmul.msk.f32.gmra.mxu3 %vm799_vm1, %v3343_v42  ;;  %v3087_v42 = vld [vmem:[%s5821_s10 + $0xb8] sm:$0xff] }
 0x815   :  { %2079 = vmatpush.msra.mxu0 %v3087_v42 }
 0x81c   :  { %3072 = vmatmul.msk.f32.gmra.mxu3 %vm799_vm1, %v3344_v48  ;;  %v3086_v48 = vld [vmem:[%s5821_s10 + $0xb0] sm:$0xff] }
 0x81d   :  { %2080 = vmatpush.msra.mxu0 %v3086_v48 }
 0x824   :  { %3073 = vmatmul.msk.f32.gmra.mxu3 %vm799_vm1, %v3345_v53  ;;  %v3085_v53 = vld [vmem:[%s5821_s10 + $0xa8] sm:$0xff] }
 0x825   :  { %2081 = vmatpush.msra.mxu0 %v3085_v53 }
 0x82c   :  { %3074 = vmatmul.msk.f32.gmra.mxu3 %vm799_vm1, %v3346_v32  ;;  %v3084_v32 = vld [vmem:[%s5821_s10 + $0xa0] sm:$0xff] }
 0x82d   :  { %2082 = vmatpush.msra.mxu0 %v3084_v32 }
 0x834   :  { %3075 = vmatmul.msk.f32.gmra.mxu3 %vm799_vm1, %v3347_v5  ;;  %v3083_v5 = vld [vmem:[%s5821_s10 + $0x98] sm:$0xff] }
 0x835   :  { %2083 = vmatpush.msra.mxu0 %v3083_v5 }
 0x88f   :  { %v1927_v44 = vpop.f32.mrf.mxu3 }
 0x897   :  { %v1930_v61 = vpop.f32.mrf.mxu3 }
 0x898   :  { %v1946_v20 = vsub.f32 %v6323_v24, %v1930_v61  ;;  %v3081_v61 = vld [vmem:[%s5821_s10 + $0x88] sm:$0xff] }
 0x89a   :  { %v1953_v33 = vmul.f32 1.442695, %v1946_v20 }
 0x89f   :  { %v1933_v43 = vpop.f32.mrf.mxu3 }
 0x8a0   :  { %v1947_v22 = vsub.f32 %v6322_v39, %v1933_v43  ;;  %v3080_v43 = vld [vmem:[%s5821_s10 + $0x80] sm:$0xff] }
 0x8a2   :  { %v1955_v41 = vmul.f32 1.442695, %v1947_v22 }
 0x8a7   :  { %v1936_v0 = vpop.f32.mrf.mxu3 }
 0x8a8   :  { %v1948_v34 = vsub.f32 %v6321_v52, %v1936_v0 }
 0x8aa   :  { %v1957_v28 = vmul.f32 1.442695, %v1948_v34 }
 0x8af   :  { %v1939_v57 = vpop.f32.mrf.mxu3 }
 0x8b0   :  { %v1949_v40 = vsub.f32 %v6320_v15, %v1939_v57 }
 0x8b2   :  { %v1959_v27 = vmul.f32 1.442695, %v1949_v40 }
 0x8b4   :  { %3286 = vpow2.f32 %v1959_v27 }
 0x8b7   :  { %v1942_v7 = vpop.f32.mrf.mxu3 }
 0x8b8   :  { %v1950_v2 = vsub.f32 %v4870_v59, %v1942_v7  ;;  %v6324_v59 = vld [vmem:[#allocation9_spill] sm:$0xff] }
 0x8b9   :  { %v1945_v38 = vsub.f32 %v6324_v59, %v1927_v44  ;;  %v3082_v44 = vld [vmem:[%s5821_s10 + $0x90] sm:$0xff] }
 0x8ba   :  { %v1961_v10 = vmul.f32 1.442695, %v1950_v2  ;;  %v3287_v45 = vpop.eup %3286  ;;  %2084 = vmatpush.msra.mxu0 %v3082_v44  ;;  %v3113_v44 = vld [vmem:[%s5825_s14 + $0xf0] sm:$0xff] }
 0x8bb   :  { %v1951_v11 = vmul.f32 1.442695, %v1945_v38  ;;  %v1967_v26 = vmul.f32 %v3287_v45, %v6326_v31 }
 0x8bc   :  { %3288 = vpow2.f32 %v1961_v10  ;;  %2085 = vmatpush.msra.mxu0 %v3081_v61  ;;  %v3112_v61 = vld [vmem:[%s5825_s14 + $0xe8] sm:$0xff] }
 0x8bd   :  { %3290 = vpow2.f32 %v1957_v28 }
 0x8be   :  { %3292 = vpow2.f32 %v1955_v41  ;;  %2086 = vmatpush.msra.mxu0 %v3080_v43  ;;  %v6331_v41 = vld [vmem:[#allocation91_spill] sm:$0xff]  ;;  %v3111_v43 = vld [vmem:[%s5825_s14 + $0xe0] sm:$0xff] }
 0x8bf   :  { %3294 = vpow2.f32 %v1953_v33  ;;  %v6332_v23 = vmax.f32 %v6331_v41, 0.0 }
 0x8c0   :  { %3296 = vpow2.f32 %v1951_v11 }
 0x8c2   :  { %v3289_v21 = vpop.eup %3288 }
 0x8c3   :  { %1979 = vmatpush.msra.mxu1 %v3289_v21  ;;  %v1968_v12 = vmul.f32 %v3289_v21, %v6325_v49  ;;  %v3291_v16 = vpop.eup %3290 }
 0x8c4   :  { %v3293_v50 = vpop.eup %3292  ;;  %v1966_v18 = vmul.f32 %v3291_v16, %v6327_v35 }
 0x8c5   :  { %1980 = vmatpush.msra.mxu1 %v3287_v45  ;;  %2002 = vmatpush.msra.mxu2 %v1968_v12  ;;  %v3295_v63 = vpop.eup %3294  ;;  %v1965_v8 = vmul.f32 %v3293_v50, %v6328_v36 }
 0x8c6   :  { %v3297_v58 = vpop.eup %3296  ;;  %v1964_v37 = vmul.f32 %v3295_v63, %v6329_v17 }
 0x8c7   :  { %1981 = vmatpush.msra.mxu1 %v3291_v16  ;;  %2003 = vmatpush.msra.mxu2 %v1967_v26  ;;  %v1963_v9 = vmul.f32 %v3297_v58, %v6330_v25 }
 0x8c9   :  { %1982 = vmatpush.msra.mxu1 %v3293_v50  ;;  %2004 = vmatpush.msra.mxu2 %v1966_v18  ;;  %v6333_v50 = vld [vmem:[#allocation90_spill] sm:$0xff] }
 0x8ca   :  { %v6334_v35 = vmax.f32 %v6333_v50, 0.0 }
 0x8cb   :  { %1983 = vmatpush.msra.mxu1 %v3295_v63  ;;  %2005 = vmatpush.msra.mxu2 %v1965_v8  ;;  %v3249_v63 = vld [vmem:[%s5822_s11 + $0x1] ss:$0 sm:$0xff] }
 0x8cd   :  { %1984 = vmatpush.msra.mxu1 %v3297_v58  ;;  %2006 = vmatpush.msra.mxu2 %v1964_v37  ;;  %v6335_v58 = vld [vmem:[#allocation98_spill] sm:$0xff] }
 0x8ce   :  { %3076 = vmatmul.msk.f32.vlgmr.msra.gmra.mxu1 %vm1260_vm9, %v3348_v62 }
 0x8cf   :  { %2007 = vmatpush.msra.mxu2 %v1963_v9 }
 0x8d0   :  { %3078 = vmatmul.msk.f32.vlgmr.msra.gmra.mxu2 %vm1260_vm9, %v3348_v62  ;;  %v3114_v62 = vld [vmem:[%s5825_s14 + $0xf8] sm:$0xff] }
 0x8d1   :  { %2176 = vmatpush.msrb.mxu1 %v3114_v62 }
 0x8d3   :  { %2177 = vmatpush.msrb.mxu1 %v3113_v44 }
 0x8d5   :  { %2178 = vmatpush.msrb.mxu1 %v3112_v61 }
 0x8d6   :  { %3077 = vmatmul.msk.f32.gmra.mxu1 %vm1260_vm9, %v3349_v6 }
 0x8d7   :  { %2179 = vmatpush.msrb.mxu1 %v3111_v43 }
 0x8d8   :  { %3079 = vmatmul.msk.f32.gmra.mxu2 %vm1260_vm9, %v3349_v6 }
 0x94b   :  { %v1986_v0 = vpop.f32.mrf.mxu1 }
 0x94c   :  { %v2015_v57 = vmax.f32 %v1986_v0, 1e-16  ;;  %v3110_v0 = vld [vmem:[%s5825_s14 + $0xd8] sm:$0xff] }
 0x94d   :  { %2180 = vmatpush.msrb.mxu1 %v3110_v0 }
 0x94e   :  { %3298 = vrcp.f32 %v2015_v57  ;;  %v2028_v7 = vand.u32 2147483648, %v2015_v57  ;;  %v2026_v22 = vand.u32 2147483647, %v2015_v57  ;;  %vm2022_vm12 = vweird.f32 %v2015_v57 }
 0x950   :  { %v2029_v24 = vor.u32 1.1754944e-38, %v2028_v7  ;;  %vm2027_vm14 = vcmp.eq.f32.partialorder %v2026_v22, 8.507059e+37  ;;  %v3106_v7 = vld [vmem:[%s5825_s14 + $0xb8] sm:$0xff]  ;;  %v3104_v22 = vld [vmem:[%s5825_s14 + $0xa8] sm:$0xff] }
 0x953   :  { %v1989_v15 = vpop.f32.mrf.mxu1  ;;  %v2009_v2 = vpop.f32.mrf.mxu2 }
 0x954   :  { %v3299_v40 = vpop.eup %3298  ;;  %v2016_v52 = vmax.f32 %v1989_v15, 1e-16  ;;  %v3108_v15 = vld [vmem:[%s5825_s14 + $0xc8] sm:$0xff] }
 0x955   :  { %v2018_v34 = vmul.f32 %v3299_v40, %v2015_v57  ;;  %vm2023_vm11 = vweird.f32 %v3299_v40  ;;  %v3109_v57 = vld [vmem:[%s5825_s14 + $0xd0] sm:$0xff] }
 0x956   :  { %3300 = vrcp.f32 %v2016_v52  ;;  %vm2024_vm13 = vmor %vm2022_vm12, %vm2023_vm11  ;;  %v2043_v38 = vand.u32 2147483648, %v2016_v52  ;;  %v2041_v45 = vand.u32 2147483647, %v2016_v52  ;;  %vm2037_vm0 = vweird.f32 %v2016_v52  ;;  %2181 = vmatpush.msrb.mxu1 %v3109_v57 }
 0x957   :  { %v2019_v27 = vsub.f32 1.0, %v2018_v34  ;;  %v3107_v34 = vld [vmem:[%s5825_s14 + $0xc0] sm:$0xff] }
 0x958   :  { %v2044_v12 = vor.u32 1.1754944e-38, %v2043_v38  ;;  %vm2042_vm11 = vcmp.eq.f32.partialorder %v2041_v45, 8.507059e+37  ;;  %2182 = vmatpush.msrb.mxu1 %v3108_v15  ;;  %v3100_v38 = vld [vmem:[%s5825_s14 + $0x88] sm:$0xff] }
 0x959   :  { %v2020_v39 = vmul.f32 %v3299_v40, %v2019_v27 }
 0x95a   :  { %2183 = vmatpush.msrb.mxu1 %v3107_v34 }
 0x95b   :  { %v2021_v14 = vadd.f32 %v3299_v40, %v2020_v39  ;;  %v2012_v49 = vpop.f32.mrf.mxu2  ;;  %v3105_v39 = vld [vmem:[%s5825_s14 + $0xb0] sm:$0xff] }
 0x95c   :  { %v3301_v13 = vpop.eup %3300  ;;  %2184 = vmatpush.msrb.mxu1 %v3106_v7 }
 0x95d   :  { %v2025_v20 = vsel %vm2024_vm13, %v3299_v40, %v2021_v14  ;;  %v2033_v28 = vmul.f32 %v3301_v13, %v2016_v52  ;;  %vm2038_vm15 = vweird.f32 %v3301_v13 }
 0x95e   :  { %v2030_v10 = vsel %vm2027_vm14, %v2029_v24, %v2025_v20  ;;  %vm2039_vm10 = vmor %vm2037_vm0, %vm2038_vm15  ;;  %2185 = vmatpush.msrb.mxu1 %v3105_v39 }
 0x95f   :  { %v2031_v47 = vmul.f32 %v2030_v10, %v2009_v2  ;;  %v2034_v59 = vsub.f32 1.0, %v2033_v28  ;;  %v3102_v28 = vld [vmem:[%s5825_s14 + $0x98] sm:$0xff] }
 0x960   :  { %2186 = vmatpush.msrb.mxu1 %v3104_v22 }
 0x961   :  { %v2047_v33 = vadd.f32 %v2031_v47, %v6332_v23  ;;  %v2035_v11 = vmul.f32 %v3301_v13, %v2034_v59  ;;  %v3101_v47 = vld [vmem:[%s5825_s14 + $0x90] sm:$0xff]  ;;  %v3099_v23 = vld [vmem:[%s5825_s14 + $0x80] sm:$0xff] }
 0x963   :  { %2087 = vmatmul.f32.vlgmr.msra.gmra.mxu0 %v2047_v33  ;;  %v2036_v21 = vadd.f32 %v3301_v13, %v2035_v11 }
 0x965   :  { %v2040_v16 = vsel %vm2039_vm10, %v3301_v13, %v2036_v21  ;;  %v3103_v13 = vld [vmem:[%s5825_s14 + $0xa0] sm:$0xff] }
 0x966   :  { %v2045_v31 = vsel %vm2042_vm11, %v2044_v12, %v2040_v16  ;;  %2187 = vmatpush.msrb.mxu1 %v3103_v13 }
 0x967   :  { %v2046_v26 = vmul.f32 %v2045_v31, %v2012_v49  ;;  %v3250_v49 = vld [vmem:[%s5823_s12 + $0x1] ss:$0 sm:$0xff] }
 0x968   :  { %2188 = vmatpush.msrb.mxu1 %v3102_v28 }
 0x969   :  { %v2048_v18 = vadd.f32 %v2046_v26, %v6334_v35  ;;  %v3251_v26 = vld [vmem:[%s5824_s13 + $0x1] ss:$0 sm:$0xff] }
 0x96a   :  { %2189 = vmatpush.msrb.mxu1 %v3101_v47 }
 0x96b   :  { %2090 = vmatmul.f32.gmra.mxu0 %v2048_v18 }
 0x96c   :  { %2190 = vmatpush.msrb.mxu1 %v3100_v38 }
 0x96e   :  { %2191 = vmatpush.msrb.mxu1 %v3099_v23 }
 0x9e0   :  { %v2088_v36 = vpop.f32.mrf.mxu0 }
 0x9e1   :  { %v2089_v8 = vadd.f32 %v3249_v63, %v2088_v36 }
 0x9e3   :  { %v2098_v17 = vmul.f32 %v6335_v58, %v2089_v8 }
 0x9e5   :  { %2100 = vadd.xlane.f32.xlu0 %v2098_v17 }
 0x9e8   :  { %v2091_v37 = vpop.f32.mrf.mxu0 }
 0x9e9   :  { %v2092_v25 = vadd.f32 %v3249_v63, %v2091_v37 }
 0x9eb   :  { %v2099_v9 = vmul.f32 %v6335_v58, %v2092_v25 }
 0x9ed   :  { %2102 = vadd.xlane.f32.xlu1 %v2099_v9 }
 0xa58   :  { %v2101_v6 = vpop.xlane.xlu0 %2100 }
 0xa59   :  { %v2104_v30 = vmul.f32 0.015625, %v2101_v6  ;;  %v3252_v6 = vld [vmem:[%s5826_s15 + $0x1] ss:$0 sm:$0xff] }
 0xa5b   :  { %v2106_v56 = vsub.f32 %v2089_v8, %v2104_v30 }
 0xa5d   :  { %v2108_v55 = vmul.f32 %v6335_v58, %v2106_v56 }
 0xa5f   :  { %v2110_v19 = vmul.f32 %v2108_v55, %v2108_v55 }
 0xa60   :  { %v2103_v42 = vpop.xlane.xlu1 %2102 }
 0xa61   :  { %v2105_v48 = vmul.f32 0.015625, %v2103_v42  ;;  %2112 = vadd.xlane.f32.xlu2 %v2110_v19  ;;  %v6338_v42 = vld [vmem:[#allocation96_spill] sm:$0xff] }
 0xa63   :  { %v2107_v53 = vsub.f32 %v2092_v25, %v2105_v48 }
 0xa65   :  { %v5075_v32 = vmul.f32 %v6335_v58, %v2107_v53  ;;  %v6414_v58 = vld [vmem:[#allocation46_spill] sm:$0xff] }
 0xa67   :  { %v2111_v5 = vmul.f32 %v5075_v32, %v5075_v32 }
 0xa69   :  { %2114 = vadd.xlane.f32.xlu0 %v2111_v5 }
 0xad4   :  { %v2113_v40 = vpop.xlane.xlu2 %2112 }
 0xad5   :  { %v2116_v52 = vmul.f32 0.015625, %v2113_v40 }
 0xad7   :  { %v2118_v27 = vadd.f32 1e-05, %v2116_v52 }
 0xad9   :  { %3302 = vrsqrt.f32 %v2118_v27  ;;  %vm2126_vm13 = vweird.f32 %v2118_v27 }
 0xadc   :  { %v2115_v2 = vpop.xlane.xlu0 %2114 }
 0xadd   :  { %v2117_v14 = vmul.f32 0.015625, %v2115_v2 }
 0xadf   :  { %v3303_v24 = vpop.eup %3302  ;;  %v2119_v20 = vadd.f32 1e-05, %v2117_v14 }
 0xae0   :  { %v2121_v10 = vmul.f32 %v3303_v24, %v2118_v27  ;;  %vm2127_vm12 = vweird.f32 %v3303_v24 }
 0xae1   :  { %3304 = vrsqrt.f32 %v2119_v20  ;;  %vm2128_vm14 = vmor %vm2126_vm13, %vm2127_vm12  ;;  %vm2136_vm0 = vweird.f32 %v2119_v20 }
 0xae2   :  { %v2122_v59 = vmul.f32 %v3303_v24, %v2121_v10 }
 0xae4   :  { %v2123_v41 = vmul.f32 0.5, %v2122_v59 }
 0xae6   :  { %v2124_v33 = vsub.f32 1.5, %v2123_v41 }
 0xae7   :  { %v3305_v11 = vpop.eup %3304 }
 0xae8   :  { %v2125_v45 = vmul.f32 %v3303_v24, %v2124_v33  ;;  %v2131_v21 = vmul.f32 %v3305_v11, %v2119_v20  ;;  %vm2137_vm15 = vweird.f32 %v3305_v11 }
 0xae9   :  { %vm2138_vm10 = vmor %vm2136_vm0, %vm2137_vm15 }
 0xaea   :  { %v2129_v12 = vsel %vm2128_vm14, %v3303_v24, %v2125_v45  ;;  %v2132_v16 = vmul.f32 %v3305_v11, %v2131_v21 }
 0xaeb   :  { %v2140_v31 = vmul.f32 %v2129_v12, %v2108_v55  ;;  %v6336_v55 = vld [vmem:[#allocation93_spill] sm:$0xff]  ;;  %v3253_v12 = vld [vmem:[%s5827_s16 + $0x2] ss:$0 sm:$0xff] }
 0xaec   :  { %v2133_v50 = vmul.f32 0.5, %v2132_v16 }
 0xaed   :  { %v2145_v35 = vmul.f32 %v3250_v49, %v2140_v31 }
 0xaee   :  { %v2134_v18 = vsub.f32 1.5, %v2133_v50 }
 0xaef   :  { %v2150_v63 = vadd.f32 %v3251_v26, %v2145_v35  ;;  %v3254_v35 = vld [vmem:[%s5828_s17 + $0x2] ss:$0 sm:$0xff] }
 0xaf0   :  { %v2135_v36 = vmul.f32 %v3305_v11, %v2134_v18 }
 0xaf1   :  { %v2152_v8 = vmax.f32 %v2150_v63, 0.0 }
 0xaf2   :  { %v2139_v17 = vsel %vm2138_vm10, %v3305_v11, %v2135_v36 }
 0xaf3   :  { %2192 = vmatmul.f32.vlgmr.msrb.gmra.mxu1 %v2152_v8  ;;  %v2141_v37 = vmul.f32 %v2139_v17, %v5075_v32  ;;  %v6339_v32 = vld [vmem:[#allocation92_spill] sm:$0xff] }
 0xaf5   :  { %v2146_v25 = vmul.f32 %v3250_v49, %v2141_v37 }
 0xaf7   :  { %v2151_v9 = vadd.f32 %v3251_v26, %v2146_v25  ;;  %v3350_v25 = vld [vmem:[%s6059_s30] sm:$0xff] }
 0xaf9   :  { %v2153_v62 = vmax.f32 %v2151_v9, 0.0  ;;  %v3351_v9 = vld [vmem:[%s6059_s30 + $0x8] sm:$0xff] }
 0xafb   :  { %2195 = vmatmul.f32.gmra.mxu1 %v2153_v62  ;;  %v3352_v62 = vld [vmem:[%s6059_s30 + $0x10] sm:$0xff] }
 0xb70   :  { %v2193_v30 = vpop.f32.mrf.mxu1 }
 0xb71   :  { %v2194_v56 = vadd.f32 %v3252_v6, %v2193_v30  ;;  %v3354_v30 = vld [vmem:[%s6059_s30 + $0x20] sm:$0xff] }
 0xb73   :  { %v5135_v19 = vadd.f32 %v2194_v56, %v6336_v55  ;;  %v3355_v56 = vld [vmem:[%s6059_s30 + $0x28] sm:$0xff] }
 0xb75   :  { %6337 = vst [vmem:[#allocation103_spill] sm:$0xff] %v5135_v19  ;;  %v2205_v48 = vmul.f32 %v6338_v42, %v5135_v19 }
 0xb77   :  { %2207 = vadd.xlane.f32.xlu2 %v2205_v48  ;;  %v6343_v48 = vld [vmem:[#allocation80_spill] sm:$0xff] }
 0xb78   :  { %v2196_v53 = vpop.f32.mrf.mxu1 }
 0xb79   :  { %v2197_v5 = vadd.f32 %v3252_v6, %v2196_v53  ;;  %v3353_v6 = vld [vmem:[%s6059_s30 + $0x18] sm:$0xff] }
 0xb7b   :  { %v5140_v44 = vadd.f32 %v2197_v5, %v6339_v32 }
 0xb7d   :  { %6340 = vst [vmem:[#allocation95_spill] sm:$0xff] %v5140_v44  ;;  %v2206_v61 = vmul.f32 %v6338_v42, %v5140_v44 }
 0xb7f   :  { %2209 = vadd.xlane.f32.xlu1 %v2206_v61  ;;  %v5191_v61 = vstv %s3118_s24 }
 0xbea   :  { %v2208_v43 = vpop.xlane.xlu2 %2207 }
 0xbeb   :  { %v2211_v0 = vmul.f32 0.03125, %v2208_v43 }
 0xbed   :  { %v2213_v57 = vsub.f32 %v5135_v19, %v2211_v0 }
 0xbef   :  { %v2215_v15 = vmul.f32 %v6338_v42, %v2213_v57  ;;  %v6346_v57 = vld [vmem:[#allocation79_spill] sm:$0xff] }
 0xbf1   :  { %v2217_v40 = vmul.f32 %v2215_v15, %v2215_v15 }
 0xbf2   :  { %v2210_v52 = vpop.xlane.xlu1 %2209 }
 0xbf3   :  { %v2212_v34 = vmul.f32 0.03125, %v2210_v52  ;;  %2219 = vadd.xlane.f32.xlu1 %v2217_v40  ;;  %v6347_v52 = vld [vmem:[#allocation28_spill] sm:$0xff] }
 0xbf5   :  { %v2214_v27 = vsub.f32 %v5140_v44, %v2212_v34  ;;  %v6408_v44 = vld [vmem:[#allocation42_spill] sm:$0xff] }
 0xbf7   :  { %v2216_v7 = vmul.f32 %v6338_v42, %v2214_v27 }
 0xbf9   :  { %v2218_v39 = vmul.f32 %v2216_v7, %v2216_v7 }
 0xbfb   :  { %2221 = vadd.xlane.f32.xlu0 %v2218_v39 }
 0xc66   :  { %v2220_v22 = vpop.xlane.xlu1 %2219 }
 0xc67   :  { %v2223_v2 = vmul.f32 0.03125, %v2220_v22  ;;  %v6350_v22 = vld [vmem:[#allocation10_spill] sm:$0xff] }
 0xc69   :  { %v2225_v14 = vadd.f32 1e-05, %v2223_v2 }
 0xc6b   :  { %3306 = vrsqrt.f32 %v2225_v14  ;;  %vm2233_vm12 = vweird.f32 %v2225_v14 }
 0xc6e   :  { %v2222_v13 = vpop.xlane.xlu0 %2221 }
 0xc6f   :  { %v2224_v24 = vmul.f32 0.03125, %v2222_v13 }
 0xc71   :  { %v3307_v20 = vpop.eup %3306  ;;  %v2226_v28 = vadd.f32 1e-05, %v2224_v24  ;;  %v6352_v24 = vld [vmem:[#allocation18_spill] sm:$0xff] }
 0xc72   :  { %v2228_v10 = vmul.f32 %v3307_v20, %v2225_v14  ;;  %vm2234_vm11 = vweird.f32 %v3307_v20  ;;  %v6351_v14 = vld [vmem:[#allocation14_spill] sm:$0xff] }
 0xc73   :  { %3308 = vrsqrt.f32 %v2226_v28  ;;  %vm2235_vm13 = vmor %vm2233_vm12, %vm2234_vm11  ;;  %vm2243_vm15 = vweird.f32 %v2226_v28 }
 0xc74   :  { %v2229_v47 = vmul.f32 %v3307_v20, %v2228_v10 }
 0xc76   :  { %v2230_v59 = vmul.f32 0.5, %v2229_v47  ;;  %v6354_v47 = vld [vmem:[#allocation43_spill] sm:$0xff] }
 0xc78   :  { %v2231_v38 = vsub.f32 1.5, %v2230_v59 }
 0xc79   :  { %v3309_v41 = vpop.eup %3308 }
 0xc7a   :  { %v2232_v23 = vmul.f32 %v3307_v20, %v2231_v38  ;;  %v2238_v33 = vmul.f32 %v3309_v41, %v2226_v28  ;;  %vm2244_vm14 = vweird.f32 %v3309_v41  ;;  %v6353_v28 = vld [vmem:[#allocation37_spill] sm:$0xff] }
 0xc7b   :  { %vm2245_vm0 = vmor %vm2243_vm15, %vm2244_vm14  ;;  %v6355_v38 = vld [vmem:[#allocation45_spill] sm:$0xff] }
 0xc7c   :  { %v2239_v11 = vmul.f32 %v3309_v41, %v2238_v33  ;;  %v2236_v45 = vsel %vm2235_vm13, %v3307_v20, %v2232_v23  ;;  %v6357_v33 = vld [vmem:[#allocation19_spill] sm:$0xff] }
 0xc7d   :  { %v2247_v16 = vmul.f32 %v2236_v45, %v2215_v15  ;;  %v6358_v45 = vld [vmem:[#allocation31_spill] sm:$0xff] }
 0xc7e   :  { %v2240_v21 = vmul.f32 0.5, %v2239_v11 }
 0xc7f   :  { %v2252_v18 = vmul.f32 %v3253_v12, %v2247_v16 }
 0xc80   :  { %v2241_v49 = vsub.f32 1.5, %v2240_v21 }
 0xc81   :  { %v5156_v8 = vadd.f32 %v3254_v35, %v2252_v18  ;;  %v6362_v18 = vld [vmem:[#allocation49_spill] sm:$0xff] }
 0xc82   :  { %v2242_v31 = vmul.f32 %v3309_v41, %v2241_v49  ;;  %v6359_v49 = vld [vmem:[#allocation25_spill] sm:$0xff] }
 0xc83   :  { %6342 = vst [vmem:[#allocation101_spill] sm:$0xff] %v5156_v8  ;;  %v6030_v37 = vmax.f32 %v5156_v8, 0.0 }
 0xc84   :  { %v2246_v26 = vsel %vm2245_vm0, %v3309_v41, %v2242_v31  ;;  %v6360_v31 = vld [vmem:[#allocation34_spill] sm:$0xff] }
 0xc85   :  { %v2248_v50 = vmul.f32 %v2246_v26, %v2216_v7  ;;  %v6349_v7 = vld [vmem:[#allocation15_spill] sm:$0xff] }
 0xc87   :  { %v2253_v63 = vmul.f32 %v3253_v12, %v2248_v50  ;;  %v6361_v50 = vld [vmem:[#allocation40_spill] sm:$0xff] }
 0xc89   :  { %v5154_v36 = vadd.f32 %v3254_v35, %v2253_v63 }
 0xc8b   :  { %6341 = vst [vmem:[#allocation108_spill] sm:$0xff] %v5154_v36  ;;  %v6029_v17 = vmax.f32 %v5154_v36, 0.0  ;;  %v6428_v36 = vld [vmem:[#allocation75_spill] sm:$0xff] }
 0xc8d   :  { %2276 = vmatpush.msrb.mxu2 %v6029_v17  ;;  %v6407_v17 = vld [vmem:[#allocation29_spill] sm:$0xff] }
 0xc8f   :  { %2277 = vmatpush.msrb.mxu2 %v6030_v37 }
 0xc90   :  { %3119 = vmatmul.msk.f32.vlgmr.msrb.gmra.mxu2 %vm799_vm1, %v3350_v25  ;;  %v6363_v25 = vld [vmem:[#allocation60_spill] sm:$0xff] }
 0xc98   :  { %3120 = vmatmul.msk.f32.gmra.mxu2 %vm799_vm1, %v3351_v9 }
 0xca0   :  { %3121 = vmatmul.msk.f32.gmra.mxu2 %vm799_vm1, %v3352_v62  ;;  %v6364_v62 = vld [vmem:[#allocation81_spill] sm:$0xff] }
 0xca8   :  { %3122 = vmatmul.msk.f32.gmra.mxu2 %vm799_vm1, %v3353_v6 }
 0xcb0   :  { %3123 = vmatmul.msk.f32.gmra.mxu2 %vm799_vm1, %v3354_v30  ;;  %v6365_v30 = vld [vmem:[#allocation51_spill] sm:$0xff] }
 0xcb8   :  { %3124 = vmatmul.msk.f32.gmra.mxu2 %vm799_vm1, %v3355_v56 }
 0xd13   :  { %v2279_v55 = vpop.f32.mrf.mxu2 }
 0xd14   :  { %v2280_v53 = vadd.f32 %v2279_v55, %v6343_v48  ;;  %v6366_v55 = vld [vmem:[#allocation17_spill] sm:$0xff] }
 0xd16   :  { %v2297_v5 = vmax.f32 %v2280_v53, 0.0  ;;  %v6367_v53 = vld [vmem:[#allocation11_spill] sm:$0xff] }
 0xd18   :  { %v5189_v32 = vadd.f32 1e-07, %v2297_v5 }
 0xd1a   :  { %6344 = vst [vmem:[#allocation111_spill] sm:$0xff] %v5189_v32  ;;  %v5195_v43 = vmul.f32 %v5191_v61, %v5189_v32  ;;  %v6429_v32 = vld [vmem:[#allocation73_spill] sm:$0xff] }
 0xd1b   :  { %v2282_v0 = vpop.f32.mrf.mxu2 }
 0xd1c   :  { %6345 = vst [vmem:[#allocation125_spill] sm:$0xff] %v5195_v43  ;;  %v2283_v15 = vadd.f32 %v2282_v0, %v6346_v57  ;;  %v2364_v34 = vadd.f32 %v5195_v43, %v6347_v52  ;;  %v2370_v39 = vadd.f32 %v5195_v43, %v6349_v7  ;;  %v2376_v2 = vadd.f32 %v5195_v43, %v6350_v22  ;;  %v6368_v0 = vld [vmem:[#allocation54_spill] sm:$0xff]  ;;  %v6371_v22 = vld [vmem:[#allocation33_spill] sm:$0xff] }
 0xd1d   :  { %v2382_v13 = vadd.f32 %v5195_v43, %v6351_v14  ;;  %v2388_v20 = vadd.f32 %v5195_v43, %v6352_v24  ;;  %v5212_v10 = vadd.f32 %v5195_v43, %v6353_v28  ;;  %v5216_v59 = vadd.f32 %v5195_v43, %v6354_v47  ;;  %v6370_v52 = vld [vmem:[#allocation38_spill] sm:$0xff]  ;;  %v6372_v28 = vld [vmem:[#allocation61_spill] sm:$0xff] }
 0xd1e   :  { %v2298_v40 = vmax.f32 %v2283_v15, 0.0  ;;  %v5220_v41 = vadd.f32 %v5195_v43, %v6355_v38  ;;  %v5228_v11 = vadd.f32 %v5195_v43, %v6357_v33  ;;  %v5232_v21 = vadd.f32 %v5195_v43, %v6358_v45  ;;  %v6369_v15 = vld [vmem:[#allocation58_spill] sm:$0xff]  ;;  %v6373_v33 = vld [vmem:[#allocation59_spill] sm:$0xff] }
 0xd1f   :  { %v5236_v12 = vadd.f32 %v5195_v43, %v6359_v49  ;;  %v5240_v26 = vadd.f32 %v5195_v43, %v6360_v31  ;;  %v5244_v35 = vadd.f32 %v5195_v43, %v6361_v50  ;;  %v5248_v63 = vadd.f32 %v5195_v43, %v6362_v18 }
 0xd20   :  { %v5200_v27 = vadd.f32 1e-07, %v2298_v40  ;;  %v5252_v9 = vadd.f32 %v5195_v43, %v6363_v25  ;;  %v5273_v45 = vadd.f32 %v5195_v43, %v6373_v33  ;;  %v6386_v33 = vld [vmem:[#allocation23_spill] sm:$0xff] }
 0xd22   :  { %6348 = vst [vmem:[#allocation126_spill] sm:$0xff] %v5200_v27  ;;  %v5224_v23 = vmul.f32 %v5191_v61, %v5200_v27  ;;  %v6430_v27 = vld [vmem:[#allocation89_spill] sm:$0xff] }
 0xd23   :  { %v2285_v16 = vpop.f32.mrf.mxu2 }
 0xd24   :  { %6356 = vst [vmem:[#allocation123_spill] sm:$0xff] %v5224_v23  ;;  %v2286_v6 = vadd.f32 %v2285_v16, %v6364_v62  ;;  %v2365_v56 = vadd.f32 %v5224_v23, %v6365_v30  ;;  %v2371_v48 = vadd.f32 %v5224_v23, %v6366_v55  ;;  %v2377_v5 = vadd.f32 %v5224_v23, %v6367_v53  ;;  %v6375_v30 = vld [vmem:[#allocation12_spill] sm:$0xff] }
 0xd25   :  { %v2383_v57 = vadd.f32 %v5224_v23, %v6368_v0  ;;  %v2389_v40 = vadd.f32 %v5224_v23, %v6369_v15  ;;  %v2395_v7 = vadd.f32 %v5224_v23, %v6370_v52  ;;  %v2401_v14 = vadd.f32 %v5224_v23, %v6371_v22  ;;  %v6377_v53 = vld [vmem:[#allocation16_spill] sm:$0xff]  ;;  %v6383_v15 = vld [vmem:[#allocation70_spill] sm:$0xff] }
 0xd26   :  { %v2299_v24 = vmax.f32 %v2286_v6, 0.0  ;;  %v2407_v47 = vadd.f32 %v5224_v23, %v6372_v28  ;;  %v2500_v38 = vmax.f32 %v2364_v34, %v2365_v56  ;;  %v2511_v49 = vmax.f32 %v2370_v39, %v2371_v48  ;;  %v6376_v34 = vld [vmem:[#allocation21_spill] sm:$0xff]  ;;  %v6381_v48 = vld [vmem:[#allocation39_spill] sm:$0xff] }
 0xd27   :  { %v2522_v16 = vmax.f32 %v2376_v2, %v2377_v5  ;;  %v2533_v31 = vmax.f32 %v2382_v13, %v2383_v57  ;;  %v2544_v50 = vmax.f32 %v2388_v20, %v2389_v40  ;;  %v2555_v25 = vmax.f32 %v5212_v10, %v2395_v7  ;;  %v6378_v2 = vld [vmem:[#allocation32_spill] sm:$0xff]  ;;  %v6380_v10 = vld [vmem:[#allocation41_spill] sm:$0xff]  ;;  %v6382_v5 = vld [vmem:[#allocation50_spill] sm:$0xff] }
 0xd28   :  { %v5275_v18 = vadd.f32 1e-07, %v2299_v24  ;;  %v2566_v62 = vmax.f32 %v5216_v59, %v2401_v14  ;;  %v2317_v6 = vadd.f32 %v5224_v23, %v6375_v30  ;;  %v2577_v55 = vmax.f32 %v5220_v41, %v2407_v47  ;;  %v6384_v14 = vld [vmem:[#allocation84_spill] sm:$0xff]  ;;  %v6385_v28 = vld [vmem:[#allocation13_spill] sm:$0xff] }
 0xd29   :  { %v2323_v56 = vadd.f32 %v5224_v23, %v6376_v34  ;;  %v2329_v39 = vadd.f32 %v5224_v23, %v6377_v53  ;;  %v2335_v13 = vadd.f32 %v5224_v23, %v6378_v2  ;;  %v5294_v59 = vadd.f32 %v5224_v23, %v6380_v10  ;;  %v6387_v34 = vld [vmem:[#allocation26_spill] sm:$0xff]  ;;  %v6388_v2 = vld [vmem:[#allocation24_spill] sm:$0xff] }
 0xd2a   :  { %6374 = vst [vmem:[#allocation121_spill] sm:$0xff] %v5275_v18  ;;  %v5290_v20 = vmul.f32 %v5191_v61, %v5275_v18  ;;  %v5298_v41 = vadd.f32 %v5224_v23, %v6381_v48  ;;  %v5302_v0 = vadd.f32 %v5224_v23, %v6382_v5  ;;  %v5306_v40 = vadd.f32 %v5224_v23, %v6383_v15  ;;  %v6389_v48 = vld [vmem:[#allocation44_spill] sm:$0xff] }
 0xd2b   :  { %v2288_v57 = vpop.f32.mrf.mxu2  ;;  %v2412_v52 = vmax.f32 %v5228_v11, %v2317_v6  ;;  %v2423_v7 = vmax.f32 %v5232_v21, %v2323_v56  ;;  %v2434_v22 = vmax.f32 %v5236_v12, %v2329_v39  ;;  %v6390_v21 = vld [vmem:[#allocation55_spill] sm:$0xff]  ;;  %v6391_v6 = vld [vmem:[#allocation53_spill] sm:$0xff]  ;;  %v6392_v5 = vld [vmem:[#allocation76_spill] sm:$0xff] }
 0xd2c   :  { %6379 = vst [vmem:[#allocation119_spill] sm:$0xff] %v5290_v20  ;;  %v2289_v24 = vadd.f32 %v2288_v57, %v6384_v14  ;;  %v2366_v47 = vadd.f32 %v5290_v20, %v6385_v28  ;;  %v2372_v30 = vadd.f32 %v5290_v20, %v6386_v33  ;;  %v2378_v53 = vadd.f32 %v5290_v20, %v6387_v34 }
 0xd2d   :  { %v2384_v10 = vadd.f32 %v5290_v20, %v6388_v2  ;;  %v2390_v11 = vadd.f32 %v5290_v20, %v6389_v48  ;;  %v2396_v12 = vadd.f32 %v5290_v20, %v6390_v21  ;;  %v2402_v56 = vadd.f32 %v5290_v20, %v6391_v6  ;;  %v6394_v6 = vld [vmem:[#allocation30_spill] sm:$0xff] }
 0xd2e   :  { %v2300_v39 = vmax.f32 %v2289_v24, 0.0  ;;  %v2408_v57 = vadd.f32 %v5290_v20, %v6392_v5  ;;  %v5328_v15 = vmax.f32 %v2500_v38, %v2366_v47  ;;  %v2445_v14 = vmax.f32 %v5240_v26, %v2335_v13  ;;  %v6395_v26 = vld [vmem:[#allocation20_spill] sm:$0xff]  ;;  %v6397_v13 = vld [vmem:[#allocation47_spill] sm:$0xff] }
 0xd2f   :  { %v5331_v28 = vmax.f32 %v2511_v49, %v2372_v30  ;;  %v5333_v33 = vmax.f32 %v2522_v16, %v2378_v53  ;;  %v5335_v34 = vmax.f32 %v2533_v31, %v2384_v10  ;;  %v5337_v2 = vmax.f32 %v2544_v50, %v2390_v11  ;;  %v6396_v16 = vld [vmem:[#allocation27_spill] sm:$0xff]  ;;  %v6400_v53 = vld [vmem:[#allocation68_spill] sm:$0xff] }
 0xd30   :  { %v5339_v48 = vadd.f32 1e-07, %v2300_v39  ;;  %v5341_v21 = vmax.f32 %v2555_v25, %v2396_v12  ;;  %v5343_v24 = vmax.f32 %v2566_v62, %v2402_v56  ;;  %v2318_v38 = vadd.f32 %v5290_v20, %v6394_v6  ;;  %v6399_v62 = vld [vmem:[#allocation48_spill] sm:$0xff]  ;;  %v6401_v10 = vld [vmem:[#allocation83_spill] sm:$0xff]  ;;  %v6402_v56 = vld [vmem:[#allocation82_spill] sm:$0xff] }
 0xd31   :  { %v5347_v47 = vmax.f32 %v2577_v55, %v2408_v57  ;;  %v2324_v49 = vadd.f32 %v5290_v20, %v6395_v26  ;;  %v2330_v31 = vadd.f32 %v5290_v20, %v6396_v16  ;;  %v2336_v50 = vadd.f32 %v5290_v20, %v6397_v13  ;;  %v6404_v26 = vld [vmem:[#allocation86_spill] sm:$0xff] }
 0xd32   :  { %6393 = vst [vmem:[#allocation117_spill] sm:$0xff] %v5339_v48  ;;  %v5357_v25 = vmul.f32 %v5191_v61, %v5339_v48  ;;  %v5361_v30 = vadd.f32 %v5290_v20, %v6399_v62  ;;  %v5365_v55 = vadd.f32 %v5290_v20, %v6400_v53  ;;  %v5369_v11 = vadd.f32 %v5290_v20, %v6401_v10  ;;  %v6405_v13 = vld [vmem:[#allocation22_spill] sm:$0xff]  ;;  %v6406_v53 = vld [vmem:[#allocation35_spill] sm:$0xff] }
 0xd33   :  { %v2291_v12 = vpop.f32.mrf.mxu2  ;;  %v5373_v39 = vadd.f32 %v5290_v20, %v6402_v56  ;;  %v5375_v5 = vmax.f32 %v2412_v52, %v2318_v38  ;;  %v5377_v57 = vmax.f32 %v2423_v7, %v2324_v49  ;;  %v5379_v6 = vmax.f32 %v2434_v22, %v2330_v31  ;;  %v6409_v52 = vld [vmem:[#allocation62_spill] sm:$0xff] }
 0xd34   :  { %6398 = vst [vmem:[#allocation9_spill] sm:$0xff] %v5357_v25  ;;  %v2292_v16 = vadd.f32 %v2291_v12, %v6404_v26  ;;  %v2367_v62 = vadd.f32 %v5357_v25, %v6405_v13  ;;  %v2373_v10 = vadd.f32 %v5357_v25, %v6406_v53  ;;  %v2379_v37 = vadd.f32 %v5357_v25, %v6407_v17  ;;  %v6410_v38 = vld [vmem:[#allocation66_spill] sm:$0xff]  ;;  %v6412_v26 = vld [vmem:[#allocation88_spill] sm:$0xff] }
 0xd35   :  { %6403 = vst [vmem:[#allocation124_spill] sm:$0xff] %v5373_v39  ;;  %v2385_v56 = vadd.f32 %v5357_v25, %v6408_v44  ;;  %v2391_v7 = vadd.f32 %v5357_v25, %v6409_v52  ;;  %v2397_v22 = vadd.f32 %v5357_v25, %v6410_v38  ;;  %v6411_v49 = vld [vmem:[#allocation74_spill] sm:$0xff]  ;;  %v2409_v13 = vadd.f32 %v5357_v25, %v6412_v26 }
 0xd36   :  { %v2403_v31 = vadd.f32 %v5357_v25, %v6411_v49  ;;  %v2301_v12 = vmax.f32 %v2292_v16, 0.0  ;;  %v2502_v53 = vmax.f32 %v5328_v15, %v2367_v62  ;;  %v5399_v42 = vmax.f32 %v2445_v14, %v2336_v50  ;;  %v6415_v14 = vld [vmem:[#allocation36_spill] sm:$0xff]  ;;  %v6416_v50 = vld [vmem:[#allocation57_spill] sm:$0xff] }
 0xd37   :  { %v2513_v17 = vmax.f32 %v5331_v28, %v2373_v10  ;;  %v2524_v44 = vmax.f32 %v5333_v33, %v2379_v37  ;;  %v2535_v52 = vmax.f32 %v5335_v34, %v2385_v56  ;;  %v2546_v19 = vmax.f32 %v5337_v2, %v2391_v7  ;;  %v6417_v33 = vld [vmem:[#allocation64_spill] sm:$0xff]  ;;  %v6421_v62 = vld [vmem:[#allocation97_spill] sm:$0xff] }
 0xd38   :  { %v5405_v38 = vadd.f32 1e-07, %v2301_v12  ;;  %v2557_v49 = vmax.f32 %v5341_v21, %v2397_v22  ;;  %v2568_v16 = vmax.f32 %v5343_v24, %v2403_v31  ;;  %v2319_v26 = vadd.f32 %v5357_v25, %v6414_v58  ;;  %v6419_v21 = vld [vmem:[#allocation67_spill] sm:$0xff]  ;;  %v6420_v58 = vld [vmem:[#allocation100_spill] sm:$0xff]  ;;  %v6423_v7 = vld [vmem:[#allocation109_spill] sm:$0xff] }
 0xd39   :  { %v2579_v15 = vmax.f32 %v5347_v47, %v2409_v13  ;;  %v2325_v28 = vadd.f32 %v5357_v25, %v6415_v14  ;;  %v2331_v37 = vadd.f32 %v5357_v25, %v6416_v50  ;;  %v5418_v34 = vadd.f32 %v5357_v25, %v6417_v33  ;;  %v6425_v14 = vld [vmem:[#allocation87_spill] sm:$0xff]  ;;  %v6426_v33 = vld [vmem:[#allocation72_spill] sm:$0xff] }
 0xd3a   :  { %6413 = vst [vmem:[#allocation122_spill] sm:$0xff] %v5405_v38  ;;  %v5422_v2 = vmul.f32 %v5191_v61, %v5405_v38  ;;  %v5426_v24 = vadd.f32 %v5357_v25, %v6419_v21  ;;  %v5430_v47 = vadd.f32 %v5357_v25, %v6420_v58  ;;  %v5434_v10 = vadd.f32 %v5357_v25, %v6421_v62  ;;  %v6427_v58 = vld [vmem:[#allocation52_spill] sm:$0xff] }
 0xd3b   :  { %v2294_v56 = vpop.f32.mrf.mxu2  ;;  %v5438_v22 = vadd.f32 %v5357_v25, %v6423_v7  ;;  %v2414_v31 = vmax.f32 %v5375_v5, %v2319_v26  ;;  %v2425_v12 = vmax.f32 %v5377_v57, %v2325_v28  ;;  %v2436_v13 = vmax.f32 %v5379_v6, %v2331_v37  ;;  %v6431_v57 = vld [vmem:[#allocation102_spill] sm:$0xff]  ;;  %v6432_v26 = vld [vmem:[#allocation107_spill] sm:$0xff] }
 0xd3c   :  { %6418 = vst [vmem:[#allocation120_spill] sm:$0xff] %v5422_v2  ;;  %v2295_v50 = vadd.f32 %v2294_v56, %v6425_v14  ;;  %v2368_v21 = vadd.f32 %v5422_v2, %v6426_v33  ;;  %v2374_v62 = vadd.f32 %v5422_v2, %v6427_v58  ;;  %v2380_v8 = vadd.f32 %v5422_v2, %v6428_v36  ;;  %v6433_v56 = vld [vmem:[#allocation112_spill] sm:$0xff] }
 0xd3d   :  { %6422 = vst [vmem:[#allocation118_spill] sm:$0xff] %v5434_v10  ;;  %v2386_v7 = vadd.f32 %v5422_v2, %v6429_v32  ;;  %v2392_v5 = vadd.f32 %v5422_v2, %v6430_v27  ;;  %v2398_v6 = vadd.f32 %v5422_v2, %v6431_v57  ;;  %v2404_v28 = vadd.f32 %v5422_v2, %v6432_v26  ;;  %v6435_v57 = vld [vmem:[#allocation65_spill] sm:$0xff] }
 0xd3e   :  { %6424 = vst [vmem:[#allocation116_spill] sm:$0xff] %v5438_v22  ;;  %v2302_v37 = vmax.f32 %v2295_v50, 0.0  ;;  %v2410_v14 = vadd.f32 %v5422_v2, %v6433_v56  ;;  %v2503_v33 = vmax.f32 %v2502_v53, %v2368_v21  ;;  %v2514_v58 = vmax.f32 %v2513_v17, %v2374_v62  ;;  %v6436_v50 = vld [vmem:[#allocation56_spill] sm:$0xff]  ;;  %v6437_v56 = vld [vmem:[#allocation69_spill] sm:$0xff]  ;;  %v6444_v62 = vld [vmem:[#allocation94_spill] sm:$0xff] }
 0xd3f   :  { %v2525_v18 = vmax.f32 %v2524_v44, %v2380_v8  ;;  %v2536_v32 = vmax.f32 %v2535_v52, %v2386_v7  ;;  %v2547_v48 = vmax.f32 %v2546_v19, %v2392_v5  ;;  %v2558_v27 = vmax.f32 %v2557_v49, %v2398_v6  ;;  %v6438_v21 = vld [vmem:[#allocation77_spill] sm:$0xff]  ;;  %v6440_v52 = vld [vmem:[#allocation78_spill] sm:$0xff] }
 0xd40   :  { %v5462_v38 = vadd.f32 1e-07, %v2302_v37  ;;  %v2569_v43 = vmax.f32 %v2568_v16, %v2404_v28  ;;  %v2320_v23 = vadd.f32 %v5422_v2, %v6435_v57  ;;  %v2580_v26 = vmax.f32 %v2579_v15, %v2410_v14  ;;  %v6439_v8 = vld [vmem:[#allocation105_spill] sm:$0xff]  ;;  %v6446_v28 = vld [vmem:[#allocation63_spill] sm:$0xff] }
 0xd41   :  { %v2326_v20 = vadd.f32 %v5422_v2, %v6436_v50  ;;  %v2332_v53 = vadd.f32 %v5422_v2, %v6437_v56  ;;  %v5472_v17 = vadd.f32 %v5422_v2, %v6438_v21  ;;  %v5480_v44 = vadd.f32 %v5422_v2, %v6439_v8  ;;  %v6442_v16 = vld [vmem:[#allocation85_spill] sm:$0xff]  ;;  %v6447_v14 = vld [vmem:[#allocation99_spill] sm:$0xff]  ;;  %v6449_v21 = vld [vmem:[#allocation106_spill] sm:$0xff] }
 0xd42   :  { %6434 = vst [vmem:[#allocation8_spill] sm:$0xff] %v5462_v38  ;;  %v5476_v19 = vmul.f32 %v5191_v61, %v5462_v38  ;;  %v5484_v49 = vadd.f32 %v5422_v2, %v6440_v52  ;;  %v5488_v15 = vadd.f32 %v5422_v2, %v6442_v16  ;;  %v5492_v7 = vadd.f32 %v5422_v2, %v6444_v62  ;;  %v6448_v50 = vld [vmem:[#allocation71_spill] sm:$0xff]  ;;  %v6450_v52 = vld [vmem:[#allocation110_spill] sm:$0xff] }
 0xd43   :  { %v5494_v5 = vmax.f32 %v2414_v31, %v2320_v23  ;;  %v5496_v61 = vmax.f32 %v2425_v12, %v2326_v20  ;;  %v5498_v6 = vmax.f32 %v2436_v13, %v2332_v53  ;;  %v6451_v31 = vld [vmem:[#allocation104_spill] sm:$0xff]  ;;  %v6452_v12 = vld [vmem:[#allocation114_spill] sm:$0xff]  ;;  %v6453_v53 = vld [vmem:[#allocation115_spill] sm:$0xff] }
 0xd44   :  { %6441 = vst [vmem:[#allocation91_spill] sm:$0xff] %v5484_v49  ;;  %v2369_v37 = vadd.f32 %v5476_v19, %v6446_v28  ;;  %v2375_v57 = vadd.f32 %v5476_v19, %v6447_v14  ;;  %v2381_v56 = vadd.f32 %v5476_v19, %v6448_v50  ;;  %v2387_v8 = vadd.f32 %v5476_v19, %v6449_v21 }
 0xd45   :  { %6443 = vst [vmem:[#allocation90_spill] sm:$0xff] %v5488_v15  ;;  %v2393_v23 = vadd.f32 %v5476_v19, %v6450_v52  ;;  %v2399_v20 = vadd.f32 %v5476_v19, %v6451_v31  ;;  %v2405_v13 = vadd.f32 %v5476_v19, %v6452_v12  ;;  %v2411_v16 = vadd.f32 %v5476_v19, %v6453_v53 }
 0xd46   :  { %6445 = vst [vmem:[#allocation93_spill] sm:$0xff] %v5492_v7  ;;  %v2504_v62 = vmax.f32 %v2503_v33, %v2369_v37  ;;  %v2515_v28 = vmax.f32 %v2514_v58, %v2375_v57  ;;  %v2526_v14 = vmax.f32 %v2525_v18, %v2381_v56  ;;  %v2537_v36 = vmax.f32 %v2536_v32, %v2387_v8 }
 0xd47   :  { %v2548_v50 = vmax.f32 %v2547_v48, %v2393_v23  ;;  %v2559_v38 = vmax.f32 %v2558_v27, %v2399_v20  ;;  %v2570_v25 = vmax.f32 %v2569_v43, %v2405_v13  ;;  %v2581_v21 = vmax.f32 %v2580_v26, %v2411_v16 }
 0xd48   :  { %v2505_v2 = vrot.slane %v2504_v62, 4  ;;  %v2516_v7 = vrot.slane %v2515_v28, 4  ;;  %v2527_v52 = vrot.slane %v2526_v14, 4  ;;  %v2538_v15 = vrot.slane %v2537_v36, 4 }
 0xd49   :  { %v2549_v22 = vrot.slane %v2548_v50, 4  ;;  %v2560_v31 = vrot.slane %v2559_v38, 4  ;;  %v2571_v10 = vrot.slane %v2570_v25, 4  ;;  %v2582_v3 = vrot.slane %v2581_v21, 4 }
 0xd4a   :  { %v2506_v12 = vmax.f32 %v2504_v62, %v2505_v2  ;;  %v2517_v39 = vmax.f32 %v2515_v28, %v2516_v7  ;;  %v2528_v49 = vmax.f32 %v2526_v14, %v2527_v52  ;;  %v2539_v53 = vmax.f32 %v2537_v36, %v2538_v15 }
 0xd4b   :  { %v2550_v33 = vmax.f32 %v2548_v50, %v2549_v22  ;;  %v2561_v58 = vmax.f32 %v2559_v38, %v2560_v31  ;;  %v2572_v18 = vmax.f32 %v2570_v25, %v2571_v10  ;;  %v2583_v32 = vmax.f32 %v2581_v21, %v2582_v3 }
 0xd4c   :  { %v2507_v48 = vrot.slane %v2506_v12, 2  ;;  %v2518_v27 = vrot.slane %v2517_v39, 2  ;;  %v2529_v43 = vrot.slane %v2528_v49, 2  ;;  %v2540_v26 = vrot.slane %v2539_v53, 2 }
 0xd4d   :  { %v2551_v37 = vrot.slane %v2550_v33, 2  ;;  %v2562_v57 = vrot.slane %v2561_v58, 2  ;;  %v2573_v56 = vrot.slane %v2572_v18, 2  ;;  %v2584_v8 = vrot.slane %v2583_v32, 2 }
 0xd4e   :  { %v2508_v23 = vmax.f32 %v2506_v12, %v2507_v48  ;;  %v2519_v20 = vmax.f32 %v2517_v39, %v2518_v27  ;;  %v2530_v13 = vmax.f32 %v2528_v49, %v2529_v43  ;;  %v2541_v16 = vmax.f32 %v2539_v53, %v2540_v26 }
 0xd4f   :  { %v2552_v2 = vmax.f32 %v2550_v33, %v2551_v37  ;;  %v2563_v7 = vmax.f32 %v2561_v58, %v2562_v57  ;;  %v2574_v62 = vmax.f32 %v2572_v18, %v2573_v56  ;;  %v2585_v36 = vmax.f32 %v2583_v32, %v2584_v8 }
 0xd50   :  { %v2509_v22 = vrot.slane %v2508_v23, 1  ;;  %v2520_v38 = vrot.slane %v2519_v20, 1  ;;  %v2531_v25 = vrot.slane %v2530_v13, 1  ;;  %v2542_v3 = vrot.slane %v2541_v16, 1 }
 0xd51   :  { %v2553_v10 = vrot.slane %v2552_v2, 1  ;;  %v2564_v15 = vrot.slane %v2563_v7, 1  ;;  %v2575_v28 = vrot.slane %v2574_v62, 1  ;;  %v2586_v14 = vrot.slane %v2585_v36, 1 }
 0xd52   :  { %v2510_v50 = vmax.f32 %v2508_v23, %v2509_v22  ;;  %v2521_v21 = vmax.f32 %v2519_v20, %v2520_v38  ;;  %v2532_v52 = vmax.f32 %v2530_v13, %v2531_v25  ;;  %v6454_v39 = vmax.f32 %v5399_v42, %v5418_v34 }
 0xd53   :  { %v2543_v31 = vmax.f32 %v2541_v16, %v2542_v3  ;;  %v2554_v12 = vmax.f32 %v2552_v2, %v2553_v10  ;;  %v2565_v53 = vmax.f32 %v2563_v7, %v2564_v15  ;;  %v2576_v33 = vmax.f32 %v2574_v62, %v2575_v28  ;;  %v6455_v10 = vld [vmem:[#allocation91_spill] sm:$0xff]  ;;  %v6456_v28 = vld [vmem:[#allocation124_spill] sm:$0xff] }
 0xd54   :  { %v2448_v49 = vmax.f32 %v6454_v39, %v5472_v17  ;;  %v2611_v58 = vsel %vm1160_vm2, %v2521_v21, %v2510_v50  ;;  %v2321_v18 = vadd.f32 %v5476_v19, %v6313_v4  ;;  %v2327_v32 = vadd.f32 %v5476_v19, %v6314_v54  ;;  %v6458_v50 = vld [vmem:[#allocation118_spill] sm:$0xff]  ;;  %v6459_v39 = vld [vmem:[#allocation116_spill] sm:$0xff] }
 0xd55   :  { %v2333_v48 = vadd.f32 %v5476_v19, %v6315_v1  ;;  %v2587_v27 = vmax.f32 %v2585_v36, %v2586_v14  ;;  %v2612_v43 = vsel %vm1162_vm3, %v2532_v52, %v2611_v58  ;;  %v2339_v42 = vadd.f32 %v5476_v19, %v6316_v46 }
 0xd56   :  { %v2345_v34 = vadd.f32 %v5476_v19, %v4158_v29  ;;  %v2613_v17 = vsel %vm1164_vm4, %v2543_v31, %v2612_v43  ;;  %v2351_v4 = vadd.f32 %v5476_v19, %v4229_v51  ;;  %v2357_v54 = vadd.f32 %v5476_v19, %v6317_v60 }
 0xd57   :  { %v2416_v26 = vmax.f32 %v5494_v5, %v2321_v18  ;;  %v2614_v1 = vsel %vm1166_vm5, %v2554_v12, %v2613_v17  ;;  %v2427_v37 = vmax.f32 %v5496_v61, %v2327_v32  ;;  %v2438_v57 = vmax.f32 %v5498_v6, %v2333_v48  ;;  %v6461_v32 = vld [vmem:[#allocation93_spill] sm:$0xff] }
 0xd58   :  { %v2449_v46 = vmax.f32 %v2448_v49, %v2339_v42  ;;  %v2615_v56 = vsel %vm1168_vm6, %v2565_v53, %v2614_v1  ;;  %v2456_v8 = vmax.f32 %v5244_v35, %v5294_v59  ;;  %v2467_v51 = vmax.f32 %v5248_v63, %v5298_v41 }
 0xd59   :  { %v2417_v29 = vrot.slane %v2416_v26, 4  ;;  %v2616_v60 = vsel %vm1170_vm7, %v2576_v33, %v2615_v56  ;;  %v2428_v23 = vrot.slane %v2427_v37, 4  ;;  %v2439_v5 = vrot.slane %v2438_v57, 4 }
 0xd5a   :  { %v2450_v20 = vrot.slane %v2449_v46, 4  ;;  %v2617_v13 = vsel %vm1172_vm8, %v2587_v27, %v2616_v60  ;;  %v2457_v6 = vmax.f32 %v2456_v8, %v5361_v30  ;;  %v2468_v16 = vmax.f32 %v2467_v51, %v5365_v55 }
 0xd5b   :  { %v2418_v61 = vmax.f32 %v2416_v26, %v2417_v29  ;;  %2634 = vmatpush.msra.mxu3 %v2617_v13  ;;  %v2429_v2 = vmax.f32 %v2427_v37, %v2428_v23  ;;  %v2440_v7 = vmax.f32 %v2438_v57, %v2439_v5  ;;  %v2478_v35 = vmax.f32 %v5252_v9, %v5302_v0  ;;  %v6457_v0 = vld [vmem:[#allocation113_spill] sm:$0xff] }
 0xd5c   :  { %v2451_v62 = vmax.f32 %v2449_v46, %v2450_v20  ;;  %v2458_v59 = vmax.f32 %v2457_v6, %v5426_v24  ;;  %v2469_v41 = vmax.f32 %v2468_v16, %v5430_v47  ;;  %v2489_v36 = vmax.f32 %v5273_v45, %v5306_v40 }
 0xd5d   :  { %v2419_v63 = vrot.slane %v2418_v61, 2  ;;  %v2430_v22 = vrot.slane %v2429_v2, 2  ;;  %v2441_v38 = vrot.slane %v2440_v7, 2  ;;  %v2479_v55 = vmax.f32 %v2478_v35, %v5369_v11 }
 0xd5e   :  { %v2452_v30 = vrot.slane %v2451_v62, 2  ;;  %v2459_v3 = vmax.f32 %v2458_v59, %v5480_v44  ;;  %v2470_v15 = vmax.f32 %v2469_v41, %v6455_v10  ;;  %v2490_v9 = vmax.f32 %v2489_v36, %v6456_v28  ;;  %v6460_v44 = vld [vmem:[#allocation90_spill] sm:$0xff]  ;;  %v3359_v10 = vld [vmem:[%s6200_s21 + $0x18] sm:$0xff]  ;;  %v3361_v28 = vld [vmem:[%s6200_s21 + $0x28] sm:$0xff] }
 0xd5f   :  { %v2420_v25 = vmax.f32 %v2418_v61, %v2419_v63  ;;  %v2363_v24 = vadd.f32 %v5476_v19, %v6457_v0  ;;  %v2431_v14 = vmax.f32 %v2429_v2, %v2430_v22  ;;  %v2442_v47 = vmax.f32 %v2440_v7, %v2441_v38 }
 0xd60   :  { %v2480_v21 = vmax.f32 %v2479_v55, %v6458_v50  ;;  %v2460_v40 = vmax.f32 %v2459_v3, %v2345_v34  ;;  %v2471_v52 = vmax.f32 %v2470_v15, %v2351_v4  ;;  %v2491_v49 = vmax.f32 %v2490_v9, %v6459_v39  ;;  %v3356_v55 = vld [vmem:[%s6200_s21] sm:$0xff]  ;;  %v3358_v3 = vld [vmem:[%s6200_s21 + $0x10] sm:$0xff] }
 0xd61   :  { %v2421_v45 = vrot.slane %v2420_v25, 1  ;;  %v2432_v11 = vrot.slane %v2431_v14, 1  ;;  %v2443_v31 = vrot.slane %v2442_v47, 1  ;;  %v2453_v12 = vmax.f32 %v2451_v62, %v2452_v30  ;;  %v3360_v15 = vld [vmem:[%s6200_s21 + $0x20] sm:$0xff]  ;;  %v6462_v50 = vld [vmem:[#allocation120_spill] sm:$0xff] }
 0xd62   :  { %v2481_v53 = vmax.f32 %v2480_v21, %v6460_v44  ;;  %v2461_v58 = vrot.slane %v2460_v40, 4  ;;  %v2472_v18 = vrot.slane %v2471_v52, 4  ;;  %v2492_v48 = vmax.f32 %v2491_v49, %v6461_v32  ;;  %v6464_v49 = vld [vmem:[#allocation119_spill] sm:$0xff]  ;;  %v3149_v44 = vld [vmem:[%s5821_s10 + $0x170] sm:$0xff] }
 0xd63   :  { %v2422_v33 = vmax.f32 %v2420_v25, %v2421_v45  ;;  %v2433_v27 = vmax.f32 %v2431_v14, %v2432_v11  ;;  %v2444_v42 = vmax.f32 %v2442_v47, %v2443_v31  ;;  %v2454_v34 = vrot.slane %v2453_v12, 1  ;;  %v3357_v25 = vld [vmem:[%s6200_s21 + $0x8] sm:$0xff]  ;;  %v6463_v45 = vld [vmem:[#allocation9_spill] sm:$0xff] }
 0xd64   :  { %v2482_v43 = vmax.f32 %v2481_v53, %v2357_v54  ;;  %v2462_v17 = vmax.f32 %v2460_v40, %v2461_v58  ;;  %v2473_v26 = vmax.f32 %v2471_v52, %v2472_v18  ;;  %v2493_v1 = vmax.f32 %v2492_v48, %v2363_v24  ;;  %v6465_v53 = vld [vmem:[#allocation123_spill] sm:$0xff] }
 0xd65   :  { %v2604_v37 = vsel %vm1160_vm2, %v2433_v27, %v2422_v33  ;;  %v2455_v5 = vmax.f32 %v2453_v12, %v2454_v34  ;;  %v3150_v12 = vld [vmem:[%s5821_s10 + $0x178] sm:$0xff]  ;;  %v3148_v32 = vld [vmem:[%s5821_s10 + $0x168] sm:$0xff]  ;;  %v6467_v34 = vld [vmem:[#allocation8_spill] sm:$0xff] }
 0xd66   :  { %v2483_v4 = vrot.slane %v2482_v43, 4  ;;  %v2463_v57 = vrot.slane %v2462_v17, 2  ;;  %v2474_v46 = vrot.slane %v2473_v26, 2  ;;  %v2494_v56 = vrot.slane %v2493_v1, 4  ;;  %2781 = vmatpush.msra.mxu2 %v3150_v12 }
 0xd67   :  { %v2605_v23 = vsel %vm1162_vm3, %v2444_v42, %v2604_v37 }
 0xd68   :  { %v2484_v29 = vmax.f32 %v2482_v43, %v2483_v4  ;;  %v2464_v8 = vmax.f32 %v2462_v17, %v2463_v57  ;;  %v2475_v51 = vmax.f32 %v2473_v26, %v2474_v46  ;;  %v2495_v60 = vmax.f32 %v2493_v1, %v2494_v56  ;;  %2782 = vmatpush.msra.mxu2 %v3149_v44  ;;  %v3147_v43 = vld [vmem:[%s5821_s10 + $0x160] sm:$0xff]  ;;  %v6473_v44 = vld [vmem:[#allocation101_spill] sm:$0xff] }
 0xd69   :  { %v2606_v16 = vsel %vm1164_vm4, %v2455_v5, %v2605_v23  ;;  %v6468_v57 = vld [vmem:[#allocation122_spill] sm:$0xff] }
 0xd6a   :  { %v2485_v20 = vrot.slane %v2484_v29, 2  ;;  %v2465_v54 = vrot.slane %v2464_v8, 1  ;;  %v2476_v13 = vrot.slane %v2475_v51, 1  ;;  %v2496_v61 = vrot.slane %v2495_v60, 2  ;;  %2783 = vmatpush.msra.mxu2 %v3148_v32 }
 0xd6c   :  { %v2486_v6 = vmax.f32 %v2484_v29, %v2485_v20  ;;  %v2466_v2 = vmax.f32 %v2464_v8, %v2465_v54  ;;  %v2497_v7 = vmax.f32 %v2495_v60, %v2496_v61  ;;  %v2477_v62 = vmax.f32 %v2475_v51, %v2476_v13  ;;  %2784 = vmatpush.msra.mxu2 %v3147_v43  ;;  %v6469_v29 = vld [vmem:[#allocation117_spill] sm:$0xff]  ;;  %v6471_v20 = vld [vmem:[#allocation126_spill] sm:$0xff]  ;;  %v6472_v13 = vld [vmem:[#allocation111_spill] sm:$0xff] }
 0xd6d   :  { %v6470_v60 = vld [vmem:[#allocation121_spill] sm:$0xff] }
 0xd6e   :  { %v2487_v35 = vrot.slane %v2486_v6, 1  ;;  %v2498_v63 = vrot.slane %v2497_v7, 1  ;;  %v2607_v59 = vsel %vm1166_vm5, %v2466_v2, %v2606_v16  ;;  %v3363_v16 = vld [vmem:[%s5816_s5 + $0x8] sm:$0xff]  ;;  %v3146_v2 = vld [vmem:[%s5821_s10 + $0x158] sm:$0xff] }
 0xd6f   :  { %v2608_v36 = vsel %vm1168_vm6, %v2477_v62, %v2607_v59  ;;  %2785 = vmatpush.msra.mxu2 %v3146_v2  ;;  %v3144_v62 = vld [vmem:[%s5821_s10 + $0x148] sm:$0xff]  ;;  %v3141_v59 = vld [vmem:[%s5821_s10 + $0x130] sm:$0xff] }
 0xd70   :  { %v2488_v41 = vmax.f32 %v2486_v6, %v2487_v35  ;;  %v2499_v22 = vmax.f32 %v2497_v7, %v2498_v63  ;;  %v3362_v6 = vld [vmem:[%s5816_s5] sm:$0xff]  ;;  %v3145_v7 = vld [vmem:[%s5821_s10 + $0x150] sm:$0xff]  ;;  %v3142_v63 = vld [vmem:[%s5821_s10 + $0x138] sm:$0xff]  ;;  %s3020_s5 = sshll.u32 %s5831_s20, 4  ;;  %s3021_s5 = int_to_ptr.hbm [resolvable:$true] %s3020_s5 }
 0xd71   :  { %2786 = vmatpush.msra.mxu2 %v3145_v7  ;;  %v3143_v35 = vld [vmem:[%s5821_s10 + $0x140] sm:$0xff]  ;;  %v3168_v7 = vld [vmem:[%s5825_s14 + $0x170] sm:$0xff] }
 0xd72   :  { %v2609_v38 = vsel %vm1170_vm7, %v2488_v41, %v2608_v36  ;;  %v3140_v41 = vld [vmem:[%s5821_s10 + $0x128] sm:$0xff]  ;;  %v3139_v36 = vld [vmem:[%s5821_s10 + $0x120] sm:$0xff] }
 0xd73   :  { %v2610_v30 = vsel %vm1172_vm8, %v2499_v22, %v2609_v38  ;;  %2787 = vmatpush.msra.mxu2 %v3144_v62  ;;  %v3138_v22 = vld [vmem:[%s5821_s10 + $0x118] sm:$0xff]  ;;  %v3137_v38 = vld [vmem:[%s5821_s10 + $0x110] sm:$0xff]  ;;  %v3167_v62 = vld [vmem:[%s5825_s14 + $0x168] sm:$0xff] }
 0xd74   :  { %2635 = vmatpush.msra.mxu3 %v2610_v30  ;;  %v3136_v30 = vld [vmem:[%s5821_s10 + $0x108] sm:$0xff] }
 0xd75   :  { %3125 = vmatmul.msk.f32.vlgmr.msra.gmra.mxu3 %vm799_vm1, %v3356_v55  ;;  %2788 = vmatpush.msra.mxu2 %v3143_v35  ;;  %v3135_v55 = vld [vmem:[%s5821_s10 + $0x100] sm:$0xff] }
 0xd76   :  { %v3166_v35 = vld [vmem:[%s5825_s14 + $0x160] sm:$0xff] }
 0xd77   :  { %2789 = vmatpush.msra.mxu2 %v3142_v63  ;;  %v3165_v63 = vld [vmem:[%s5825_s14 + $0x158] sm:$0xff] }
 0xd79   :  { %2790 = vmatpush.msra.mxu2 %v3141_v59  ;;  %v3164_v59 = vld [vmem:[%s5825_s14 + $0x150] sm:$0xff] }
 0xd7b   :  { %2791 = vmatpush.msra.mxu2 %v3140_v41  ;;  %v3163_v41 = vld [vmem:[%s5825_s14 + $0x148] sm:$0xff] }
 0xd7d   :  { %3126 = vmatmul.msk.f32.gmra.mxu3 %vm799_vm1, %v3357_v25  ;;  %2792 = vmatpush.msra.mxu2 %v3139_v36 }
 0xd7f   :  { %2793 = vmatpush.msra.mxu2 %v3138_v22 }
 0xd81   :  { %2794 = vmatpush.msra.mxu2 %v3137_v38  ;;  %v3162_v38 = vld [vmem:[%s5825_s14 + $0x140] sm:$0xff] }
 0xd83   :  { %2795 = vmatpush.msra.mxu2 %v3136_v30 }
 0xd85   :  { %3127 = vmatmul.msk.f32.gmra.mxu3 %vm799_vm1, %v3358_v3  ;;  %2796 = vmatpush.msra.mxu2 %v3135_v55  ;;  %v3161_v55 = vld [vmem:[%s5825_s14 + $0x138] sm:$0xff] }
 0xd8d   :  { %3128 = vmatmul.msk.f32.gmra.mxu3 %vm799_vm1, %v3359_v10 }
 0xd95   :  { %3129 = vmatmul.msk.f32.gmra.mxu3 %vm799_vm1, %v3360_v15 }
 0xd9d   :  { %3130 = vmatmul.msk.f32.gmra.mxu3 %vm799_vm1, %v3361_v28 }
 0xdf8   :  { %v2637_v9 = vpop.f32.mrf.mxu3 }
 0xe00   :  { %v2640_v0 = vpop.f32.mrf.mxu3 }
 0xe01   :  { %v2656_v33 = vsub.f32 %v6465_v53, %v2640_v0  ;;  %v6474_v53 = vmax.f32 %v6473_v44, 0.0 }
 0xe03   :  { %v2663_v42 = vmul.f32 1.442695, %v2656_v33 }
 0xe08   :  { %v2643_v24 = vpop.f32.mrf.mxu3 }
 0xe09   :  { %v2657_v11 = vsub.f32 %v6464_v49, %v2643_v24 }
 0xe0b   :  { %v2665_v27 = vmul.f32 1.442695, %v2657_v11 }
 0xe10   :  { %v2646_v14 = vpop.f32.mrf.mxu3 }
 0xe11   :  { %v2658_v40 = vsub.f32 %v6463_v45, %v2646_v14 }
 0xe13   :  { %v2667_v58 = vmul.f32 1.442695, %v2658_v40 }
 0xe18   :  { %v2649_v47 = vpop.f32.mrf.mxu3 }
 0xe19   :  { %v2659_v21 = vsub.f32 %v6462_v50, %v2649_v47 }
 0xe1b   :  { %v2669_v52 = vmul.f32 1.442695, %v2659_v21 }
 0xe1d   :  { %3310 = vpow2.f32 %v2669_v52 }
 0xe20   :  { %v2652_v39 = vpop.f32.mrf.mxu3 }
 0xe21   :  { %v2660_v31 = vsub.f32 %v5476_v19, %v2652_v39  ;;  %v6466_v19 = vld [vmem:[#allocation125_spill] sm:$0xff] }
 0xe22   :  { %v2655_v48 = vsub.f32 %v6466_v19, %v2637_v9 }
 0xe23   :  { %v2671_v18 = vmul.f32 1.442695, %v2660_v31  ;;  %v3311_v26 = vpop.eup %3310 }
 0xe24   :  { %v2661_v17 = vmul.f32 1.442695, %v2655_v48  ;;  %v2677_v46 = vmul.f32 %v3311_v26, %v6468_v57  ;;  %v6477_v57 = vld [vmem:[#allocation98_spill] sm:$0xff] }
 0xe25   :  { %3312 = vpow2.f32 %v2671_v18 }
 0xe26   :  { %3314 = vpow2.f32 %v2667_v58 }
 0xe27   :  { %3316 = vpow2.f32 %v2665_v27 }
 0xe28   :  { %3318 = vpow2.f32 %v2663_v42 }
 0xe29   :  { %3320 = vpow2.f32 %v2661_v17  ;;  %v6475_v17 = vld [vmem:[#allocation108_spill] sm:$0xff] }
 0xe2b   :  { %v3313_v1 = vpop.eup %3312 }
 0xe2c   :  { %2689 = vmatpush.msrb.mxu0 %v3313_v1  ;;  %v2678_v4 = vmul.f32 %v3313_v1, %v6467_v34  ;;  %v3315_v37 = vpop.eup %3314  ;;  %v3255_v34 = vld [vmem:[%s5822_s11 + $0x2] ss:$0 sm:$0xff] }
 0xe2d   :  { %v3317_v56 = vpop.eup %3316  ;;  %v2676_v8 = vmul.f32 %v3315_v37, %v6469_v29 }
 0xe2e   :  { %2690 = vmatpush.msrb.mxu0 %v3311_v26  ;;  %2712 = vmatpush.msra.mxu1 %v2678_v4  ;;  %v3319_v51 = vpop.eup %3318  ;;  %v2675_v23 = vmul.f32 %v3317_v56, %v6470_v60  ;;  %v6476_v26 = vmax.f32 %v6475_v17, 0.0 }
 0xe2f   :  { %v3321_v5 = vpop.eup %3320  ;;  %v2674_v54 = vmul.f32 %v3319_v51, %v6471_v20 }
 0xe30   :  { %2691 = vmatpush.msrb.mxu0 %v3315_v37  ;;  %2713 = vmatpush.msra.mxu1 %v2677_v46  ;;  %v2673_v61 = vmul.f32 %v3321_v5, %v6472_v13 }
 0xe32   :  { %2692 = vmatpush.msrb.mxu0 %v3317_v56  ;;  %2714 = vmatpush.msra.mxu1 %v2676_v8 }
 0xe34   :  { %2693 = vmatpush.msrb.mxu0 %v3319_v51  ;;  %2715 = vmatpush.msra.mxu1 %v2675_v23  ;;  %v3169_v51 = vld [vmem:[%s5825_s14 + $0x178] sm:$0xff] }
 0xe36   :  { %2694 = vmatpush.msrb.mxu0 %v3321_v5  ;;  %2716 = vmatpush.msra.mxu1 %v2674_v54 }
 0xe37   :  { %3131 = vmatmul.msk.f32.vlgmr.msrb.gmra.mxu0 %vm1260_vm9, %v3362_v6 }
 0xe38   :  { %2717 = vmatpush.msra.mxu1 %v2673_v61  ;;  %2886 = vmatpush.msra.mxu0 %v3169_v51 }
 0xe39   :  { %3133 = vmatmul.msk.f32.vlgmr.msra.gmra.mxu1 %vm1260_vm9, %v3362_v6 }
 0xe3a   :  { %2887 = vmatpush.msra.mxu0 %v3168_v7 }
 0xe3c   :  { %2888 = vmatpush.msra.mxu0 %v3167_v62 }
 0xe3e   :  { %2889 = vmatpush.msra.mxu0 %v3166_v35 }
 0xe3f   :  { %3132 = vmatmul.msk.f32.gmra.mxu0 %vm1260_vm9, %v3363_v16 }
 0xe40   :  { %2890 = vmatpush.msra.mxu0 %v3165_v63 }
 0xe41   :  { %3134 = vmatmul.msk.f32.gmra.mxu1 %vm1260_vm9, %v3363_v16 }
 0xe42   :  { %2891 = vmatpush.msra.mxu0 %v3164_v59  ;;  %v2983_v59 = vld [vmem:[%s5829_s18 + $0x70] sm:$0xff] }
 0xe44   :  { %2892 = vmatpush.msra.mxu0 %v3163_v41  ;;  %v2982_v41 = vld [vmem:[%s5829_s18 + $0x68] sm:$0xff] }
 0xe46   :  { %2893 = vmatpush.msra.mxu0 %v3162_v38  ;;  %v2979_v38 = vld [vmem:[%s5829_s18 + $0x50] sm:$0xff] }
 0xe48   :  { %2894 = vmatpush.msra.mxu0 %v3161_v55 }
 0xeb4   :  { %v2696_v25 = vpop.f32.mrf.mxu0 }
 0xeb5   :  { %v2725_v3 = vmax.f32 %v2696_v25, 1e-16  ;;  %v3160_v25 = vld [vmem:[%s5825_s14 + $0x130] sm:$0xff] }
 0xeb6   :  { %v2719_v50 = vpop.f32.mrf.mxu1  ;;  %2895 = vmatpush.msra.mxu0 %v3160_v25 }
 0xeb7   :  { %3322 = vrcp.f32 %v2725_v3  ;;  %v2738_v24 = vand.u32 2147483648, %v2725_v3  ;;  %v2736_v47 = vand.u32 2147483647, %v2725_v3  ;;  %vm2732_vm2 = vweird.f32 %v2725_v3 }
 0xeb9   :  { %v2739_v40 = vor.u32 1.1754944e-38, %v2738_v24  ;;  %vm2737_vm4 = vcmp.eq.f32.partialorder %v2736_v47, 8.507059e+37  ;;  %v3157_v24 = vld [vmem:[%s5825_s14 + $0x118] sm:$0xff]  ;;  %v3156_v47 = vld [vmem:[%s5825_s14 + $0x110] sm:$0xff] }
 0xebc   :  { %v2699_v10 = vpop.f32.mrf.mxu0 }
 0xebd   :  { %v3323_v15 = vpop.eup %3322  ;;  %v2726_v28 = vmax.f32 %v2699_v10, 1e-16 }
 0xebe   :  { %v2728_v9 = vmul.f32 %v3323_v15, %v2725_v3  ;;  %vm2733_vm1 = vweird.f32 %v3323_v15  ;;  %v2722_v19 = vpop.f32.mrf.mxu1  ;;  %v3159_v3 = vld [vmem:[%s5825_s14 + $0x128] sm:$0xff] }
 0xebf   :  { %3324 = vrcp.f32 %v2726_v28  ;;  %vm2734_vm3 = vmor %vm2732_vm2, %vm2733_vm1  ;;  %v2753_v12 = vand.u32 2147483648, %v2726_v28  ;;  %v2751_v18 = vand.u32 2147483647, %v2726_v28  ;;  %vm2747_vm6 = vweird.f32 %v2726_v28  ;;  %2896 = vmatpush.msra.mxu0 %v3159_v3  ;;  %v2977_v3 = vld [vmem:[%s5829_s18 + $0x40] sm:$0xff] }
 0xec0   :  { %v2729_v0 = vsub.f32 1.0, %v2728_v9 }
 0xec1   :  { %v2754_v48 = vor.u32 1.1754944e-38, %v2753_v12  ;;  %vm2752_vm8 = vcmp.eq.f32.partialorder %v2751_v18, 8.507059e+37 }
 0xec2   :  { %v2730_v14 = vmul.f32 %v3323_v15, %v2729_v0 }
 0xec4   :  { %v2731_v21 = vadd.f32 %v3323_v15, %v2730_v14 }
 0xec5   :  { %v3325_v45 = vpop.eup %3324 }
 0xec6   :  { %v2735_v52 = vsel %vm2734_vm3, %v3323_v15, %v2731_v21  ;;  %v2743_v39 = vmul.f32 %v3325_v45, %v2726_v28  ;;  %vm2748_vm5 = vweird.f32 %v3325_v45  ;;  %v3158_v28 = vld [vmem:[%s5825_s14 + $0x120] sm:$0xff]  ;;  %v3155_v21 = vld [vmem:[%s5825_s14 + $0x108] sm:$0xff] }
 0xec7   :  { %v2740_v49 = vsel %vm2737_vm4, %v2739_v40, %v2735_v52  ;;  %vm2749_vm7 = vmor %vm2747_vm6, %vm2748_vm5  ;;  %2897 = vmatpush.msra.mxu0 %v3158_v28  ;;  %v3154_v40 = vld [vmem:[%s5825_s14 + $0x100] sm:$0xff]  ;;  %v2975_v28 = vld [vmem:[%s5829_s18 + $0x30] sm:$0xff] }
 0xec8   :  { %v2741_v11 = vmul.f32 %v2740_v49, %v2719_v50  ;;  %v2744_v31 = vsub.f32 1.0, %v2743_v39 }
 0xec9   :  { %2898 = vmatpush.msra.mxu0 %v3157_v24 }
 0xeca   :  { %v2757_v33 = vadd.f32 %v2741_v11, %v6474_v53  ;;  %v2745_v58 = vmul.f32 %v3325_v45, %v2744_v31  ;;  %v3256_v31 = vld [vmem:[%s5823_s12 + $0x2] ss:$0 sm:$0xff] }
 0xecb   :  { %2899 = vmatpush.msra.mxu0 %v3156_v47 }
 0xecc   :  { %2797 = vmatmul.f32.vlgmr.msra.gmra.mxu2 %v2757_v33  ;;  %v2746_v32 = vadd.f32 %v3325_v45, %v2745_v58  ;;  %v3257_v33 = vld [vmem:[%s5824_s13 + $0x2] ss:$0 sm:$0xff] }
 0xecd   :  { %2900 = vmatpush.msra.mxu0 %v3155_v21  ;;  %v2972_v21 = vld [vmem:[%s5829_s18 + $0x18] sm:$0xff] }
 0xece   :  { %v2750_v27 = vsel %vm2749_vm7, %v3325_v45, %v2746_v32 }
 0xecf   :  { %v2755_v43 = vsel %vm2752_vm8, %v2754_v48, %v2750_v27  ;;  %2901 = vmatpush.msra.mxu0 %v3154_v40  ;;  %v2971_v40 = vld [vmem:[%s5829_s18 + $0x10] sm:$0xff] }
 0xed0   :  { %v2756_v42 = vmul.f32 %v2755_v43, %v2722_v19 }
 0xed2   :  { %v2758_v1 = vadd.f32 %v2756_v42, %v6476_v26 }
 0xed4   :  { %2800 = vmatmul.f32.gmra.mxu2 %v2758_v1 }
 0xf4f   :  { %v2798_v4 = vpop.f32.mrf.mxu2 }
 0xf50   :  { %v2799_v37 = vadd.f32 %v3255_v34, %v2798_v4 }
 0xf52   :  { %v2808_v46 = vmul.f32 %v6477_v57, %v2799_v37 }
 0xf54   :  { %2810 = vadd.xlane.f32.xlu2 %v2808_v46 }
 0xf57   :  { %v2801_v56 = vpop.f32.mrf.mxu2 }
 0xf58   :  { %v2802_v29 = vadd.f32 %v3255_v34, %v2801_v56  ;;  %v3258_v34 = vld [vmem:[%s5826_s15 + $0x2] ss:$0 sm:$0xff]  ;;  %v6479_v56 = vld [vmem:[#allocation96_spill] sm:$0xff] }
 0xf5a   :  { %v2809_v8 = vmul.f32 %v6477_v57, %v2802_v29 }
 0xf5c   :  { %2812 = vadd.xlane.f32.xlu0 %v2809_v8 }
 0xfc7   :  { %v2811_v60 = vpop.xlane.xlu2 %2810 }
 0xfc8   :  { %v2814_v23 = vmul.f32 0.015625, %v2811_v60  ;;  %v6480_v60 = vld [vmem:[#allocation95_spill] sm:$0xff] }
 0xfca   :  { %v2816_v5 = vsub.f32 %v2799_v37, %v2814_v23 }
 0xfcc   :  { %v2818_v20 = vmul.f32 %v6477_v57, %v2816_v5 }
 0xfce   :  { %v2820_v54 = vmul.f32 %v2818_v20, %v2818_v20 }
 0xfcf   :  { %v2813_v13 = vpop.xlane.xlu0 %2812 }
 0xfd0   :  { %v2815_v61 = vmul.f32 0.015625, %v2813_v13  ;;  %2822 = vadd.xlane.f32.xlu1 %v2820_v54 }
 0xfd2   :  { %v2817_v6 = vsub.f32 %v2802_v29, %v2815_v61 }
 0xfd4   :  { %v5681_v16 = vmul.f32 %v6477_v57, %v2817_v6  ;;  %v6478_v57 = vld [vmem:[#allocation103_spill] sm:$0xff] }
 0xfd6   :  { %v2821_v2 = vmul.f32 %v5681_v16, %v5681_v16 }
 0xfd8   :  { %2824 = vadd.xlane.f32.xlu2 %v2821_v2 }
0x1043   :  { %v2823_v36 = vpop.xlane.xlu1 %2822 }
0x1044   :  { %v2826_v22 = vmul.f32 0.015625, %v2823_v36  ;;  %v2981_v36 = vld [vmem:[%s5829_s18 + $0x60] sm:$0xff] }
0x1046   :  { %v2828_v30 = vadd.f32 1e-05, %v2826_v22  ;;  %v2980_v22 = vld [vmem:[%s5829_s18 + $0x58] sm:$0xff] }
0x1048   :  { %3326 = vrsqrt.f32 %v2828_v30  ;;  %vm2836_vm10 = vweird.f32 %v2828_v30 }
0x104b   :  { %v2825_v10 = vpop.xlane.xlu2 %2824 }
0x104c   :  { %v2827_v15 = vmul.f32 0.015625, %v2825_v10 }
0x104e   :  { %v3327_v9 = vpop.eup %3326  ;;  %v2829_v0 = vadd.f32 1e-05, %v2827_v15  ;;  %v2976_v15 = vld [vmem:[%s5829_s18 + $0x38] sm:$0xff] }
0x104f   :  { %v2831_v14 = vmul.f32 %v3327_v9, %v2828_v30  ;;  %vm2837_vm9 = vweird.f32 %v3327_v9  ;;  %v2978_v30 = vld [vmem:[%s5829_s18 + $0x48] sm:$0xff] }
0x1050   :  { %3328 = vrsqrt.f32 %v2829_v0  ;;  %vm2838_vm11 = vmor %vm2836_vm10, %vm2837_vm9  ;;  %vm2846_vm13 = vweird.f32 %v2829_v0 }
0x1051   :  { %v2832_v50 = vmul.f32 %v3327_v9, %v2831_v14  ;;  %v2973_v14 = vld [vmem:[%s5829_s18 + $0x20] sm:$0xff] }
0x1053   :  { %v2833_v45 = vmul.f32 0.5, %v2832_v50 }
0x1055   :  { %v2834_v52 = vsub.f32 1.5, %v2833_v45 }
0x1056   :  { %v3329_v39 = vpop.eup %3328 }
0x1057   :  { %v2835_v49 = vmul.f32 %v3327_v9, %v2834_v52  ;;  %v2841_v11 = vmul.f32 %v3329_v39, %v2829_v0  ;;  %vm2847_vm12 = vweird.f32 %v3329_v39 }
0x1058   :  { %vm2848_vm14 = vmor %vm2846_vm13, %vm2847_vm12 }
0x1059   :  { %v2839_v12 = vsel %vm2838_vm11, %v3327_v9, %v2835_v49  ;;  %v2842_v44 = vmul.f32 %v3329_v39, %v2841_v11  ;;  %v2974_v9 = vld [vmem:[%s5829_s18 + $0x28] sm:$0xff]  ;;  %v2969_v11 = vld [vmem:[%s5829_s18] sm:$0xff] }
0x105a   :  { %v2850_v53 = vmul.f32 %v2839_v12, %v2818_v20  ;;  %v2984_v20 = vld [vmem:[%s5829_s18 + $0x78] sm:$0xff] }
0x105b   :  { %v2843_v58 = vmul.f32 0.5, %v2842_v44  ;;  %2989 = vmatpush.msrb.mxu1 %v2984_v20 }
0x105c   :  { %v2855_v18 = vmul.f32 %v3256_v31, %v2850_v53 }
0x105d   :  { %v2844_v32 = vsub.f32 1.5, %v2843_v58  ;;  %2990 = vmatpush.msrb.mxu1 %v2983_v59 }
0x105e   :  { %v2860_v19 = vadd.f32 %v3257_v33, %v2855_v18 }
0x105f   :  { %v2845_v48 = vmul.f32 %v3329_v39, %v2844_v32  ;;  %2991 = vmatpush.msrb.mxu1 %v2982_v41 }
0x1060   :  { %v2862_v27 = vmax.f32 %v2860_v19, 0.0  ;;  %v3260_v19 = vld [vmem:[%s5828_s17] ss:$0 sm:$0xff]  ;;  %s3406_s17 = smov [#allocation5]  }
0x1061   :  { %v2849_v43 = vsel %vm2848_vm14, %v3329_v39, %v2845_v48  ;;  %2992 = vmatpush.msrb.mxu1 %v2981_v36  ;;  %v2970_v39 = vld [vmem:[%s5829_s18 + $0x8] sm:$0xff]  ;;  %s3018_s7 = sshll.u32 %s3406_s17, 4  ;;  %s3019_s7 = int_to_ptr.vmem [resolvable:$true] %s3018_s7 }
0x1062   :  { %2902 = vmatmul.f32.vlgmr.msra.gmra.mxu0 %v2862_v27  ;;  %v2851_v42 = vmul.f32 %v2849_v43, %v5681_v16 }
0x1063   :  { %2993 = vmatpush.msrb.mxu1 %v2980_v22 }
0x1064   :  { %v2856_v17 = vmul.f32 %v3256_v31, %v2851_v42 }
0x1065   :  { %2994 = vmatpush.msrb.mxu1 %v2979_v38 }
0x1066   :  { %v2861_v26 = vadd.f32 %v3257_v33, %v2856_v17  ;;  %v3259_v33 = vld [vmem:[%s5827_s16] ss:$0 sm:$0xff] }
0x1067   :  { %2995 = vmatpush.msrb.mxu1 %v2978_v30 }
0x1068   :  { %v2863_v1 = vmax.f32 %v2861_v26, 0.0 }
0x1069   :  { %2996 = vmatpush.msrb.mxu1 %v2977_v3 }
0x106a   :  { %2905 = vmatmul.f32.gmra.mxu0 %v2863_v1 }
0x106b   :  { %2997 = vmatpush.msrb.mxu1 %v2976_v15 }
0x106d   :  { %2998 = vmatpush.msrb.mxu1 %v2975_v28 }
0x106f   :  { %2999 = vmatpush.msrb.mxu1 %v2974_v9 }
0x1071   :  { %3000 = vmatpush.msrb.mxu1 %v2973_v14 }
0x1073   :  { %3001 = vmatpush.msrb.mxu1 %v2972_v21 }
0x1075   :  { %3002 = vmatpush.msrb.mxu1 %v2971_v40 }
0x1077   :  { %3003 = vmatpush.msrb.mxu1 %v2970_v39 }
0x1079   :  { %3004 = vmatpush.msrb.mxu1 %v2969_v11 }
0x10df   :  { %v2903_v4 = vpop.f32.mrf.mxu0 }
0x10e0   :  { %v2904_v37 = vadd.f32 %v3258_v34, %v2903_v4 }
0x10e2   :  { %v2909_v46 = vadd.f32 %v2904_v37, %v6478_v57 }
0x10e4   :  { %v2913_v29 = vmul.f32 %v6479_v56, %v2909_v46 }
0x10e6   :  { %2915 = vadd.xlane.f32.xlu0 %v2913_v29 }
0x10e7   :  { %v2906_v8 = vpop.f32.mrf.mxu0 }
0x10e8   :  { %v2907_v51 = vadd.f32 %v3258_v34, %v2906_v8 }
0x10ea   :  { %v2910_v23 = vadd.f32 %v2907_v51, %v6480_v60 }
0x10ec   :  { %v2914_v5 = vmul.f32 %v6479_v56, %v2910_v23 }
0x10ee   :  { %2917 = vadd.xlane.f32.xlu1 %v2914_v5 }
0x1159   :  { %v2916_v54 = vpop.xlane.xlu0 %2915 }
0x115a   :  { %v2919_v13 = vmul.f32 0.03125, %v2916_v54 }
0x115c   :  { %v2921_v61 = vsub.f32 %v2909_v46, %v2919_v13  ;;  %v3261_v46 = vld [vmem:[%s5830_s19] ss:$0 sm:$0xff] }
0x115e   :  { %v2923_v6 = vmul.f32 %v6479_v56, %v2921_v61 }
0x1160   :  { %v2925_v16 = vmul.f32 %v2923_v6, %v2923_v6 }
0x1161   :  { %v2918_v2 = vpop.xlane.xlu1 %2917 }
0x1162   :  { %v2920_v7 = vmul.f32 0.03125, %v2918_v2  ;;  %2927 = vadd.xlane.f32.xlu2 %v2925_v16 }
0x1164   :  { %v2922_v62 = vsub.f32 %v2910_v23, %v2920_v7 }
0x1166   :  { %v5749_v35 = vmul.f32 %v6479_v56, %v2922_v62 }
0x1168   :  { %v2926_v63 = vmul.f32 %v5749_v35, %v5749_v35 }
0x116a   :  { %2929 = vadd.xlane.f32.xlu0 %v2926_v63 }
0x11d5   :  { %v2928_v55 = vpop.xlane.xlu2 %2927 }
0x11d6   :  { %v2931_v25 = vmul.f32 0.03125, %v2928_v55 }
0x11d8   :  { %v2933_v10 = vadd.f32 1e-05, %v2931_v25 }
0x11da   :  { %3330 = vrsqrt.f32 %v2933_v10  ;;  %vm2941_vm0 = vweird.f32 %v2933_v10 }
0x11dd   :  { %v2930_v0 = vpop.xlane.xlu0 %2929 }
0x11de   :  { %v2932_v24 = vmul.f32 0.03125, %v2930_v0 }
0x11e0   :  { %v3331_v47 = vpop.eup %3330  ;;  %v2934_v50 = vadd.f32 1e-05, %v2932_v24 }
0x11e1   :  { %v2936_v45 = vmul.f32 %v3331_v47, %v2933_v10  ;;  %vm2942_vm15 = vweird.f32 %v3331_v47 }
0x11e2   :  { %3332 = vrsqrt.f32 %v2934_v50  ;;  %vm2943_vm1 = vmor %vm2941_vm0, %vm2942_vm15  ;;  %vm2951_vm3 = vweird.f32 %v2934_v50 }
0x11e3   :  { %v2937_v52 = vmul.f32 %v3331_v47, %v2936_v45 }
0x11e5   :  { %v2938_v49 = vmul.f32 0.5, %v2937_v52 }
0x11e7   :  { %v2939_v31 = vsub.f32 1.5, %v2938_v49 }
0x11e8   :  { %v3333_v12 = vpop.eup %3332 }
0x11e9   :  { %v2940_v44 = vmul.f32 %v3331_v47, %v2939_v31  ;;  %v2946_v53 = vmul.f32 %v3333_v12, %v2934_v50  ;;  %vm2952_vm2 = vweird.f32 %v3333_v12 }
0x11ea   :  { %vm2953_vm4 = vmor %vm2951_vm3, %vm2952_vm2 }
0x11eb   :  { %v2944_v58 = vsel %vm2943_vm1, %v3331_v47, %v2940_v44  ;;  %v2947_v18 = vmul.f32 %v3333_v12, %v2946_v53 }
0x11ec   :  { %v2955_v32 = vmul.f32 %v2944_v58, %v2923_v6 }
0x11ed   :  { %v2948_v48 = vmul.f32 0.5, %v2947_v18 }
0x11ee   :  { %v2960_v27 = vmul.f32 %v3259_v33, %v2955_v32 }
0x11ef   :  { %v2949_v43 = vsub.f32 1.5, %v2948_v48 }
0x11f0   :  { %v2965_v42 = vadd.f32 %v3260_v19, %v2960_v27 }
0x11f1   :  { %v2950_v17 = vmul.f32 %v3333_v12, %v2949_v43 }
0x11f2   :  { %v2967_v26 = vmax.f32 %v2965_v42, 0.0 }
0x11f3   :  { %v2954_v1 = vsel %vm2953_vm4, %v3333_v12, %v2950_v17 }
0x11f4   :  { %3005 = vmatmul.f32.vlgmr.msrb.gmra.mxu1 %v2967_v26  ;;  %v2956_v34 = vmul.f32 %v2954_v1, %v5749_v35 }
0x11f6   :  { %v2961_v4 = vmul.f32 %v3259_v33, %v2956_v34 }
0x11f8   :  { %v2966_v37 = vadd.f32 %v3260_v19, %v2961_v4 }
0x11fa   :  { %v2968_v57 = vmax.f32 %v2966_v37, 0.0 }
0x11fc   :  { %3008 = vmatmul.f32.gmra.mxu1 %v2968_v57 }
0x1271   :  { %v3006_v56 = vpop.f32.mrf.mxu1 }
0x1272   :  { %v3007_v29 = vadd.f32 %v3261_v46, %v3006_v56 }
0x1274   :  { %3012 = vst [vmem:[#allocation5] sm:$0xff] %v3007_v29 }
0x1279   :  { %v3009_v8 = vpop.f32.mrf.mxu1 }
0x127a   :  { %v3010_v51 = vadd.f32 %v3261_v46, %v3009_v8 }
0x127c   :  { %3013 = vst [vmem:[#allocation5 + $0x8] sm:$0xff] %v3010_v51 }
0x127d   :  { %3026 = dma.vmem_to_hbm [thread:$0]  %s3019_s7, 256, %s3021_s5, [#allocation3], %s3407_s6, %s3407_s6, %s3408_s0  }
0x127e   :  { %3402 = dma.done.wait [#allocation3], 256  }
0x127f   :  { %3403 = vsyncadd [#allocation3], 4294967040 }
0x1280   :  { %3031 = vsyncpa [#allocation3], 1 }
0x1281   :  { %3032 = vsyncpa [#allocation4], 1 }

</bundles_post_ra>
